<compile_context>
chip_gen: v7x
topology: tpu7x:2x2x1
jax: 0.10.0
libtpu: 0.0.40
codegen_flags: <defaults>
</compile_context>

<pallas_src>
import functools
import math

import jax
import jax.numpy as jnp
import numpy as np
from jax import lax
from jax.experimental import pallas as pl
from jax.experimental.pallas import tpu as pltpu


def _nonlocal_kernel(x_ref, wqkv_ref, bqkv_ref, o_ref, *, num_head, planes, dq, dv):
    # x_ref    : (1, C, N)            f32, channel-major features for this batch elem
    # wqkv_ref : (2*planes + C, C)    bf16, [Wq*inv_scale ; Wk ; Wv] in conv (out,in) form
    # bqkv_ref : (2*planes + C, 1)    f32, [bq*inv_scale ; bk ; 0]
    # o_ref    : (1, C, N)
    x = x_ref[0]                                   # (C, N) f32
    xb = x.astype(jnp.bfloat16)

    # Fused 1x1 convolutions == one channel matmul on the MXU:
    # (2*planes + C, C) @ (C, N) -> (2*planes + C, N), f32 accumulate + bias.
    qkv = jnp.dot(wqkv_ref[...], xb,
                  preferred_element_type=jnp.float32) + bqkv_ref[...]

    # q transposed once to (N, planes) so the per-head sim matmul is in the
    # MXU-native (M,K)x(K,N) form (single f32 XLU transpose, overlapped).
    q_t = qkv[:planes].T.astype(jnp.bfloat16)              # (N, planes)
    k = qkv[planes:2 * planes].astype(jnp.bfloat16)        # (planes, N)
    v = qkv[2 * planes:].astype(jnp.bfloat16)              # (C, N)

    outs = []
    for h in range(num_head):
        qh = q_t[:, h * dq:(h + 1) * dq]                   # (N, dq)  bf16 (pre-scaled)
        kh = k[h * dq:(h + 1) * dq, :]                     # (dq, N)  bf16
        vh = v[h * dv:(h + 1) * dv, :]                     # (dv, N)  bf16

        # sim[i, j] = sum_c q[c, i] * k[c, j]   (already scaled via Wq/bq)
        sim = jnp.dot(qh, kh, preferred_element_type=jnp.float32)   # (N, N) f32

        # softmax over the key axis (torch Softmax(dim=2))
        sim_max = jnp.max(sim, axis=-1, keepdims=True)
        p = jnp.exp(sim - sim_max)
        denom = jnp.sum(p, axis=-1, keepdims=True)
        att = (p * pl.reciprocal(denom, approx=True)).astype(jnp.bfloat16)

        # out_h[c, i] = sum_j v[c, j] * att[i, j]   (== (att @ v^T)^T, kept channel-major)
        out_h = lax.dot_general(vh, att, (((1,), (1,)), ((), ())),
                                preferred_element_type=jnp.float32)  # (dv, N) f32
        outs.append(out_h)

    out = jnp.concatenate(outs, axis=0) + x        # residual add in f32, (C, N)
    o_ref[0] = out.astype(o_ref.dtype)


def multihead_nonlocal_forward(x_nchw, wq, bq, wk, bk, wv, *, num_head, scale, temp):
    """x_nchw: (B, C, H, W) f32.  wq/wk: (planes, C), bq/bk: (planes,), wv: (C, C)."""
    B, C, H, W = x_nchw.shape
    N = H * W
    planes = wq.shape[0]
    dq = planes // num_head
    dv = C // num_head

    # NCHW -> (B, C, N) is a free reshape (no transpose, no extra HBM traffic).
    xf = x_nchw.reshape(B, C, N)

    # Fold 1/(scale*temp) into the query weights/bias; fuse q/k/v weights so the
    # kernel runs one big MXU matmul and the weights are DMA'd once (constant
    # block index across the batch grid).
    inv = 1.0 / (scale * temp)
    wqkv = jnp.concatenate([wq * inv, wk, wv], axis=0).astype(jnp.bfloat16)
    bqkv = jnp.concatenate(
        [bq * inv, bk, jnp.zeros((C,), bq.dtype)], axis=0
    ).reshape(2 * planes + C, 1).astype(jnp.float32)

    kernel = functools.partial(_nonlocal_kernel, num_head=num_head,
                               planes=planes, dq=dq, dv=dv)

    out = pl.pallas_call(
        kernel,
        out_shape=jax.ShapeDtypeStruct((B, C, N), x_nchw.dtype),
        grid=(B,),
        in_specs=[
            pl.BlockSpec((1, C, N), lambda b: (b, 0, 0)),            # x (also residual)
            pl.BlockSpec((2 * planes + C, C), lambda b: (0, 0)),     # fused Wqkv (resident)
            pl.BlockSpec((2 * planes + C, 1), lambda b: (0, 0)),     # fused biases
        ],
        out_specs=pl.BlockSpec((1, C, N), lambda b: (b, 0, 0)),
        compiler_params=pltpu.CompilerParams(
            dimension_semantics=("parallel",)),                      # >=2 steps: both v7x TCs busy
    )(xf, wqkv, bqkv)

    # (B, C, N) -> NCHW is again a free reshape.
    return out.reshape(B, C, H, W)


def ref_forward(x_nchw, wq, bq, wk, bk, wv, *, num_head, scale, temp):
    """Pure-JAX f32 reference mirroring the PyTorch forward."""
    B, C, H, W = x_nchw.shape
    N = H * W
    planes = wq.shape[0]
    dq, dv = planes // num_head, C // num_head
    xf = x_nchw.reshape(B, C, N)
    q = jnp.einsum('oc,bcn->bon', wq, xf) + bq[None, :, None]
    k = jnp.einsum('oc,bcn->bon', wk, xf) + bk[None, :, None]
    v = jnp.einsum('oc,bcn->bon', wv, xf)
    outs = []
    for h in range(num_head):
        qh = q[:, h * dq:(h + 1) * dq]
        kh = k[:, h * dq:(h + 1) * dq]
        vh = v[:, h * dv:(h + 1) * dv]
        sim = jnp.einsum('bdq,bdk->bqk', qh, kh) / (scale * temp)
        att = jax.nn.softmax(sim, axis=-1)
        outs.append(jnp.einsum('bqk,bdk->bdq', att, vh))   # (B, dv, N)
    out = jnp.concatenate(outs, axis=1) + xf
    return out.reshape(B, C, H, W)


if __name__ == "__main__":
    # Small, TPU-tile-friendly shapes: C = planes = 256 (dq = dv = 128),
    # H = W = 16 so N = 256 lanes (lane-dense, fills the MXU).
    B, C, H, W = 2, 256, 16, 16     # inplanes = 256
    planes = 256
    num_head = 2
    temp = 1.0
    scale = math.sqrt(planes / num_head)

    key = jax.random.PRNGKey(0)
    kx, kq, kk, kv, kbq, kbk = jax.random.split(key, 6)
    x = jax.random.normal(kx, (B, C, H, W), dtype=jnp.float32)

    # Conv weights in PyTorch 1x1 (out, in) form, ~ N(0, 0.01); conv_value has no bias.
    wq = 0.01 * jax.random.normal(kq, (planes, C), dtype=jnp.float32)
    wk = 0.01 * jax.random.normal(kk, (planes, C), dtype=jnp.float32)
    wv = 0.01 * jax.random.normal(kv, (C, C), dtype=jnp.float32)
    bq = 0.01 * jax.random.normal(kbq, (planes,), dtype=jnp.float32)
    bk = 0.01 * jax.random.normal(kbk, (planes,), dtype=jnp.float32)

    out = multihead_nonlocal_forward(x, wq, bq, wk, bk, wv,
                                     num_head=num_head, scale=scale, temp=temp)
    out = jax.block_until_ready(out)

    ref = ref_forward(x, wq, bq, wk, bk, wv,
                      num_head=num_head, scale=scale, temp=temp)
    # bf16 matmul operands + approx reciprocal => relaxed tolerance vs f32 ref.
    np.testing.assert_allclose(np.asarray(out), np.asarray(ref),
                               rtol=2e-2, atol=2e-2)
    print("KERNEL_OK")
</pallas_src>

<mosaic_0001>
module attributes {stable_mosaic.version = 11 : i64} {
  func.func @_nonlocal_kernel(%arg0: i32, %arg1: memref<1x256x256xf32, #tpu.memory_space<vmem>>, %arg2: memref<768x256xbf16, #tpu.memory_space<vmem>>, %arg3: memref<768x1xf32, #tpu.memory_space<vmem>>, %arg4: memref<1x256x256xf32, #tpu.memory_space<vmem>>) attributes {dimension_semantics = [#tpu.dimension_semantics<parallel>], iteration_bounds = array<i64: 2>, scalar_prefetch = 0 : i64, scratch_operands = 0 : i64, tpu.core_type = #tpu.core_type<tc>, window_params = [{transform_indices = @transform_0, window_bounds = array<i64: 1, 256, 256>}, {pipeline_mode = #tpu.pipeline_mode<synchronous>, transform_indices = @transform_1, window_bounds = array<i64: 768, 256>}, {pipeline_mode = #tpu.pipeline_mode<synchronous>, transform_indices = @transform_2, window_bounds = array<i64: 768, 1>}, {transform_indices = @transform_3, window_bounds = array<i64: 1, 256, 256>}]} {
    %c0 = arith.constant 0 : index
    %c0_0 = arith.constant 0 : index
    %c0_1 = arith.constant 0 : index
    %0 = vector.load %arg1[%c0, %c0_0, %c0_1] : memref<1x256x256xf32, #tpu.memory_space<vmem>>, vector<1x256x256xf32>
    %1 = vector.shape_cast %0 : vector<1x256x256xf32> to vector<256x256xf32>
    %2 = arith.truncf %1 : vector<256x256xf32> to vector<256x256xbf16>
    %c0_2 = arith.constant 0 : index
    %c0_3 = arith.constant 0 : index
    %3 = vector.load %arg2[%c0_2, %c0_3] : memref<768x256xbf16, #tpu.memory_space<vmem>>, vector<768x256xbf16>
    %cst = arith.constant dense<0.000000e+00> : vector<768x256xf32>
    %4 = tpu.matmul %3, %2, %cst {dimension_numbers = #tpu.dot_dimension_numbers<[1], [0], [0], [1], [0, 0, 1, 1], [], []>} : vector<768x256xbf16>, vector<256x256xbf16>, vector<768x256xf32> -> vector<768x256xf32>
    %c0_4 = arith.constant 0 : index
    %c0_5 = arith.constant 0 : index
    %5 = vector.load %arg3[%c0_4, %c0_5] : memref<768x1xf32, #tpu.memory_space<vmem>>, vector<768x1xf32>
    %6 = vector.broadcast %5 : vector<768x1xf32> to vector<768x256xf32>
    %7 = arith.addf %4, %6 : vector<768x256xf32>
    %8 = vector.extract_strided_slice %7 {offsets = [0, 0], sizes = [256, 256], strides = [1, 1]} : vector<768x256xf32> to vector<256x256xf32>
    %9 = tpu.transpose %8, [1, 0] : vector<256x256xf32> -> vector<256x256xf32>
    %10 = arith.truncf %9 : vector<256x256xf32> to vector<256x256xbf16>
    %11 = vector.extract_strided_slice %7 {offsets = [256, 0], sizes = [256, 256], strides = [1, 1]} : vector<768x256xf32> to vector<256x256xf32>
    %12 = arith.truncf %11 : vector<256x256xf32> to vector<256x256xbf16>
    %13 = vector.extract_strided_slice %7 {offsets = [512, 0], sizes = [256, 256], strides = [1, 1]} : vector<768x256xf32> to vector<256x256xf32>
    %14 = arith.truncf %13 : vector<256x256xf32> to vector<256x256xbf16>
    %15 = vector.extract_strided_slice %10 {offsets = [0, 0], sizes = [256, 128], strides = [1, 1]} : vector<256x256xbf16> to vector<256x128xbf16>
    %16 = vector.extract_strided_slice %12 {offsets = [0, 0], sizes = [128, 256], strides = [1, 1]} : vector<256x256xbf16> to vector<128x256xbf16>
    %17 = vector.extract_strided_slice %14 {offsets = [0, 0], sizes = [128, 256], strides = [1, 1]} : vector<256x256xbf16> to vector<128x256xbf16>
    %cst_6 = arith.constant dense<0.000000e+00> : vector<256x256xf32>
    %18 = tpu.matmul %15, %16, %cst_6 {dimension_numbers = #tpu.dot_dimension_numbers<[1], [0], [0], [1], [0, 0, 1, 1], [], []>} : vector<256x128xbf16>, vector<128x256xbf16>, vector<256x256xf32> -> vector<256x256xf32>
    %cst_7 = arith.constant dense<0xFF800000> : vector<256xf32>
    %19 = vector.multi_reduction <maximumf>, %18, %cst_7 [1] : vector<256x256xf32> to vector<256xf32>
    %20 = vector.shape_cast %19 : vector<256xf32> to vector<256x1xf32>
    %21 = vector.broadcast %20 : vector<256x1xf32> to vector<256x256xf32>
    %22 = arith.subf %18, %21 : vector<256x256xf32>
    %23 = math.exp %22 : vector<256x256xf32>
    %cst_8 = arith.constant dense<0.000000e+00> : vector<256xf32>
    %24 = vector.multi_reduction <add>, %23, %cst_8 [1] : vector<256x256xf32> to vector<256xf32>
    %25 = vector.shape_cast %24 : vector<256xf32> to vector<256x1xf32>
    %26 = tpu.reciprocal %25 {approx = true} : vector<256x1xf32> -> vector<256x1xf32>
    %27 = vector.broadcast %26 : vector<256x1xf32> to vector<256x256xf32>
    %28 = arith.mulf %23, %27 : vector<256x256xf32>
    %29 = arith.truncf %28 : vector<256x256xf32> to vector<256x256xbf16>
    %cst_9 = arith.constant dense<0.000000e+00> : vector<128x256xf32>
    %30 = tpu.matmul %17, %29, %cst_9 {dimension_numbers = #tpu.dot_dimension_numbers<[1], [1], [0], [0], [0, 0, 1, 0], [], []>} : vector<128x256xbf16>, vector<256x256xbf16>, vector<128x256xf32> -> vector<128x256xf32>
    %31 = vector.extract_strided_slice %10 {offsets = [0, 128], sizes = [256, 128], strides = [1, 1]} : vector<256x256xbf16> to vector<256x128xbf16>
    %32 = vector.extract_strided_slice %12 {offsets = [128, 0], sizes = [128, 256], strides = [1, 1]} : vector<256x256xbf16> to vector<128x256xbf16>
    %33 = vector.extract_strided_slice %14 {offsets = [128, 0], sizes = [128, 256], strides = [1, 1]} : vector<256x256xbf16> to vector<128x256xbf16>
    %cst_10 = arith.constant dense<0.000000e+00> : vector<256x256xf32>
    %34 = tpu.matmul %31, %32, %cst_10 {dimension_numbers = #tpu.dot_dimension_numbers<[1], [0], [0], [1], [0, 0, 1, 1], [], []>} : vector<256x128xbf16>, vector<128x256xbf16>, vector<256x256xf32> -> vector<256x256xf32>
    %cst_11 = arith.constant dense<0xFF800000> : vector<256xf32>
    %35 = vector.multi_reduction <maximumf>, %34, %cst_11 [1] : vector<256x256xf32> to vector<256xf32>
    %36 = vector.shape_cast %35 : vector<256xf32> to vector<256x1xf32>
    %37 = vector.broadcast %36 : vector<256x1xf32> to vector<256x256xf32>
    %38 = arith.subf %34, %37 : vector<256x256xf32>
    %39 = math.exp %38 : vector<256x256xf32>
    %cst_12 = arith.constant dense<0.000000e+00> : vector<256xf32>
    %40 = vector.multi_reduction <add>, %39, %cst_12 [1] : vector<256x256xf32> to vector<256xf32>
    %41 = vector.shape_cast %40 : vector<256xf32> to vector<256x1xf32>
    %42 = tpu.reciprocal %41 {approx = true} : vector<256x1xf32> -> vector<256x1xf32>
    %43 = vector.broadcast %42 : vector<256x1xf32> to vector<256x256xf32>
    %44 = arith.mulf %39, %43 : vector<256x256xf32>
    %45 = arith.truncf %44 : vector<256x256xf32> to vector<256x256xbf16>
    %cst_13 = arith.constant dense<0.000000e+00> : vector<128x256xf32>
    %46 = tpu.matmul %33, %45, %cst_13 {dimension_numbers = #tpu.dot_dimension_numbers<[1], [1], [0], [0], [0, 0, 1, 0], [], []>} : vector<128x256xbf16>, vector<256x256xbf16>, vector<128x256xf32> -> vector<128x256xf32>
    %47 = tpu.concatenate %30, %46 in 0 : vector<128x256xf32>, vector<128x256xf32> -> vector<256x256xf32>
    %48 = arith.addf %47, %1 : vector<256x256xf32>
    %c0_14 = arith.constant 0 : index
    %c0_15 = arith.constant 0 : index
    %c0_16 = arith.constant 0 : index
    %49 = vector.load %arg4[%c0_14, %c0_15, %c0_16] : memref<1x256x256xf32, #tpu.memory_space<vmem>>, vector<1x256x256xf32>
    %50 = vector.shape_cast %49 : vector<1x256x256xf32> to vector<256x256xf32>
    %51 = vector.shape_cast %48 : vector<256x256xf32> to vector<1x256x256xf32>
    tpu.vector_store %arg4[%c0_14, %c0_15, %c0_16], %51 {strides = array<i32>} : memref<1x256x256xf32, #tpu.memory_space<vmem>>, vector<1x256x256xf32>,
    return
  }
  func.func @transform_0(%arg0: i32) -> (i32, i32, i32) {
    %c0_i32 = arith.constant 0 : i32
    %c0_i32_0 = arith.constant 0 : i32
    %c0_i32_1 = arith.constant 0 : i32
    return %arg0, %c0_i32, %c0_i32_0 : i32, i32, i32
  }
  func.func @transform_1(%arg0: i32) -> (i32, i32) {
    %c0_i32 = arith.constant 0 : i32
    %c0_i32_0 = arith.constant 0 : i32
    %c0_i32_1 = arith.constant 0 : i32
    return %c0_i32, %c0_i32_0 : i32, i32
  }
  func.func @transform_2(%arg0: i32) -> (i32, i32) {
    %c0_i32 = arith.constant 0 : i32
    %c0_i32_0 = arith.constant 0 : i32
    %c0_i32_1 = arith.constant 0 : i32
    return %c0_i32, %c0_i32_0 : i32, i32
  }
  func.func @transform_3(%arg0: i32) -> (i32, i32, i32) {
    %c0_i32 = arith.constant 0 : i32
    %c0_i32_0 = arith.constant 0 : i32
    %c0_i32_1 = arith.constant 0 : i32
    return %arg0, %c0_i32, %c0_i32_0 : i32, i32, i32
  }
}

</mosaic_0001>

<bundles_post_ra>
// kernel: tpu_custom_call.1
= control target key start
LH: loop header
LB: loop body
LE: loop exit
PB: predicated region body
PF: predicated region fallthrough
CT: control target
= control target key end

     0   :  { %8 = vsyncpa [#allocation3], 0  ;;  %s7764_s0 = inlined_call_operand.hbm [shape: f32[2,256,256], index: 0, kind: input, shape index: {}]   ;;  %s7765_s1 = inlined_call_operand.vmem [shape: bf16[768,256], index: 1, kind: input, shape index: {}]   ;;  %s7766_s2 = inlined_call_operand.vmem [shape: f32[768,1], index: 2, kind: input, shape index: {}]   ;;  %s7767_s3 = inlined_call_operand.hbm [shape: f32[2,256,256], index: 3, kind: output, shape index: {}]  }
   0x1   :  { %10 = vsyncpa [#allocation3 + $0x1], 0 }
   0x2   :  { %11 = vsyncpa [#allocation4], 0 }
   0x3   :  { %13 = vsyncpa [#allocation4 + $0x1], 0  ;;  %s4908_s12 = smov 0   ;;  %s4910_s13 = smov 0  }
   0x4   :  { %s4912_s14 = smov 0   ;;  %s4914_s15 = smov 0  }
   0x5 LB: > { %s4929_s16 = sadd.s32 4294967295, %s4879_s15   ;;  %s4026_s17 = sadd.s32 4294967294, %s4879_s15   ;;  %s4879_s15 = sphi %s4914_s15, %s8214_s15   ;;  %s4875_s14 = sphi %s4912_s14, %s8213_s14   ;;  %s4871_s13 = sphi %s4910_s13, %s8212_s13   ;;  %s4867_s12 = sphi %s4908_s12, %s8211_s12  }
   0x6   : > { %s4933_s18 = sadd.s32 1, %s4879_s15   ;;  %s26_s19 = sadd.s32 1, %s4875_s14 }
   0x7   : > { %s23_s20 = ssub.s32 %s4879_s15, %s4933_s18  ;;  %p33_p0 = scmp.ne.s32.totalorder %s4875_s14, %s4871_s13 }
   0x8   : > { %p24_p1 = scmp.eq.s32.totalorder %s23_s20, 0  ;;  %p34_p2 = scmp.eq.s32.totalorder %s4879_s15, 0 }
   0x9   : > { %p39_p3 = scmp.ne.s32.totalorder %s4871_s13, %s4867_s12  ;;  %p40_p4 = scmp.eq.s32.totalorder %s4929_s16, 0 }
   0xa   : > { %s4945_s21 = scalar_select %p24_p1, %s4875_s14, %s26_s19  }
   0xb   : > { %p4947_p5 = por %p34_p2, %p33_p0  ;;  %p4951_p6 = por %p40_p4, %p39_p3 }
   0xc   : > { %p105_p7 = scmp.eq.s32.totalorder %s4929_s16, 1  ;;  %p111_p8 = scmp.eq.s32.totalorder %s4026_s17, 1 }
   0xd   : > { %p4150_p10 = scmp.lt.s32.totalorder %s4879_s15, 2  ;;  %s137_s26 = sand.u32 1, %s4875_s14  }
   0xe   : > { %p4958_p11 = por %p105_p7, %p33_p0  ;;  %p4962_p12 = por %p111_p8, %p39_p3 }
   0xf   : > { %s4136_s27 = sshll.u32 %s4879_s15, 13  ;;  %s4029_s28 = sshll.u32 %s137_s26, 9 }
  0x10   : > { %s7856_s24 = scalar_select %p4958_p11, 1, 0 }
  0x11   : > { %s7857_s25 = scalar_select %p4962_p12, 1, 0 }
  0x12   : > { %s4971_s4 = scalar_lea.hbm %s7764_s0, %s4136_s27  ;;  %s141_s5 = scalar_lea.vmem [#allocation2], %s4029_s28 }
  0x13   : > { %s148_s6 = sshll.u32 %s141_s5, 4  ;;  %p4975_p13 = pnand %p4150_p10, %p4947_p5  ;;  %s4979_s6 = int_to_ptr.vmem [resolvable:$true] %s148_s6 }
  0x14   : > { %s4981_s8 = scalar_lea.sflag [#allocation3], %s137_s26  ;;  %s4783_s9 = scalar_lea.hbm %s4971_s4, 8192 }
  0x15   : > { %p4784_p0 = scmp.ne.s32.totalorder %s4971_s4, %s4783_s9  ;;  %p4785_p1 = pneg %p4975_p13 }
  0x16   : > { %s4788_s17 = scalar_lea.hbm %s7764_s0, 16384  ;;  %p4789_p4 = scmp.lt.u32.totalorder %s4971_s4, %s7764_s0 }
  0x17   : > { %p4786_p2 = pnand %p4785_p1, %p4784_p0  ;;  %p4790_p5 = scmp.lt.u32.totalorder %s4788_s17, %s4783_s9 }
  0x18   : > { %p4792_p8 = scmp.lt.u32.totalorder %s4783_s9, %s4971_s4 }
  0x19   : > { %p4787_p3 = pneg %p4786_p2  ;;  %p4791_p7 = por %p4790_p5, %p4789_p4 }
  0x1b   : > { %p4793_p10 = por %p4792_p8, %p4791_p7 }
  0x1d   : > { %p4794_p9 = pnand %p4793_p10, %p4787_p3 }
  0x1f   : > { %4797 = shalt.err (!%p4794_p9)
}
  0x20   : > { %s4798_s22 = scalar_lea.vmem %s4979_s6, 8192  ;;  %s4881_s26 = smov [#allocation2]  }
  0x21   : > { %p4799_p0 = scmp.ne.s32.totalorder %s4979_s6, %s4798_s22  ;;  %s4803_s27 = sshll.u32 %s4881_s26, 4  ;;  %s4804_s27 = int_to_ptr.vmem [resolvable:$false] %s4803_s27 }
  0x22   : > { %s4805_s28 = scalar_lea.vmem %s4804_s27, 16384  ;;  %p4806_p11 = scmp.lt.s32.totalorder %s4979_s6, %s4804_s27 }
  0x23   : > { %p4801_p2 = pnand %p4799_p0, %p4785_p1  ;;  %p4807_p4 = scmp.lt.s32.totalorder %s4805_s28, %s4798_s22 }
  0x25   : > { %p4802_p12 = pneg %p4801_p2  ;;  %p4808_p5 = por %p4807_p4, %p4806_p11 }
  0x27   : > { %p4809_p7 = pnand %p4808_p5, %p4802_p12 }
  0x29   : > { %4812 = shalt.err (!%p4809_p7)
}
  0x2a   : > { %s4882_s29 = smov 256   ;;  %s4883_s30 = smov 16  }
  0x2b   : > { %4145 = dma.hbm_to_vmem [thread:$0]  (!%p4975_p13), %s4971_s4, 8192, %s4979_s6, %s4981_s8, %s4882_s29, %s4882_s29, %s4883_s30  }
  0x2c   : > { %p4032_p9 = scmp.ge.s32.totalorder %s4879_s15, 1  ;;  %p156_p1 = scmp.lt.s32.totalorder %s4879_s15, 3 }
  0x2e   : > { %p157_p3 = pnand %p4032_p9, %p156_p1 }
  0x30   : > { %160 = sbr.rel (%p157_p3) target bundleno = 2445 (0x98d), region = 32 }
  0x37   : > { %s5012_s5 = sand.u32 1, %s4871_s13  }
  0x38   : > { %s4033_s9 = sshll.u32 %s5012_s5, 9  ;;  %s163_s10 = scalar_lea.sflag [#allocation3], %s5012_s5 }
  0x39   : > { %s5018_s11 = scalar_lea.vmem [#allocation2], %s4033_s9 }
  0x3a   : > { %4858 = dma.done.wait (%p4951_p6), %s163_s10, 8192  }
  0x3b   : > { %4860 = vsyncadd (%p4951_p6), %s163_s10, 4294959104  ;;  %v191_v0 = vld [vmem:[%s5018_s11 + $0x8] sm:$0xff]  ;;  %v193_v1 = vld [vmem:[%s5018_s11 + $0x18] sm:$0xff]  ;;  %v7769_v40 = vmov 0   ;;  %s6837_s17 = scalar_lea.vmem [#allocation5], %s4033_s9  ;;  %s4137_s26 = sshll.u32 %s4929_s16, 13 }
  0x3c   : > { %v190_v2 = vld [vmem:[%s5018_s11] sm:$0xff]  ;;  %v255_v3 = vpack.c.bf16 %v193_v1, %v191_v0  ;;  %v192_v4 = vld [vmem:[%s5018_s11 + $0x10] sm:$0xff]  ;;  %v195_v5 = vld [vmem:[%s5018_s11 + $0x28] sm:$0xff]  ;;  %4189 = vset.pattern.permute.xlu0 %v7769_v40  ;;  %4190 = vset.pattern.permute.xlu1 %v7769_v40  ;;  %s3953_s27 = sshll.u32 %s6837_s17, 4  ;;  %s7714_s30 = scalar_lea.hbm %s7767_s3, %s4137_s26  ;;  %s7716_s27 = int_to_ptr.vmem [resolvable:$true] %s3953_s27 }
  0x3d   : > { %v197_v6 = vld [vmem:[%s5018_s11 + $0x38] sm:$0xff]  ;;  %v254_v7 = vpack.c.bf16 %v192_v4, %v190_v2  ;;  %v194_v9 = vld [vmem:[%s5018_s11 + $0x20] sm:$0xff]  ;;  %v196_v10 = vld [vmem:[%s5018_s11 + $0x30] sm:$0xff]  ;;  %2207 = vmatprep.mubr.bf16.mxu1 %v7769_v40  ;;  %s3940_s16 = scalar_lea.sflag [#allocation4], %s5012_s5  ;;  %s4813_s10 = scalar_lea.vmem %s7716_s27, 8192 }
  0x3e   : > { %v257_v8 = vpack.c.bf16 %v197_v6, %v195_v5  ;;  %v199_v11 = vld [vmem:[%s5018_s11 + $0x48] sm:$0xff]  ;;  %1438 = vmatprep.subr.bf16.mxu0 %v255_v3  ;;  %v201_v12 = vld [vmem:[%s5018_s11 + $0x58] sm:$0xff]  ;;  %v256_v13 = vpack.c.bf16 %v196_v10, %v194_v9  ;;  %v198_v15 = vld [vmem:[%s5018_s11 + $0x40] sm:$0xff]  ;;  %p4814_p6 = scmp.ne.s32.totalorder %s7716_s27, %s4813_s10  ;;  %p8208_p11 = scmp.ne.s32.totalorder %s7856_s24, 0 }
  0x3f   : > { %1439 = vmatpush1.bf16.msra.mxu0 %v254_v7  ;;  %v259_v14 = vpack.c.bf16 %v201_v12, %v199_v11  ;;  %v200_v16 = vld [vmem:[%s5018_s11 + $0x50] sm:$0xff]  ;;  %v203_v17 = vld [vmem:[%s5018_s11 + $0x68] sm:$0xff]  ;;  %v205_v18 = vld [vmem:[%s5018_s11 + $0x78] sm:$0xff]  ;;  %s4885_s23 = smov [#allocation5]  }
  0x40   : > { %1440 = vmatprep.subr.bf16.mxu0 %v257_v8  ;;  %v258_v19 = vpack.c.bf16 %v200_v16, %v198_v15  ;;  %v261_v20 = vpack.c.bf16 %v205_v18, %v203_v17  ;;  %v202_v21 = vld [vmem:[%s5018_s11 + $0x60] sm:$0xff]  ;;  %v204_v22 = vld [vmem:[%s5018_s11 + $0x70] sm:$0xff]  ;;  %v207_v23 = vld [vmem:[%s5018_s11 + $0x88] sm:$0xff]  ;;  %p4815_p12 = pnand %p4814_p6, %p8208_p11  ;;  %s4817_s4 = sshll.u32 %s4885_s23, 4  ;;  %s4818_s4 = int_to_ptr.vmem [resolvable:$false] %s4817_s4 }
  0x41   : > { %v209_v24 = vld [vmem:[%s5018_s11 + $0x98] sm:$0xff]  ;;  %v260_v25 = vpack.c.bf16 %v204_v22, %v202_v21  ;;  %v206_v27 = vld [vmem:[%s5018_s11 + $0x80] sm:$0xff]  ;;  %v208_v28 = vld [vmem:[%s5018_s11 + $0x90] sm:$0xff]  ;;  %s4819_s6 = scalar_lea.vmem %s4818_s4, 16384  ;;  %p4820_p8 = scmp.lt.s32.totalorder %s7716_s27, %s4818_s4 }
  0x42   : > { %v263_v26 = vpack.c.bf16 %v209_v24, %v207_v23  ;;  %v211_v29 = vld [vmem:[%s5018_s11 + $0xa8] sm:$0xff]  ;;  %v213_v30 = vld [vmem:[%s5018_s11 + $0xb8] sm:$0xff]  ;;  %v262_v31 = vpack.c.bf16 %v208_v28, %v206_v27  ;;  %v210_v33 = vld [vmem:[%s5018_s11 + $0xa0] sm:$0xff]  ;;  %p4816_p13 = pneg %p4815_p12  ;;  %p4821_p10 = scmp.lt.s32.totalorder %s4819_s6, %s4813_s10 }
  0x43   : > { %1441 = vmatpush1.bf16.msra.mxu0 %v256_v13  ;;  %v265_v32 = vpack.c.bf16 %v213_v30, %v211_v29  ;;  %v212_v34 = vld [vmem:[%s5018_s11 + $0xb0] sm:$0xff]  ;;  %v215_v35 = vld [vmem:[%s5018_s11 + $0xc8] sm:$0xff]  ;;  %v217_v36 = vld [vmem:[%s5018_s11 + $0xd8] sm:$0xff] }
  0x44   : > { %1442 = vmatprep.subr.bf16.mxu0 %v259_v14  ;;  %v264_v37 = vpack.c.bf16 %v212_v34, %v210_v33  ;;  %v214_v38 = vld [vmem:[%s5018_s11 + $0xc0] sm:$0xff]  ;;  %v216_v39 = vld [vmem:[%s5018_s11 + $0xd0] sm:$0xff]  ;;  %v267_v41 = vpack.c.bf16 %v217_v36, %v215_v35  ;;  %v219_v42 = vld [vmem:[%s5018_s11 + $0xe8] sm:$0xff]  ;;  %p4822_p0 = por %p4821_p10, %p4820_p8 }
  0x45   : > { %v221_v43 = vld [vmem:[%s5018_s11 + $0xf8] sm:$0xff]  ;;  %v4193_v44 = vld [vmem:[%s7765_s1 + $0x4] ss:$8 sps:$4 sm:$0xff]   ;;  %v266_v45 = vpack.c.bf16 %v216_v39, %v214_v38  ;;  %v220_v48 = vld [vmem:[%s5018_s11 + $0xf0] sm:$0xff] }
  0x46   : > { %v218_v46 = vld [vmem:[%s5018_s11 + $0xe0] sm:$0xff]  ;;  %1470 = vmatprep.mubr.bf16.mxu0 %v4193_v44  ;;  %v269_v47 = vpack.c.bf16 %v221_v43, %v219_v42  ;;  %v223_v49 = vld [vmem:[%s5018_s11 + $0x108] sm:$0xff]  ;;  %v225_v50 = vld [vmem:[%s5018_s11 + $0x118] sm:$0xff]  ;;  %p4823_p2 = pnand %p4822_p0, %p4816_p13 }
  0x47   : > { %1443 = vmatpush1.bf16.msra.mxu0 %v258_v19  ;;  %v268_v51 = vpack.c.bf16 %v220_v48, %v218_v46  ;;  %v222_v52 = vld [vmem:[%s5018_s11 + $0x100] sm:$0xff]  ;;  %v271_v53 = vpack.c.bf16 %v225_v50, %v223_v49  ;;  %v224_v54 = vld [vmem:[%s5018_s11 + $0x110] sm:$0xff]  ;;  %v227_v55 = vld [vmem:[%s5018_s11 + $0x128] sm:$0xff] }
  0x48   : > { %1444 = vmatprep.subr.bf16.mxu0 %v261_v20  ;;  %v229_v56 = vld [vmem:[%s5018_s11 + $0x138] sm:$0xff]  ;;  %v270_v57 = vpack.c.bf16 %v224_v54, %v222_v52  ;;  %v226_v58 = vld [vmem:[%s5018_s11 + $0x120] sm:$0xff]  ;;  %v228_v60 = vld [vmem:[%s5018_s11 + $0x130] sm:$0xff] }
  0x49   : > { %v273_v59 = vpack.c.bf16 %v229_v56, %v227_v55  ;;  %v231_v61 = vld [vmem:[%s5018_s11 + $0x148] sm:$0xff]  ;;  %v233_v62 = vld [vmem:[%s5018_s11 + $0x158] sm:$0xff]  ;;  %v272_v63 = vpack.c.bf16 %v228_v60, %v226_v58  ;;  %v230_v0 = vld [vmem:[%s5018_s11 + $0x140] sm:$0xff] }
  0x4a   : > { %v382_v1 = vld [vmem:[%s7766_s2] sm:$0xff]  ;;  %v275_v2 = vpack.c.bf16 %v233_v62, %v231_v61  ;;  %v232_v3 = vld [vmem:[%s5018_s11 + $0x150] sm:$0xff]  ;;  %v235_v4 = vld [vmem:[%s5018_s11 + $0x168] sm:$0xff] }
  0x4b   : > { %1445 = vmatpush1.bf16.msra.mxu0 %v260_v25  ;;  %480 = vperm.xlu0 %4189, %v382_v1   ;;  %v237_v5 = vld [vmem:[%s5018_s11 + $0x178] sm:$0xff]  ;;  %v383_v6 = vld [vmem:[%s7766_s2 + $0x8] sm:$0xff]  ;;  %v384_v7 = vld [vmem:[%s7766_s2 + $0x10] sm:$0xff]  ;;  %v274_v8 = vpack.c.bf16 %v232_v3, %v230_v0 }
  0x4c   : > { %1446 = vmatprep.subr.bf16.mxu0 %v263_v26  ;;  %490 = vperm.xlu1 %4190, %v384_v7   ;;  %v234_v9 = vld [vmem:[%s5018_s11 + $0x160] sm:$0xff]  ;;  %v385_v10 = vld [vmem:[%s7766_s2 + $0x18] sm:$0xff]  ;;  %v277_v11 = vpack.c.bf16 %v237_v5, %v235_v4  ;;  %v236_v12 = vld [vmem:[%s5018_s11 + $0x170] sm:$0xff] }
  0x4d   : > { %v239_v13 = vld [vmem:[%s5018_s11 + $0x188] sm:$0xff]  ;;  %v241_v14 = vld [vmem:[%s5018_s11 + $0x198] sm:$0xff]  ;;  %v386_v15 = vld [vmem:[%s7766_s2 + $0x20] sm:$0xff]  ;;  %v276_v18 = vpack.c.bf16 %v236_v12, %v234_v9 }
  0x4e   : > { %v238_v16 = vld [vmem:[%s5018_s11 + $0x180] sm:$0xff]  ;;  %v240_v17 = vld [vmem:[%s5018_s11 + $0x190] sm:$0xff]  ;;  %v243_v19 = vld [vmem:[%s5018_s11 + $0x1a8] sm:$0xff]  ;;  %v279_v21 = vpack.c.bf16 %v241_v14, %v239_v13 }
  0x4f   : > { %1447 = vmatpush1.bf16.msra.mxu0 %v262_v31  ;;  %485 = vperm.xlu0 %4189, %v383_v6   ;;  %v387_v20 = vld [vmem:[%s7766_s2 + $0x28] sm:$0xff]  ;;  %v245_v22 = vld [vmem:[%s5018_s11 + $0x1b8] sm:$0xff]  ;;  %v388_v23 = vld [vmem:[%s7766_s2 + $0x30] sm:$0xff]  ;;  %v278_v27 = vpack.c.bf16 %v240_v17, %v238_v16 }
  0x50   : > { %1448 = vmatprep.subr.bf16.mxu0 %v265_v32  ;;  %495 = vperm.xlu1 %4190, %v385_v10   ;;  %v389_v24 = vld [vmem:[%s7766_s2 + $0x38] sm:$0xff]  ;;  %v242_v25 = vld [vmem:[%s5018_s11 + $0x1a0] sm:$0xff]  ;;  %v244_v26 = vld [vmem:[%s5018_s11 + $0x1b0] sm:$0xff]  ;;  %v281_v31 = vpack.c.bf16 %v245_v22, %v243_v19 }
  0x51   : > { %v247_v28 = vld [vmem:[%s5018_s11 + $0x1c8] sm:$0xff]  ;;  %v249_v29 = vld [vmem:[%s5018_s11 + $0x1d8] sm:$0xff]  ;;  %v390_v30 = vld [vmem:[%s7766_s2 + $0x40] sm:$0xff]  ;;  %v280_v34 = vpack.c.bf16 %v244_v26, %v242_v25 }
  0x52   : > { %v246_v32 = vld [vmem:[%s5018_s11 + $0x1c0] sm:$0xff]  ;;  %v248_v33 = vld [vmem:[%s5018_s11 + $0x1d0] sm:$0xff]  ;;  %v251_v35 = vld [vmem:[%s5018_s11 + $0x1e8] sm:$0xff]  ;;  %v283_v39 = vpack.c.bf16 %v249_v29, %v247_v28 }
  0x53   : > { %1449 = vmatpush1.bf16.msra.mxu0 %v264_v37  ;;  %500 = vperm.xlu0 %4189, %v386_v15   ;;  %v253_v36 = vld [vmem:[%s5018_s11 + $0x1f8] sm:$0xff]  ;;  %v392_v37 = vld [vmem:[%s7766_s2 + $0x50] sm:$0xff]  ;;  %v391_v38 = vld [vmem:[%s7766_s2 + $0x48] sm:$0xff]  ;;  %v282_v44 = vpack.c.bf16 %v248_v33, %v246_v32 }
  0x54   : > { %1450 = vmatprep.subr.bf16.mxu0 %v267_v41  ;;  %505 = vperm.xlu1 %4190, %v387_v20   ;;  %v393_v41 = vld [vmem:[%s7766_s2 + $0x58] sm:$0xff]  ;;  %v250_v42 = vld [vmem:[%s5018_s11 + $0x1e0] sm:$0xff]  ;;  %v252_v43 = vld [vmem:[%s5018_s11 + $0x1f0] sm:$0xff]  ;;  %v285_v46 = vpack.c.bf16 %v253_v36, %v251_v35 }
  0x55   : > { %v396_v48 = vld [vmem:[%s7766_s2 + $0x70] sm:$0xff]  ;;  %v395_v49 = vld [vmem:[%s7766_s2 + $0x68] sm:$0xff]  ;;  %v397_v52 = vld [vmem:[%s7766_s2 + $0x78] sm:$0xff] }
  0x56   : > { %v4191_v50 = vld [vmem:[%s7765_s1] ss:$8 sps:$4 sm:$0xff]   ;;  %v416_v54 = vld [vmem:[%s7766_s2 + $0x110] sm:$0xff]  ;;  %v417_v58 = vld [vmem:[%s7766_s2 + $0x118] sm:$0xff] }
  0x57   : > { %1451 = vmatpush1.bf16.msra.mxu0 %v266_v45  ;;  %510 = vperm.xlu0 %4189, %v388_v23   ;;  %v394_v45 = vld [vmem:[%s7766_s2 + $0x60] sm:$0xff]  ;;  %v415_v55 = vld [vmem:[%s7766_s2 + $0x108] sm:$0xff]  ;;  %v4196_v56 = vld [vmem:[%s7765_s1 + $0x10] ss:$8 sps:$4 sm:$0xff]  }
  0x58   : > { %1452 = vmatprep.subr.bf16.mxu0 %v269_v47  ;;  %515 = vperm.xlu1 %4190, %v389_v24   ;;  %v284_v47 = vpack.c.bf16 %v252_v43, %v250_v42  ;;  %v419_v60 = vld [vmem:[%s7766_s2 + $0x128] sm:$0xff]  ;;  %v420_v61 = vld [vmem:[%s7766_s2 + $0x130] sm:$0xff]  ;;  %v421_v0 = vld [vmem:[%s7766_s2 + $0x138] sm:$0xff] }
  0x59   : > { %v4199_v62 = vld [vmem:[%s7765_s1 + $0x20] ss:$8 sps:$4 sm:$0xff]   ;;  %v424_v3 = vld [vmem:[%s7766_s2 + $0x150] sm:$0xff]  ;;  %v4203_v5 = vld [vmem:[%s7765_s1 + $0x44] ss:$8 sps:$4 sm:$0xff]  }
  0x5a   : > { %v422_v1 = vld [vmem:[%s7766_s2 + $0x140] sm:$0xff]  ;;  %v4202_v4 = vld [vmem:[%s7765_s1 + $0x30] ss:$8 sps:$4 sm:$0xff]   ;;  %v4212_v16 = vld [vmem:[%s7765_s1 + $0x74] ss:$8 sps:$4 sm:$0xff]  }
  0x5b   : > { %1453 = vmatpush1.bf16.msra.mxu0 %v268_v51  ;;  %520 = vperm.xlu0 %4189, %v390_v30   ;;  %v4194_v51 = vld [vmem:[%s7765_s1 + $0x14] ss:$8 sps:$4 sm:$0xff]   ;;  %v426_v7 = vld [vmem:[%s7766_s2 + $0x160] sm:$0xff]  ;;  %v4208_v13 = vld [vmem:[%s7765_s1 + $0x50] ss:$8 sps:$4 sm:$0xff]  }
  0x5c   : > { %1454 = vmatprep.subr.bf16.mxu0 %v271_v53  ;;  %525 = vperm.xlu1 %4190, %v391_v38   ;;  %v414_v53 = vld [vmem:[%s7766_s2 + $0x100] sm:$0xff]  ;;  %v425_v6 = vld [vmem:[%s7766_s2 + $0x158] sm:$0xff]  ;;  %v428_v9 = vld [vmem:[%s7766_s2 + $0x170] sm:$0xff] }
  0x5d   : > { %v4205_v10 = vld [vmem:[%s7765_s1 + $0x40] ss:$8 sps:$4 sm:$0xff]   ;;  %v429_v12 = vld [vmem:[%s7766_s2 + $0x178] sm:$0xff]  ;;  %v4209_v14 = vld [vmem:[%s7765_s1 + $0x64] ss:$8 sps:$4 sm:$0xff]  }
  0x5e   : > { %v4211_v15 = vld [vmem:[%s7765_s1 + $0x60] ss:$8 sps:$4 sm:$0xff]   ;;  %v4214_v17 = vld [vmem:[%s7765_s1 + $0x70] ss:$8 sps:$4 sm:$0xff]   ;;  %v4218_v20 = vld [vmem:[%s7765_s1 + $0x94] ss:$8 sps:$4 sm:$0xff]  }
  0x5f   : > { %1455 = vmatpush1.bf16.msra.mxu0 %v270_v57  ;;  %530 = vperm.xlu0 %4189, %v392_v37   ;;  %v4197_v57 = vld [vmem:[%s7765_s1 + $0x24] ss:$8 sps:$4 sm:$0xff]   ;;  %v4217_v19 = vld [vmem:[%s7765_s1 + $0x80] ss:$8 sps:$4 sm:$0xff]   ;;  %v4224_v24 = vld [vmem:[%s7765_s1 + $0xb4] ss:$8 sps:$4 sm:$0xff]  }
  0x60   : > { %1456 = vmatprep.subr.bf16.mxu0 %v273_v59  ;;  %535 = vperm.xlu1 %4190, %v393_v41   ;;  %v418_v59 = vld [vmem:[%s7766_s2 + $0x120] sm:$0xff]  ;;  %v4226_v25 = vld [vmem:[%s7765_s1 + $0xb0] ss:$8 sps:$4 sm:$0xff]   ;;  %v4230_v28 = vld [vmem:[%s7765_s1 + $0xd4] ss:$8 sps:$4 sm:$0xff]  }
  0x61   : > { %v4221_v22 = vld [vmem:[%s7765_s1 + $0xa4] ss:$8 sps:$4 sm:$0xff]   ;;  %v4223_v23 = vld [vmem:[%s7765_s1 + $0xa0] ss:$8 sps:$4 sm:$0xff]   ;;  %v4232_v29 = vld [vmem:[%s7765_s1 + $0xd0] ss:$8 sps:$4 sm:$0xff]  }
  0x62   : > { %v4227_v26 = vld [vmem:[%s7765_s1 + $0xc4] ss:$8 sps:$4 sm:$0xff]   ;;  %v4236_v32 = vld [vmem:[%s7765_s1 + $0xf4] ss:$8 sps:$4 sm:$0xff]   ;;  %v4238_v33 = vld [vmem:[%s7765_s1 + $0xf0] ss:$8 sps:$4 sm:$0xff]  }
  0x63   : > { %1457 = vmatpush1.bf16.msra.mxu0 %v272_v63  ;;  %540 = vperm.xlu0 %4189, %v394_v45   ;;  %v4200_v63 = vld [vmem:[%s7765_s1 + $0x34] ss:$8 sps:$4 sm:$0xff]   ;;  %v4233_v30 = vld [vmem:[%s7765_s1 + $0xe4] ss:$8 sps:$4 sm:$0xff]   ;;  %v4241_v35 = vld [vmem:[%s7765_s1 + $0x100] ss:$8 sps:$4 sm:$0xff]  }
  0x64   : > { %1458 = vmatprep.subr.bf16.mxu0 %v275_v2  ;;  %545 = vperm.xlu1 %4190, %v395_v49   ;;  %v423_v2 = vld [vmem:[%s7766_s2 + $0x148] sm:$0xff]  ;;  %v4242_v36 = vld [vmem:[%s7765_s1 + $0x114] ss:$8 sps:$4 sm:$0xff]   ;;  %v4244_v37 = vld [vmem:[%s7765_s1 + $0x110] ss:$8 sps:$4 sm:$0xff]  }
  0x65   : > { %v4245_v38 = vld [vmem:[%s7765_s1 + $0x124] ss:$8 sps:$4 sm:$0xff]   ;;  %v4248_v41 = vld [vmem:[%s7765_s1 + $0x134] ss:$8 sps:$4 sm:$0xff]   ;;  %v4250_v42 = vld [vmem:[%s7765_s1 + $0x130] ss:$8 sps:$4 sm:$0xff]  }
  0x66   : > { %v4251_v43 = vld [vmem:[%s7765_s1 + $0x144] ss:$8 sps:$4 sm:$0xff]   ;;  %v4254_v45 = vld [vmem:[%s7765_s1 + $0x154] ss:$8 sps:$4 sm:$0xff]  }
  0x67   : > { %1459 = vmatpush1.bf16.msra.mxu0 %v274_v8  ;;  %550 = vperm.xlu0 %4189, %v396_v48   ;;  %v427_v8 = vld [vmem:[%s7766_s2 + $0x168] sm:$0xff]  ;;  %v4260_v49 = vld [vmem:[%s7765_s1 + $0x174] ss:$8 sps:$4 sm:$0xff]  }
  0x68   : > { %1460 = vmatprep.subr.bf16.mxu0 %v277_v11  ;;  %555 = vperm.xlu1 %4190, %v397_v52   ;;  %v4206_v11 = vld [vmem:[%s7765_s1 + $0x54] ss:$8 sps:$4 sm:$0xff]   ;;  %v4259_v48 = vld [vmem:[%s7765_s1 + $0x160] ss:$8 sps:$4 sm:$0xff]  }
  0x69   : > { %v4265_v52 = vld [vmem:[%s7765_s1 + $0x180] ss:$8 sps:$4 sm:$0xff]  }
  0x6b   : > { %1461 = vmatpush1.bf16.msra.mxu0 %v276_v18  ;;  %640 = vperm.xlu0 %4189, %v414_v53   ;;  %v4215_v18 = vld [vmem:[%s7765_s1 + $0x84] ss:$8 sps:$4 sm:$0xff]   ;;  %v4266_v53 = vld [vmem:[%s7765_s1 + $0x194] ss:$8 sps:$4 sm:$0xff]  }
  0x6c   : > { %1462 = vmatprep.subr.bf16.mxu0 %v279_v21  ;;  %645 = vperm.xlu1 %4190, %v415_v55   ;;  %v4220_v21 = vld [vmem:[%s7765_s1 + $0x90] ss:$8 sps:$4 sm:$0xff]   ;;  %v4269_v55 = vld [vmem:[%s7765_s1 + $0x1a4] ss:$8 sps:$4 sm:$0xff]  }
  0x6f   : > { %1463 = vmatpush1.bf16.msra.mxu0 %v278_v27  ;;  %650 = vperm.xlu0 %4189, %v416_v54   ;;  %v4229_v27 = vld [vmem:[%s7765_s1 + $0xc0] ss:$8 sps:$4 sm:$0xff]   ;;  %v4268_v54 = vld [vmem:[%s7765_s1 + $0x190] ss:$8 sps:$4 sm:$0xff]  }
  0x70   : > { %1464 = vmatprep.subr.bf16.mxu0 %v281_v31  ;;  %655 = vperm.xlu1 %4190, %v417_v58   ;;  %v4235_v31 = vld [vmem:[%s7765_s1 + $0xe0] ss:$8 sps:$4 sm:$0xff]  }
  0x73   : > { %1465 = vmatpush1.bf16.msra.mxu0 %v280_v34  ;;  %660 = vperm.xlu0 %4189, %v418_v59   ;;  %v4239_v34 = vld [vmem:[%s7765_s1 + $0x104] ss:$8 sps:$4 sm:$0xff]  }
  0x74   : > { %1466 = vmatprep.subr.bf16.mxu0 %v283_v39  ;;  %665 = vperm.xlu1 %4190, %v419_v60   ;;  %v4247_v39 = vld [vmem:[%s7765_s1 + $0x120] ss:$8 sps:$4 sm:$0xff]  }
  0x77   : > { %1467 = vmatpush1.bf16.msra.mxu0 %v282_v44  ;;  %670 = vperm.xlu0 %4189, %v420_v61   ;;  %v4253_v44 = vld [vmem:[%s7765_s1 + $0x140] ss:$8 sps:$4 sm:$0xff]  }
  0x78   : > { %1468 = vmatprep.subr.bf16.mxu0 %v285_v46  ;;  %675 = vperm.xlu1 %4190, %v421_v0   ;;  %v4256_v46 = vld [vmem:[%s7765_s1 + $0x150] ss:$8 sps:$4 sm:$0xff]  }
  0x7b   : > { %1469 = vmatpush1.bf16.msra.mxu0 %v284_v47  ;;  %680 = vperm.xlu0 %4189, %v422_v1   ;;  %v4257_v47 = vld [vmem:[%s7765_s1 + $0x164] ss:$8 sps:$4 sm:$0xff]  }
  0x7c   : > { %685 = vperm.xlu1 %4190, %v423_v2   ;;  %v4275_v2 = vld [vmem:[%s7765_s1 + $0x1c4] ss:$8 sps:$4 sm:$0xff]  }
  0x7e   : > { %1471 = vmatmul.mubr.bf16.vlgmr.msra.gmra.mrb[0].mxu0 %v4191_v50  ;;  %v4262_v50 = vld [vmem:[%s7765_s1 + $0x170] ss:$8 sps:$4 sm:$0xff]  }
  0x7f   : > { %1480 = vmatprep.mubr.bf16.mxu0 %v4194_v51  ;;  %690 = vperm.xlu0 %4189, %v424_v3   ;;  %v4263_v51 = vld [vmem:[%s7765_s1 + $0x184] ss:$8 sps:$4 sm:$0xff]  }
  0x80   : > { %695 = vperm.xlu1 %4190, %v425_v6  }
  0x83   : > { %700 = vperm.xlu0 %4189, %v426_v7  }
  0x84   : > { %705 = vperm.xlu1 %4190, %v427_v8  }
  0x86   : > { %1481 = vmatmul.mubr.bf16.gmra.mrb[4].mxu0 %v4196_v56  ;;  %v4271_v56 = vld [vmem:[%s7765_s1 + $0x1a0] ss:$8 sps:$4 sm:$0xff]  }
  0x87   : > { %1490 = vmatprep.mubr.bf16.mxu0 %v4197_v57  ;;  %710 = vperm.xlu0 %4189, %v428_v9   ;;  %v4272_v57 = vld [vmem:[%s7765_s1 + $0x1b4] ss:$8 sps:$4 sm:$0xff]  }
  0x88   : > { %715 = vperm.xlu1 %4190, %v429_v12  }
  0x8e   : > { %1491 = vmatmul.mubr.bf16.gmra.mrb[8].mxu0 %v4199_v62  ;;  %v4274_v62 = vld [vmem:[%s7765_s1 + $0x1b0] ss:$8 sps:$4 sm:$0xff]  }
  0x8f   : > { %1500 = vmatprep.mubr.bf16.mxu0 %v4200_v63 }
  0x96   : > { %1501 = vmatmul.mubr.bf16.gmra.mrb[12].mxu0 %v4202_v4 }
  0x97   : > { %1510 = vmatprep.mubr.bf16.mxu0 %v4203_v5 }
  0x9e   : > { %1511 = vmatmul.mubr.bf16.gmra.mrb[16].mxu0 %v4205_v10  ;;  %v4277_v10 = vld [vmem:[%s7765_s1 + $0x1c0] ss:$8 sps:$4 sm:$0xff]  }
  0x9f   : > { %1520 = vmatprep.mubr.bf16.mxu0 %v4206_v11 }
  0xa6   : > { %1521 = vmatmul.mubr.bf16.gmra.mrb[20].mxu0 %v4208_v13 }
  0xa7   : > { %1530 = vmatprep.mubr.bf16.mxu0 %v4209_v14  ;;  %v4278_v14 = vld [vmem:[%s7765_s1 + $0x1d4] ss:$8 sps:$4 sm:$0xff]  }
  0xae   : > { %1531 = vmatmul.mubr.bf16.gmra.mrb[24].mxu0 %v4211_v15 }
  0xaf   : > { %1540 = vmatprep.mubr.bf16.mxu0 %v4212_v16 }
  0xb6   : > { %1541 = vmatmul.mubr.bf16.gmra.mrb[28].mxu0 %v4214_v17 }
  0xb7   : > { %1550 = vmatprep.mubr.bf16.mxu0 %v4215_v18 }
  0xbe   : > { %1551 = vmatmul.mubr.bf16.gmra.mrb[32].mxu0 %v4217_v19 }
  0xbf   : > { %1560 = vmatprep.mubr.bf16.mxu0 %v4218_v20 }
  0xc6   : > { %1561 = vmatmul.mubr.bf16.gmra.mrb[36].mxu0 %v4220_v21 }
  0xc7   : > { %1570 = vmatprep.mubr.bf16.mxu0 %v4221_v22  ;;  %v4280_v22 = vld [vmem:[%s7765_s1 + $0x1d0] ss:$8 sps:$4 sm:$0xff]  }
  0xca   : > { %v481_v58 = vpop.permute.xlu0 %480 }
  0xcb   : > { %v491_v4 = vpop.permute.xlu1 %490 }
  0xce   : > { %1571 = vmatmul.mubr.bf16.gmra.mrb[40].mxu0 %v4223_v23  ;;  %v486_v0 = vpop.permute.xlu0 %485 }
  0xcf   : > { %1580 = vmatprep.mubr.bf16.mxu0 %v4224_v24  ;;  %v496_v12 = vpop.permute.xlu1 %495 }
  0xd2   : > { %v501_v18 = vpop.permute.xlu0 %500 }
  0xd6   : > { %1581 = vmatmul.mubr.bf16.gmra.mrb[44].mxu0 %v4226_v25  ;;  %v4281_v25 = vld [vmem:[%s7765_s1 + $0x1e4] ss:$8 sps:$4 sm:$0xff]  }
  0xd7   : > { %1590 = vmatprep.mubr.bf16.mxu0 %v4227_v26 }
  0xde   : > { %1591 = vmatmul.mubr.bf16.gmra.mrb[48].mxu0 %v4229_v27  ;;  %v506_v27 = vpop.permute.xlu1 %505 }
  0xdf   : > { %1600 = vmatprep.mubr.bf16.mxu0 %v4230_v28 }
  0xe6   : > { %1601 = vmatmul.mubr.bf16.gmra.mrb[52].mxu0 %v4232_v29 }
  0xe7   : > { %1610 = vmatprep.mubr.bf16.mxu0 %v4233_v30  ;;  %v511_v30 = vpop.permute.xlu0 %510 }
  0xee   : > { %1611 = vmatmul.mubr.bf16.gmra.mrb[56].mxu0 %v4235_v31 }
  0xef   : > { %1620 = vmatprep.mubr.bf16.mxu0 %v4236_v32 }
  0xf6   : > { %1621 = vmatmul.mubr.bf16.gmra.mrb[60].mxu0 %v4238_v33 }
  0xf7   : > { %1630 = vmatprep.mubr.bf16.mxu0 %v4239_v34  ;;  %v4283_v34 = vld [vmem:[%s7765_s1 + $0x1e0] ss:$8 sps:$4 sm:$0xff]  }
  0xfe   : > { %1631 = vmatmul.mubr.bf16.gmra.mrb[64].mxu0 %v4241_v35 }
  0xff   : > { %1640 = vmatprep.mubr.bf16.mxu0 %v4242_v36 }
 0x106   : > { %1641 = vmatmul.mubr.bf16.gmra.mrb[68].mxu0 %v4244_v37  ;;  %v4284_v37 = vld [vmem:[%s7765_s1 + $0x1f4] ss:$8 sps:$4 sm:$0xff]  }
 0x107   : > { %1650 = vmatprep.mubr.bf16.mxu0 %v4245_v38 }
 0x10e   : > { %1651 = vmatmul.mubr.bf16.gmra.mrb[72].mxu0 %v4247_v39  ;;  %v516_v39 = vpop.permute.xlu1 %515 }
 0x10f   : > { %1660 = vmatprep.mubr.bf16.mxu0 %v4248_v41 }
 0x116   : > { %1661 = vmatmul.mubr.bf16.gmra.mrb[76].mxu0 %v4250_v42 }
 0x117   : > { %1670 = vmatprep.mubr.bf16.mxu0 %v4251_v43  ;;  %v521_v43 = vpop.permute.xlu0 %520 }
 0x11e   : > { %1671 = vmatmul.mubr.bf16.gmra.mrb[80].mxu0 %v4253_v44 }
 0x11f   : > { %1680 = vmatprep.mubr.bf16.mxu0 %v4254_v45 }
 0x126   : > { %1681 = vmatmul.mubr.bf16.gmra.mrb[84].mxu0 %v4256_v46 }
 0x127   : > { %1690 = vmatprep.mubr.bf16.mxu0 %v4257_v47  ;;  %v4286_v47 = vld [vmem:[%s7765_s1 + $0x1f0] ss:$8 sps:$4 sm:$0xff]  }
 0x12e   : > { %1691 = vmatmul.mubr.bf16.gmra.mrb[88].mxu0 %v4259_v48 }
 0x12f   : > { %1700 = vmatprep.mubr.bf16.mxu0 %v4260_v49 }
 0x136   : > { %1701 = vmatmul.mubr.bf16.gmra.mrb[92].mxu0 %v4262_v50  ;;  %v4287_v50 = vld [vmem:[%s7765_s1 + $0x204] ss:$8 sps:$4 sm:$0xff]  }
 0x137   : > { %1710 = vmatprep.mubr.bf16.mxu0 %v4263_v51 }
 0x13e   : > { %1711 = vmatmul.mubr.bf16.gmra.mrb[96].mxu0 %v4265_v52  ;;  %v526_v52 = vpop.permute.xlu1 %525 }
 0x13f   : > { %1720 = vmatprep.mubr.bf16.mxu0 %v4266_v53 }
 0x146   : > { %1721 = vmatmul.mubr.bf16.gmra.mrb[100].mxu0 %v4268_v54 }
 0x147   : > { %1730 = vmatprep.mubr.bf16.mxu0 %v4269_v55  ;;  %v531_v55 = vpop.permute.xlu0 %530 }
 0x14e   : > { %1731 = vmatmul.mubr.bf16.gmra.mrb[104].mxu0 %v4271_v56 }
 0x14f   : > { %1740 = vmatprep.mubr.bf16.mxu0 %v4272_v57 }
 0x151   : > { %v1472_v59 = vpop.f32.mrb[0].mxu0 }
 0x152   : > { %v1473_v60 = vadd.f32 %v1472_v59, %v481_v58  ;;  %v1474_v61 = vpop.f32.mrb[1].mxu0  ;;  %v4289_v59 = vld [vmem:[%s7765_s1 + $0x200] ss:$8 sps:$4 sm:$0xff]  }
 0x153   : > { %v1475_v63 = vadd.f32 %v1474_v61, %v481_v58  ;;  %v1476_v1 = vpop.f32.mrb[2].mxu0 }
 0x154   : > { %v1478_v3 = vpop.f32.mrb[3].mxu0  ;;  %1951 = vxpose.xlu0.b32.start [1/16] %v1473_v60, 128  ;;  %v1477_v5 = vadd.f32 %v1476_v1, %v486_v0 }
 0x155   : > { %1983 = vxpose.xlu1.b32.start [1/16] %v1475_v63, 128  ;;  %v1479_v6 = vadd.f32 %v1478_v3, %v486_v0  ;;  %v536_v0 = vpop.permute.xlu1 %535  ;;  %v541_v3 = vpop.permute.xlu0 %540 }
 0x156   : > { %1741 = vmatmul.mubr.bf16.gmra.mrb[108].mxu0 %v4274_v62  ;;  %v4290_v62 = vld [vmem:[%s7765_s1 + $0x214] ss:$8 sps:$4 sm:$0xff]  }
 0x157   : > { %1750 = vmatprep.mubr.bf16.mxu0 %v4275_v2 }
 0x158   : > { %1952 = vxpose.xlu0.b32.cont [2/16] %v1477_v5, 128 }
 0x159   : > { %v1482_v7 = vpop.f32.mrb[4].mxu0  ;;  %1984 = vxpose.xlu1.b32.cont [2/16] %v1479_v6, 128 }
 0x15a   : > { %v1483_v8 = vadd.f32 %v1482_v7, %v491_v4  ;;  %v1484_v9 = vpop.f32.mrb[5].mxu0  ;;  %v4292_v7 = vld [vmem:[%s7765_s1 + $0x210] ss:$8 sps:$4 sm:$0xff]  }
 0x15b   : > { %v1485_v11 = vadd.f32 %v1484_v9, %v491_v4  ;;  %v1486_v13 = vpop.f32.mrb[6].mxu0 }
 0x15c   : > { %v1488_v15 = vpop.f32.mrb[7].mxu0  ;;  %1953 = vxpose.xlu0.b32.cont [3/16] %v1483_v8, 128  ;;  %v1487_v16 = vadd.f32 %v1486_v13, %v496_v12 }
 0x15d   : > { %1985 = vxpose.xlu1.b32.cont [3/16] %v1485_v11, 128  ;;  %v1489_v17 = vadd.f32 %v1488_v15, %v496_v12  ;;  %v546_v12 = vpop.permute.xlu1 %545  ;;  %v551_v15 = vpop.permute.xlu0 %550 }
 0x15e   : > { %1751 = vmatmul.mubr.bf16.gmra.mrb[112].mxu0 %v4277_v10  ;;  %v4293_v10 = vld [vmem:[%s7765_s1 + $0x224] ss:$8 sps:$4 sm:$0xff]  }
 0x15f   : > { %1760 = vmatprep.mubr.bf16.mxu0 %v4278_v14 }
 0x160   : > { %1954 = vxpose.xlu0.b32.cont [4/16] %v1487_v16, 128 }
 0x161   : > { %v1492_v19 = vpop.f32.mrb[8].mxu0  ;;  %1986 = vxpose.xlu1.b32.cont [4/16] %v1489_v17, 128 }
 0x162   : > { %v1493_v20 = vadd.f32 %v1492_v19, %v501_v18  ;;  %v1494_v21 = vpop.f32.mrb[9].mxu0  ;;  %v4295_v19 = vld [vmem:[%s7765_s1 + $0x220] ss:$8 sps:$4 sm:$0xff]  }
 0x163   : > { %v1495_v23 = vadd.f32 %v1494_v21, %v501_v18  ;;  %v1496_v24 = vpop.f32.mrb[10].mxu0 }
 0x164   : > { %v1498_v26 = vpop.f32.mrb[11].mxu0  ;;  %1955 = vxpose.xlu0.b32.cont [5/16] %v1493_v20, 128  ;;  %v1497_v28 = vadd.f32 %v1496_v24, %v506_v27 }
 0x165   : > { %1987 = vxpose.xlu1.b32.cont [5/16] %v1495_v23, 128  ;;  %v1499_v29 = vadd.f32 %v1498_v26, %v506_v27  ;;  %v556_v23 = vpop.permute.xlu1 %555 }
 0x166   : > { %1761 = vmatmul.mubr.bf16.gmra.mrb[116].mxu0 %v4280_v22 }
 0x167   : > { %1770 = vmatprep.mubr.bf16.mxu0 %v4281_v25 }
 0x168   : > { %1956 = vxpose.xlu0.b32.cont [6/16] %v1497_v28, 128 }
 0x169   : > { %v1502_v31 = vpop.f32.mrb[12].mxu0  ;;  %1988 = vxpose.xlu1.b32.cont [6/16] %v1499_v29, 128 }
 0x16a   : > { %v1503_v32 = vadd.f32 %v1502_v31, %v511_v30  ;;  %v1504_v33 = vpop.f32.mrb[13].mxu0 }
 0x16b   : > { %v1505_v35 = vadd.f32 %v1504_v33, %v511_v30  ;;  %v1506_v36 = vpop.f32.mrb[14].mxu0 }
 0x16c   : > { %v1508_v38 = vpop.f32.mrb[15].mxu0  ;;  %1957 = vxpose.xlu0.b32.cont [7/16] %v1503_v32, 128  ;;  %v1507_v41 = vadd.f32 %v1506_v36, %v516_v39 }
 0x16d   : > { %1989 = vxpose.xlu1.b32.cont [7/16] %v1505_v35, 128  ;;  %v1509_v42 = vadd.f32 %v1508_v38, %v516_v39  ;;  %v5421_v38 = vpop.permute.xlu1 %645  ;;  %v5423_v39 = vpop.permute.xlu0 %640 }
 0x16e   : > { %1771 = vmatmul.mubr.bf16.gmra.mrb[120].mxu0 %v4283_v34 }
 0x16f   : > { %1780 = vmatprep.mubr.bf16.mxu0 %v4284_v37 }
 0x170   : > { %1958 = vxpose.xlu0.b32.cont [8/16] %v1507_v41, 128 }
 0x171   : > { %v1512_v44 = vpop.f32.mrb[16].mxu0  ;;  %1990 = vxpose.xlu1.b32.cont [8/16] %v1509_v42, 128 }
 0x172   : > { %v1513_v45 = vadd.f32 %v1512_v44, %v521_v43  ;;  %v1514_v46 = vpop.f32.mrb[17].mxu0 }
 0x173   : > { %v1515_v48 = vadd.f32 %v1514_v46, %v521_v43  ;;  %v1516_v49 = vpop.f32.mrb[18].mxu0  ;;  %v5436_v46 = vpop.permute.xlu1 %655 }
 0x174   : > { %v1518_v51 = vpop.f32.mrb[19].mxu0  ;;  %1959 = vxpose.xlu0.b32.cont [9/16] %v1513_v45, 128  ;;  %v1517_v53 = vadd.f32 %v1516_v49, %v526_v52  ;;  %v398_v45 = vld [vmem:[%s7766_s2 + $0x80] sm:$0xff] }
 0x175   : > { %1991 = vxpose.xlu1.b32.cont [9/16] %v1515_v48, 128  ;;  %v1519_v54 = vadd.f32 %v1518_v51, %v526_v52  ;;  %v446_v48 = vld [vmem:[%s7766_s2 + $0x200] sm:$0xff] }
 0x176   : > { %1781 = vmatmul.mubr.bf16.gmra.mrb[124].mxu0 %v4286_v47  ;;  %v5438_v47 = vpop.permute.xlu0 %650 }
 0x177   : > { %1790 = vmatprep.mubr.bf16.mxu0 %v4287_v50  ;;  %v5447_v51 = vpop.permute.xlu1 %665 }
 0x178   : > { %1960 = vxpose.xlu0.b32.cont [10/16] %v1517_v53, 128 }
 0x179   : > { %v1522_v56 = vpop.f32.mrb[20].mxu0  ;;  %1992 = vxpose.xlu1.b32.cont [10/16] %v1519_v54, 128  ;;  %v447_v54 = vld [vmem:[%s7766_s2 + $0x208] sm:$0xff] }
 0x17a   : > { %v1523_v57 = vadd.f32 %v1522_v56, %v531_v55  ;;  %v1524_v58 = vpop.f32.mrb[21].mxu0  ;;  %v399_v56 = vld [vmem:[%s7766_s2 + $0x88] sm:$0xff] }
 0x17b   : > { %v1525_v60 = vadd.f32 %v1524_v58, %v531_v55  ;;  %v1526_v61 = vpop.f32.mrb[22].mxu0  ;;  %v5456_v55 = vpop.permute.xlu0 %660 }
 0x17c   : > { %v1528_v63 = vpop.f32.mrb[23].mxu0  ;;  %1961 = vxpose.xlu0.b32.cont [11/16] %v1523_v57, 128  ;;  %v1527_v1 = vadd.f32 %v1526_v61, %v536_v0  ;;  %v401_v57 = vld [vmem:[%s7766_s2 + $0x98] sm:$0xff]  ;;  %v5464_v58 = vpop.permute.xlu1 %675  ;;  %v400_v61 = vld [vmem:[%s7766_s2 + $0x90] sm:$0xff] }
 0x17d   : > { %1993 = vxpose.xlu1.b32.cont [11/16] %v1525_v60, 128  ;;  %v1529_v2 = vadd.f32 %v1528_v63, %v536_v0 }
 0x17e   : > { %1791 = vmatmul.mubr.bf16.gmra.mrb[128].mxu0 %v4289_v59 }
 0x17f   : > { %1800 = vmatprep.mubr.bf16.mxu0 %v4290_v62  ;;  %v5473_v62 = vpop.permute.xlu0 %670 }
 0x180   : > { %1962 = vxpose.xlu0.b32.cont [12/16] %v1527_v1, 128  ;;  %v403_v1 = vld [vmem:[%s7766_s2 + $0xa8] sm:$0xff] }
 0x181   : > { %v1532_v4 = vpop.f32.mrb[24].mxu0  ;;  %1994 = vxpose.xlu1.b32.cont [12/16] %v1529_v2, 128  ;;  %v402_v2 = vld [vmem:[%s7766_s2 + $0xa0] sm:$0xff] }
 0x182   : > { %v1533_v5 = vadd.f32 %v1532_v4, %v541_v3  ;;  %v1534_v6 = vpop.f32.mrb[25].mxu0  ;;  %v449_v4 = vld [vmem:[%s7766_s2 + $0x218] sm:$0xff] }
 0x183   : > { %v1535_v8 = vadd.f32 %v1534_v6, %v541_v3  ;;  %v1536_v9 = vpop.f32.mrb[26].mxu0  ;;  %v5485_v3 = vpop.permute.xlu1 %685 }
 0x184   : > { %v1538_v11 = vpop.f32.mrb[27].mxu0  ;;  %1963 = vxpose.xlu0.b32.cont [13/16] %v1533_v5, 128  ;;  %v1537_v13 = vadd.f32 %v1536_v9, %v546_v12  ;;  %v5490_v5 = vpop.permute.xlu0 %680 }
 0x185   : > { %1995 = vxpose.xlu1.b32.cont [13/16] %v1535_v8, 128  ;;  %v1539_v14 = vadd.f32 %v1538_v11, %v546_v12  ;;  %v448_v8 = vld [vmem:[%s7766_s2 + $0x210] sm:$0xff]  ;;  %v405_v11 = vld [vmem:[%s7766_s2 + $0xb8] sm:$0xff] }
 0x186   : > { %1801 = vmatmul.mubr.bf16.gmra.mrb[132].mxu0 %v4292_v7 }
 0x187   : > { %1810 = vmatprep.mubr.bf16.mxu0 %v4293_v10  ;;  %v5506_v12 = vpop.permute.xlu1 %695 }
 0x188   : > { %1964 = vxpose.xlu0.b32.cont [14/16] %v1537_v13, 128  ;;  %v404_v13 = vld [vmem:[%s7766_s2 + $0xb0] sm:$0xff] }
 0x189   : > { %v1542_v16 = vpop.f32.mrb[28].mxu0  ;;  %1996 = vxpose.xlu1.b32.cont [14/16] %v1539_v14, 128  ;;  %v5511_v14 = vpop.permute.xlu0 %690 }
 0x18a   : > { %v1543_v17 = vadd.f32 %v1542_v16, %v551_v15  ;;  %v1544_v18 = vpop.f32.mrb[29].mxu0 }
 0x18b   : > { %v1545_v20 = vadd.f32 %v1544_v18, %v551_v15  ;;  %v1546_v21 = vpop.f32.mrb[30].mxu0  ;;  %v407_v15 = vld [vmem:[%s7766_s2 + $0xc8] sm:$0xff]  ;;  %v406_v18 = vld [vmem:[%s7766_s2 + $0xc0] sm:$0xff] }
 0x18c   : > { %v1548_v22 = vpop.f32.mrb[31].mxu0  ;;  %1965 = vxpose.xlu0.b32.cont [15/16] %v1543_v17, 128  ;;  %v1547_v24 = vadd.f32 %v1546_v21, %v556_v23 }
 0x18d   : > { %1997 = vxpose.xlu1.b32.cont [15/16] %v1545_v20, 128  ;;  %v1549_v25 = vadd.f32 %v1548_v22, %v556_v23  ;;  %v451_v22 = vld [vmem:[%s7766_s2 + $0x228] sm:$0xff]  ;;  %v5532_v23 = vpop.permute.xlu0 %700 }
 0x18e   : > { %1811 = vmatmul.mubr.bf16.gmra.mrb[136].mxu0 %v4295_v19  ;;  %v5523_v19 = vpop.permute.xlu1 %705 }
 0x190   : > { %1966 = vxpose.xlu0.b32.end [16/16] %v1547_v24, 128  ;;  %v450_v24 = vld [vmem:[%s7766_s2 + $0x220] sm:$0xff] }
 0x191   : > { %v5397_v26 = vpop.f32.mrb[32].mxu0  ;;  %1998 = vxpose.xlu1.b32.end [16/16] %v1549_v25, 128  ;;  %v409_v25 = vld [vmem:[%s7766_s2 + $0xd8] sm:$0xff] }
 0x192   : > { %7859 = vst [vmem:[#allocation8_spill] sm:$0xff] %v5397_v26  ;;  %v5399_v27 = vpop.f32.mrb[33].mxu0 }
 0x193   : > { %7860 = vst [vmem:[#allocation9_spill] sm:$0xff] %v5399_v27  ;;  %v5401_v28 = vpop.f32.mrb[34].mxu0 }
 0x194   : > { %7861 = vst [vmem:[#allocation10_spill] sm:$0xff] %v5401_v28  ;;  %v5403_v29 = vpop.f32.mrb[35].mxu0 }
 0x195   : > { %7862 = vst [vmem:[#allocation11_spill] sm:$0xff] %v5403_v29 }
 0x199   : > { %v5405_v30 = vpop.f32.mrb[36].mxu0 }
 0x19a   : > { %7863 = vst [vmem:[#allocation12_spill] sm:$0xff] %v5405_v30  ;;  %v5407_v31 = vpop.f32.mrb[37].mxu0 }
 0x19b   : > { %7864 = vst [vmem:[#allocation13_spill] sm:$0xff] %v5407_v31  ;;  %v5409_v32 = vpop.f32.mrb[38].mxu0 }
 0x19c   : > { %7865 = vst [vmem:[#allocation14_spill] sm:$0xff] %v5409_v32  ;;  %v5411_v33 = vpop.f32.mrb[39].mxu0 }
 0x19d   : > { %7866 = vst [vmem:[#allocation15_spill] sm:$0xff] %v5411_v33 }
 0x1a1   : > { %v5413_v34 = vpop.f32.mrb[40].mxu0 }
 0x1a2   : > { %7867 = vst [vmem:[#allocation16_spill] sm:$0xff] %v5413_v34  ;;  %v5415_v35 = vpop.f32.mrb[41].mxu0 }
 0x1a3   : > { %7868 = vst [vmem:[#allocation17_spill] sm:$0xff] %v5415_v35  ;;  %v5417_v36 = vpop.f32.mrb[42].mxu0 }
 0x1a4   : > { %7869 = vst [vmem:[#allocation18_spill] sm:$0xff] %v5417_v36  ;;  %v5419_v37 = vpop.f32.mrb[43].mxu0 }
 0x1a5   : > { %7870 = vst [vmem:[#allocation19_spill] sm:$0xff] %v5419_v37 }
 0x1a9   : > { %v5425_v41 = vpop.f32.mrb[44].mxu0 }
 0x1aa   : > { %7871 = vst [vmem:[#allocation20_spill] sm:$0xff] %v5425_v41  ;;  %v5427_v42 = vpop.f32.mrb[45].mxu0 }
 0x1ab   : > { %7872 = vst [vmem:[#allocation21_spill] sm:$0xff] %v5427_v42  ;;  %v5429_v43 = vpop.f32.mrb[46].mxu0 }
 0x1ac   : > { %7873 = vst [vmem:[#allocation22_spill] sm:$0xff] %v5429_v43  ;;  %v5431_v44 = vpop.f32.mrb[47].mxu0 }
 0x1ad   : > { %7874 = vst [vmem:[#allocation23_spill] sm:$0xff] %v5431_v44 }
 0x1af   : > { %560 = vperm.xlu1 %4190, %v398_v45   ;;  %v5540_v45 = vpop.permute.xlu1 %715 }
 0x1b1   : > { %v5443_v49 = vpop.f32.mrb[48].mxu0 }
 0x1b2   : > { %7875 = vst [vmem:[#allocation24_spill] sm:$0xff] %v5443_v49  ;;  %v5445_v50 = vpop.f32.mrb[49].mxu0 }
 0x1b3   : > { %7876 = vst [vmem:[#allocation25_spill] sm:$0xff] %v5445_v50  ;;  %v5449_v52 = vpop.f32.mrb[50].mxu0  ;;  %800 = vperm.xlu1 %4190, %v446_v48  }
 0x1b4   : > { %v5451_v53 = vpop.f32.mrb[51].mxu0 }
 0x1b7   : > { %805 = vperm.xlu1 %4190, %v447_v54  }
 0x1b9   : > { %v5466_v59 = vpop.f32.mrb[52].mxu0  ;;  %565 = vperm.xlu0 %4189, %v399_v56   ;;  %v408_v56 = vld [vmem:[%s7766_s2 + $0xd0] sm:$0xff] }
 0x1ba   : > { %v5468_v60 = vpop.f32.mrb[53].mxu0 }
 0x1bb   : > { %v5475_v63 = vpop.f32.mrb[54].mxu0  ;;  %575 = vperm.xlu1 %4190, %v401_v57   ;;  %v5545_v57 = vpop.permute.xlu0 %710 }
 0x1bc   : > { %7877 = vst [vmem:[#allocation26_spill] sm:$0xff] %v5475_v63  ;;  %v5477_v0 = vpop.f32.mrb[55].mxu0 }
 0x1bd   : > { %7878 = vst [vmem:[#allocation27_spill] sm:$0xff] %v5477_v0  ;;  %570 = vperm.xlu0 %4189, %v400_v61  }
 0x1bf   : > { %585 = vperm.xlu1 %4190, %v403_v1  }
 0x1c1   : > { %v5492_v6 = vpop.f32.mrb[56].mxu0  ;;  %580 = vperm.xlu0 %4189, %v402_v2  }
 0x1c2   : > { %7879 = vst [vmem:[#allocation28_spill] sm:$0xff] %v5492_v6  ;;  %v5494_v7 = vpop.f32.mrb[57].mxu0 }
 0x1c3   : > { %7880 = vst [vmem:[#allocation29_spill] sm:$0xff] %v5494_v7  ;;  %v5499_v9 = vpop.f32.mrb[58].mxu0  ;;  %815 = vperm.xlu1 %4190, %v449_v4  }
 0x1c4   : > { %7881 = vst [vmem:[#allocation30_spill] sm:$0xff] %v5499_v9  ;;  %v5501_v10 = vpop.f32.mrb[59].mxu0 }
 0x1c5   : > { %7882 = vst [vmem:[#allocation31_spill] sm:$0xff] %v5501_v10  ;;  %810 = vperm.xlu0 %4189, %v448_v8  }
 0x1c7   : > { %595 = vperm.xlu1 %4190, %v405_v11  }
 0x1c9   : > { %v5516_v16 = vpop.f32.mrb[60].mxu0  ;;  %590 = vperm.xlu0 %4189, %v404_v13  }
 0x1ca   : > { %7883 = vst [vmem:[#allocation32_spill] sm:$0xff] %v5516_v16  ;;  %v5518_v17 = vpop.f32.mrb[61].mxu0 }
 0x1cb   : > { %7884 = vst [vmem:[#allocation33_spill] sm:$0xff] %v5518_v17  ;;  %v5525_v20 = vpop.f32.mrb[62].mxu0  ;;  %605 = vperm.xlu1 %4190, %v407_v15   ;;  %v410_v15 = vld [vmem:[%s7766_s2 + $0xe0] sm:$0xff] }
 0x1cc   : > { %7885 = vst [vmem:[#allocation34_spill] sm:$0xff] %v5525_v20  ;;  %v5527_v21 = vpop.f32.mrb[63].mxu0 }
 0x1cd   : > { %7886 = vst [vmem:[#allocation35_spill] sm:$0xff] %v5527_v21  ;;  %600 = vperm.xlu0 %4189, %v406_v18  }
 0x1cf   : > { %825 = vperm.xlu1 %4190, %v451_v22  }
 0x1d1   : > { %v1632_v48 = vpop.f32.mrb[64].mxu0  ;;  %820 = vperm.xlu0 %4189, %v450_v24  }
 0x1d2   : > { %v1634_v54 = vpop.f32.mrb[65].mxu0  ;;  %v1633_v1 = vadd.f32 %v1632_v48, %v5423_v39 }
 0x1d3   : > { %v1636_v61 = vpop.f32.mrb[66].mxu0  ;;  %615 = vperm.xlu1 %4190, %v409_v25   ;;  %v1635_v8 = vadd.f32 %v1634_v54, %v5423_v39 }
 0x1d4   : > { %v1637_v2 = vadd.f32 %v1636_v61, %v5421_v38  ;;  %v1638_v4 = vpop.f32.mrb[67].mxu0  ;;  %v5556_v24 = vpop.trf.xlu0 }
 0x1d5   : > { %v1639_v11 = vadd.f32 %v1638_v4, %v5421_v38  ;;  %610 = vperm.xlu0 %4189, %v408_v56   ;;  %v5551_v13 = vpop.trf.xlu1 }
 0x1d6   : > { %v2111_v18 = vpack.c.bf16 %v1637_v2, %v1633_v1 }
 0x1d7   : > { %v2112_v22 = vpack.c.bf16 %v1639_v11, %v1635_v8 }
 0x1d8   : > { %v5566_v8 = vpop.trf.xlu0 }
 0x1d9   : > { %v1642_v25 = vpop.f32.mrb[68].mxu0  ;;  %2175 = vmatprep.subr.bf16.mxu1 %v2112_v22  ;;  %620 = vperm.xlu0 %4189, %v410_v15   ;;  %v5558_v48 = vpop.trf.xlu1 }
 0x1da   : > { %v1644_v61 = vpop.f32.mrb[69].mxu0  ;;  %2176 = vmatpush1.bf16.msra.mxu1 %v2111_v18  ;;  %v1643_v38 = vadd.f32 %v1642_v25, %v5438_v47 }
 0x1db   : > { %v1646_v39 = vpop.f32.mrb[70].mxu0  ;;  %v1645_v4 = vadd.f32 %v1644_v61, %v5438_v47 }
 0x1dc   : > { %v1647_v54 = vadd.f32 %v1646_v39, %v5436_v46  ;;  %v1648_v56 = vpop.f32.mrb[71].mxu0  ;;  %v5570_v20 = vpop.trf.xlu0 }
 0x1dd   : > { %v1649_v1 = vadd.f32 %v1648_v56, %v5436_v46  ;;  %v5564_v2 = vpop.trf.xlu1 }
 0x1de   : > { %v2113_v11 = vpack.c.bf16 %v1647_v54, %v1643_v38 }
 0x1df   : > { %v2114_v15 = vpack.c.bf16 %v1649_v1, %v1645_v4 }
 0x1e1   : > { %v1652_v22 = vpop.f32.mrb[72].mxu0  ;;  %2177 = vmatprep.subr.bf16.mxu1 %v2114_v15  ;;  %v5568_v40 = vpop.trf.xlu1 }
 0x1e2   : > { %v1654_v18 = vpop.f32.mrb[73].mxu0  ;;  %2178 = vmatpush1.bf16.msra.mxu1 %v2113_v11  ;;  %v1653_v39 = vadd.f32 %v1652_v22, %v5456_v55  ;;  %v5578_v15 = vpop.trf.xlu0 }
 0x1e3   : > { %v1656_v25 = vpop.f32.mrb[74].mxu0  ;;  %v1655_v61 = vadd.f32 %v1654_v18, %v5456_v55 }
 0x1e4   : > { %v1657_v47 = vadd.f32 %v1656_v25, %v5447_v51  ;;  %v1658_v46 = vpop.f32.mrb[75].mxu0 }
 0x1e5   : > { %v1659_v56 = vadd.f32 %v1658_v46, %v5447_v51  ;;  %v5576_v54 = vpop.trf.xlu1 }
 0x1e6   : > { %v2115_v38 = vpack.c.bf16 %v1657_v47, %v1653_v39  ;;  %v5586_v47 = vpop.trf.xlu0 }
 0x1e7   : > { %v2116_v4 = vpack.c.bf16 %v1659_v56, %v1655_v61 }
 0x1e9   : > { %v1662_v1 = vpop.f32.mrb[76].mxu0  ;;  %2179 = vmatprep.subr.bf16.mxu1 %v2116_v4  ;;  %v5582_v6 = vpop.trf.xlu1 }
 0x1ea   : > { %v1664_v11 = vpop.f32.mrb[77].mxu0  ;;  %2180 = vmatpush1.bf16.msra.mxu1 %v2115_v38  ;;  %v1663_v22 = vadd.f32 %v1662_v1, %v5473_v62 }
 0x1eb   : > { %v1666_v16 = vpop.f32.mrb[78].mxu0  ;;  %v1665_v51 = vadd.f32 %v1664_v11, %v5473_v62 }
 0x1ec   : > { %v1667_v25 = vadd.f32 %v1666_v16, %v5464_v58  ;;  %v1668_v9 = vpop.f32.mrb[79].mxu0 }
 0x1ed   : > { %v1669_v55 = vadd.f32 %v1668_v9, %v5464_v58  ;;  %v5588_v56 = vpop.trf.xlu1  ;;  %v5594_v9 = vpop.trf.xlu0 }
 0x1ee   : > { %v2117_v18 = vpack.c.bf16 %v1667_v25, %v1663_v22 }
 0x1ef   : > { %v2118_v39 = vpack.c.bf16 %v1669_v55, %v1665_v51 }
 0x1f1   : > { %v1672_v46 = vpop.f32.mrb[80].mxu0  ;;  %2181 = vmatprep.subr.bf16.mxu1 %v2118_v39  ;;  %v5596_v25 = vpop.trf.xlu1 }
 0x1f2   : > { %v1674_v61 = vpop.f32.mrb[81].mxu0  ;;  %2182 = vmatpush1.bf16.msra.mxu1 %v2117_v18  ;;  %v1673_v16 = vadd.f32 %v1672_v46, %v5490_v5  ;;  %v5598_v39 = vpop.trf.xlu0 }
 0x1f3   : > { %v1676_v38 = vpop.f32.mrb[82].mxu0  ;;  %v1675_v62 = vadd.f32 %v1674_v61, %v5490_v5 }
 0x1f4   : > { %v1677_v4 = vadd.f32 %v1676_v38, %v5485_v3  ;;  %v1678_v1 = vpop.f32.mrb[83].mxu0 }
 0x1f5   : > { %v1679_v58 = vadd.f32 %v1678_v1, %v5485_v3 }
 0x1f6   : > { %v2119_v11 = vpack.c.bf16 %v1677_v4, %v1673_v16  ;;  %v5604_v4 = vpop.trf.xlu1 }
 0x1f7   : > { %v2120_v22 = vpack.c.bf16 %v1679_v58, %v1675_v62  ;;  %v5606_v58 = vpop.trf.xlu0 }
 0x1f8   : > { %v2085_v41 = vpack.c.bf16 %v5606_v58, %v5598_v39 }
 0x1f9   : > { %v1682_v51 = vpop.f32.mrb[84].mxu0  ;;  %2183 = vmatprep.subr.bf16.mxu1 %v2120_v22 }
 0x1fa   : > { %v1684_v55 = vpop.f32.mrb[85].mxu0  ;;  %2184 = vmatpush1.bf16.msra.mxu1 %v2119_v11  ;;  %v1683_v46 = vadd.f32 %v1682_v51, %v5511_v14  ;;  %v5610_v49 = vpop.trf.xlu1 }
 0x1fb   : > { %v1686_v18 = vpop.f32.mrb[86].mxu0  ;;  %v1685_v3 = vadd.f32 %v1684_v55, %v5511_v14 }
 0x1fc   : > { %v1687_v38 = vadd.f32 %v1686_v18, %v5506_v12  ;;  %v1688_v5 = vpop.f32.mrb[87].mxu0 }
 0x1fd   : > { %v1689_v61 = vadd.f32 %v1688_v5, %v5506_v12 }
 0x1fe   : > { %v2121_v16 = vpack.c.bf16 %v1687_v38, %v1683_v46  ;;  %v5614_v38 = vpop.trf.xlu0 }
 0x1ff   : > { %v2122_v1 = vpack.c.bf16 %v1689_v61, %v1685_v3  ;;  %v5616_v61 = vpop.trf.xlu1 }
 0x201   : > { %v1692_v62 = vpop.f32.mrb[88].mxu0  ;;  %2185 = vmatprep.subr.bf16.mxu1 %v2122_v1 }
 0x202   : > { %v1694_v11 = vpop.f32.mrb[89].mxu0  ;;  %2186 = vmatpush1.bf16.msra.mxu1 %v2121_v16  ;;  %v1693_v51 = vadd.f32 %v1692_v62, %v5532_v23 }
 0x203   : > { %v1696_v22 = vpop.f32.mrb[90].mxu0  ;;  %v1695_v12 = vadd.f32 %v1694_v11, %v5532_v23 }
 0x204   : > { %v1697_v18 = vadd.f32 %v1696_v22, %v5523_v19  ;;  %v1698_v63 = vpop.f32.mrb[91].mxu0 }
 0x205   : > { %v1699_v14 = vadd.f32 %v1698_v63, %v5523_v19  ;;  %v1976_v19 = vpop.trf.xlu0 }
 0x206   : > { %v2123_v55 = vpack.c.bf16 %v1697_v18, %v1693_v51  ;;  %v5622_v18 = vpop.trf.xlu1 }
 0x207   : > { %v2124_v46 = vpack.c.bf16 %v1699_v14, %v1695_v12 }
 0x209   : > { %v1702_v5 = vpop.f32.mrb[92].mxu0  ;;  %2187 = vmatprep.subr.bf16.mxu1 %v2124_v46  ;;  %v1977_v46 = vpop.trf.xlu0 }
 0x20a   : > { %v1704_v3 = vpop.f32.mrb[93].mxu0  ;;  %2188 = vmatpush1.bf16.msra.mxu1 %v2123_v55  ;;  %v1703_v1 = vadd.f32 %v1702_v5, %v5545_v57  ;;  %v2079_v55 = vpack.c.bf16 %v5566_v8, %v5556_v24 }
 0x20b   : > { %v1706_v16 = vpop.f32.mrb[94].mxu0  ;;  %v1705_v23 = vadd.f32 %v1704_v3, %v5545_v57  ;;  %v5635_v3 = vpop.trf.xlu1 }
 0x20c   : > { %v1707_v62 = vadd.f32 %v1706_v16, %v5540_v45  ;;  %v1708_v22 = vpop.f32.mrb[95].mxu0 }
 0x20d   : > { %v1709_v63 = vadd.f32 %v1708_v22, %v5540_v45  ;;  %v7891_v45 = vmov 0   ;;  %v1978_v16 = vpop.trf.xlu0  ;;  %v2081_v22 = vpack.c.bf16 %v5578_v15, %v5570_v20 }
 0x20e   : > { %v2125_v11 = vpack.c.bf16 %v1707_v62, %v1703_v1 }
 0x20f   : > { %v2126_v51 = vpack.c.bf16 %v1709_v63, %v1705_v23  ;;  %v5645_v24 = vpop.trf.xlu1 }
 0x211   : > { %2189 = vmatprep.subr.bf16.mxu1 %v2126_v51  ;;  %v5624_v12 = vpop.f32.mrb[96].mxu0  ;;  %v1979_v63 = vpop.trf.xlu0 }
 0x212   : > { %7887 = vst [vmem:[#allocation36_spill] sm:$0xff] %v5624_v12  ;;  %2190 = vmatpush1.bf16.msra.mxu1 %v2125_v11  ;;  %v5626_v14 = vpop.f32.mrb[97].mxu0  ;;  %v2083_v11 = vpack.c.bf16 %v5594_v9, %v5586_v47 }
 0x213   : > { %7888 = vst [vmem:[#allocation37_spill] sm:$0xff] %v5626_v14  ;;  %v5630_v5 = vpop.f32.mrb[98].mxu0 }
 0x214   : > { %7889 = vst [vmem:[#allocation38_spill] sm:$0xff] %v5630_v5  ;;  %v5632_v57 = vpop.f32.mrb[99].mxu0 }
 0x215   : > { %7890 = vst [vmem:[#allocation39_spill] sm:$0xff] %v5632_v57  ;;  %2208 = vmatmul.mubr.bf16.vlgmr.msra.gmra.mrb[0].mxu1 %v2079_v55  ;;  %v5654_v55 = vpop.trf.xlu1  ;;  %v1980_v21 = vpop.trf.xlu0 }
 0x216   : > { %2217 = vmatprep.mubr.bf16.mxu1 %v7891_v45 }
 0x219   : > { %v5637_v1 = vpop.f32.mrb[100].mxu0 }
 0x21a   : > { %7892 = vst [vmem:[#allocation40_spill] sm:$0xff] %v5637_v1  ;;  %v5639_v62 = vpop.f32.mrb[101].mxu0 }
 0x21b   : > { %7893 = vst [vmem:[#allocation41_spill] sm:$0xff] %v5639_v62  ;;  %v5643_v23 = vpop.f32.mrb[102].mxu0 }
 0x21c   : > { %7894 = vst [vmem:[#allocation42_spill] sm:$0xff] %v5643_v23  ;;  %v5647_v8 = vpop.f32.mrb[103].mxu0 }
 0x21d   : > { %7895 = vst [vmem:[#allocation43_spill] sm:$0xff] %v5647_v8  ;;  %2218 = vmatmul.mubr.bf16.gmra.mrb[4].mxu1 %v2081_v22  ;;  %v5663_v22 = vpop.trf.xlu1 }
 0x21e   : > { %2227 = vmatprep.mubr.bf16.mxu1 %v7891_v45 }
 0x221   : > { %v5652_v51 = vpop.f32.mrb[104].mxu0 }
 0x222   : > { %7896 = vst [vmem:[#allocation44_spill] sm:$0xff] %v5652_v51  ;;  %v5656_v43 = vpop.f32.mrb[105].mxu0  ;;  %v1981_v51 = vpop.trf.xlu0 }
 0x223   : > { %7897 = vst [vmem:[#allocation45_spill] sm:$0xff] %v5656_v43  ;;  %v5658_v20 = vpop.f32.mrb[106].mxu0 }
 0x224   : > { %7898 = vst [vmem:[#allocation46_spill] sm:$0xff] %v5658_v20  ;;  %v5660_v15 = vpop.f32.mrb[107].mxu0 }
 0x225   : > { %7899 = vst [vmem:[#allocation47_spill] sm:$0xff] %v5660_v15  ;;  %2228 = vmatmul.mubr.bf16.gmra.mrb[8].mxu1 %v2083_v11  ;;  %v2087_v11 = vpack.c.bf16 %v1976_v19, %v5614_v38 }
 0x226   : > { %2237 = vmatprep.mubr.bf16.mxu1 %v7891_v45  ;;  %v1982_v20 = vpop.trf.xlu0 }
 0x227   : > { %v2093_v1 = vpack.c.bf16 %v1982_v20, %v1981_v51  ;;  %v2095_v20 = vpack.c.bf16 %v5558_v48, %v5551_v13 }
 0x229   : > { %v5667_v47 = vpop.f32.mrb[108].mxu0 }
 0x22a   : > { %7900 = vst [vmem:[#allocation48_spill] sm:$0xff] %v5667_v47  ;;  %v5669_v9 = vpop.f32.mrb[109].mxu0 }
 0x22b   : > { %7901 = vst [vmem:[#allocation49_spill] sm:$0xff] %v5669_v9  ;;  %v5671_v17 = vpop.f32.mrb[110].mxu0 }
 0x22c   : > { %7902 = vst [vmem:[#allocation50_spill] sm:$0xff] %v5671_v17  ;;  %v5673_v43 = vpop.f32.mrb[111].mxu0 }
 0x22d   : > { %7903 = vst [vmem:[#allocation51_spill] sm:$0xff] %v5673_v43  ;;  %2238 = vmatmul.mubr.bf16.gmra.mrb[12].mxu1 %v2085_v41  ;;  %v2089_v43 = vpack.c.bf16 %v1978_v16, %v1977_v46  ;;  %v2091_v46 = vpack.c.bf16 %v1980_v21, %v1979_v63 }
 0x22e   : > { %v5675_v15 = vpop.permute.xlu1 %560  ;;  %2247 = vmatprep.mubr.bf16.mxu1 %v7891_v45 }
 0x22f   : > { %7904 = vst [vmem:[#allocation52_spill] sm:$0xff] %v5675_v15 }
 0x231   : > { %v5679_v36 = vpop.f32.mrb[112].mxu0 }
 0x232   : > { %7905 = vst [vmem:[#allocation53_spill] sm:$0xff] %v5679_v36  ;;  %v801_v39 = vpop.permute.xlu1 %800  ;;  %v5681_v58 = vpop.f32.mrb[113].mxu0 }
 0x233   : > { %7906 = vst [vmem:[#allocation54_spill] sm:$0xff] %v5681_v58  ;;  %v5683_v47 = vpop.f32.mrb[114].mxu0 }
 0x234   : > { %7907 = vst [vmem:[#allocation55_spill] sm:$0xff] %v5683_v47  ;;  %v5685_v9 = vpop.f32.mrb[115].mxu0 }
 0x235   : > { %7908 = vst [vmem:[#allocation56_spill] sm:$0xff] %v5685_v9  ;;  %2248 = vmatmul.mubr.bf16.gmra.mrb[16].mxu1 %v2087_v11 }
 0x236   : > { %v806_v17 = vpop.permute.xlu1 %805  ;;  %2257 = vmatprep.mubr.bf16.mxu1 %v7891_v45 }
 0x238   : > { %v5688_v41 = vpop.permute.xlu0 %565 }
 0x239   : > { %7909 = vst [vmem:[#allocation57_spill] sm:$0xff] %v5688_v41  ;;  %v5690_v8 = vpop.f32.mrb[116].mxu0 }
 0x23a   : > { %7910 = vst [vmem:[#allocation58_spill] sm:$0xff] %v5690_v8  ;;  %v5692_v38 = vpop.permute.xlu1 %575  ;;  %v5694_v19 = vpop.f32.mrb[117].mxu0 }
 0x23b   : > { %7911 = vst [vmem:[#allocation59_spill] sm:$0xff] %v5692_v38  ;;  %7912 = vst [vmem:[#allocation60_spill] sm:$0xff] %v5694_v19  ;;  %v5696_v36 = vpop.f32.mrb[118].mxu0 }
 0x23c   : > { %7913 = vst [vmem:[#allocation61_spill] sm:$0xff] %v5696_v36  ;;  %v5698_v58 = vpop.permute.xlu0 %570  ;;  %v5700_v47 = vpop.f32.mrb[119].mxu0 }
 0x23d   : > { %7914 = vst [vmem:[#allocation62_spill] sm:$0xff] %v5698_v58  ;;  %7915 = vst [vmem:[#allocation63_spill] sm:$0xff] %v5700_v47  ;;  %2258 = vmatmul.mubr.bf16.gmra.mrb[20].mxu1 %v2089_v43 }
 0x23e   : > { %v5702_v11 = vpop.permute.xlu1 %585  ;;  %2267 = vmatprep.mubr.bf16.mxu1 %v7891_v45 }
 0x23f   : > { %7916 = vst [vmem:[#allocation64_spill] sm:$0xff] %v5702_v11 }
 0x240   : > { %v5705_v9 = vpop.permute.xlu0 %580 }
 0x241   : > { %7917 = vst [vmem:[#allocation65_spill] sm:$0xff] %v5705_v9  ;;  %v5707_v16 = vpop.f32.mrb[120].mxu0 }
 0x242   : > { %7918 = vst [vmem:[#allocation66_spill] sm:$0xff] %v5707_v16  ;;  %v816_v8 = vpop.permute.xlu1 %815  ;;  %v5709_v23 = vpop.f32.mrb[121].mxu0 }
 0x243   : > { %7919 = vst [vmem:[#allocation67_spill] sm:$0xff] %v5709_v23  ;;  %v5711_v19 = vpop.f32.mrb[122].mxu0 }
 0x244   : > { %7920 = vst [vmem:[#allocation68_spill] sm:$0xff] %v5711_v19  ;;  %v811_v36 = vpop.permute.xlu0 %810  ;;  %v5713_v62 = vpop.f32.mrb[123].mxu0 }
 0x245   : > { %7921 = vst [vmem:[#allocation69_spill] sm:$0xff] %v5713_v62  ;;  %2268 = vmatmul.mubr.bf16.gmra.mrb[24].mxu1 %v2091_v46 }
 0x246   : > { %v5715_v47 = vpop.permute.xlu1 %595  ;;  %2277 = vmatprep.mubr.bf16.mxu1 %v7891_v45 }
 0x247   : > { %7922 = vst [vmem:[#allocation70_spill] sm:$0xff] %v5715_v47 }
 0x248   : > { %v5718_v43 = vpop.permute.xlu0 %590 }
 0x249   : > { %7923 = vst [vmem:[#allocation71_spill] sm:$0xff] %v5718_v43  ;;  %v5720_v10 = vpop.f32.mrb[124].mxu0 }
 0x24a   : > { %7924 = vst [vmem:[#allocation72_spill] sm:$0xff] %v5720_v10  ;;  %v606_v21 = vpop.permute.xlu1 %605  ;;  %v5722_v63 = vpop.f32.mrb[125].mxu0 }
 0x24b   : > { %7925 = vst [vmem:[#allocation73_spill] sm:$0xff] %v5722_v63  ;;  %v5725_v23 = vadd.f32 %v5449_v52, %v606_v21  ;;  %v5728_v19 = vadd.f32 %v5451_v53, %v606_v21  ;;  %v5730_v62 = vpop.f32.mrb[126].mxu0 }
 0x24c   : > { %7928 = vst [vmem:[#allocation76_spill] sm:$0xff] %v5730_v62  ;;  %v5732_v46 = vpop.permute.xlu0 %600  ;;  %v5734_v16 = vpop.f32.mrb[127].mxu0 }
 0x24d   : > { %7926 = vst [vmem:[#allocation74_spill] sm:$0xff] %v5725_v23  ;;  %7927 = vst [vmem:[#allocation75_spill] sm:$0xff] %v5728_v19  ;;  %2278 = vmatmul.mubr.bf16.gmra.mrb[28].mxu1 %v2093_v1 }
 0x24e   : > { %7929 = vst [vmem:[#allocation77_spill] sm:$0xff] %v5732_v46  ;;  %7930 = vst [vmem:[#allocation78_spill] sm:$0xff] %v5734_v16  ;;  %2287 = vmatprep.mubr.bf16.mxu1 %v7891_v45 }
 0x250   : > { %v821_v51 = vpop.permute.xlu0 %820 }
 0x251   : > { %v1792_v63 = vpop.f32.mrb[128].mxu0 }
 0x252   : > { %v1794_v10 = vpop.f32.mrb[129].mxu0  ;;  %v5739_v23 = vadd.f32 %v1792_v63, %v801_v39  ;;  %v2097_v63 = vpack.c.bf16 %v5568_v40, %v5564_v2 }
 0x253   : > { %v1796_v52 = vpop.f32.mrb[130].mxu0  ;;  %v1795_v34 = vadd.f32 %v1794_v10, %v801_v39 }
 0x254   : > { %7931 = vst [vmem:[#allocation79_spill] sm:$0xff] %v5739_v23  ;;  %v5741_v53 = vadd.f32 %v1796_v52, %v806_v17  ;;  %v1798_v21 = vpop.f32.mrb[131].mxu0  ;;  %v611_v62 = vpop.permute.xlu0 %610 }
 0x255   : > { %v1799_v57 = vadd.f32 %v1798_v21, %v806_v17  ;;  %v5744_v16 = vadd.f32 %v5466_v59, %v611_v62  ;;  %v5747_v1 = vadd.f32 %v5468_v60, %v611_v62  ;;  %2288 = vmatmul.mubr.bf16.gmra.mrb[32].mxu1 %v2095_v20  ;;  %v826_v21 = vpop.permute.xlu1 %825 }
 0x256   : > { %7932 = vst [vmem:[#allocation80_spill] sm:$0xff] %v5741_v53  ;;  %2297 = vmatprep.mubr.bf16.mxu1 %v7891_v45 }
 0x257   : > { %7933 = vst [vmem:[#allocation81_spill] sm:$0xff] %v5744_v16  ;;  %7934 = vst [vmem:[#allocation82_spill] sm:$0xff] %v5747_v1  ;;  %v2144_v48 = vpack.c.bf16 %v1799_v57, %v1795_v34  ;;  %v2099_v34 = vpack.c.bf16 %v5582_v6, %v5576_v54  ;;  %v2101_v54 = vpack.c.bf16 %v5596_v25, %v5588_v56  ;;  %v4298_v25 = vld [vmem:[%s7765_s1 + $0x230] ss:$8 sps:$4 sm:$0xff]  }
 0x258   : > { %v2109_v56 = vpack.c.bf16 %v5663_v22, %v5654_v55 }
 0x259   : > { %v1802_v52 = vpop.f32.mrb[132].mxu0 }
 0x25a   : > { %v1804_v5 = vpop.f32.mrb[133].mxu0  ;;  %v5754_v17 = vadd.f32 %v1802_v52, %v811_v36 }
 0x25b   : > { %v1806_v10 = vpop.f32.mrb[134].mxu0  ;;  %v5758_v60 = vadd.f32 %v1804_v5, %v811_v36 }
 0x25c   : > { %7935 = vst [vmem:[#allocation83_spill] sm:$0xff] %v5754_v17  ;;  %v5756_v59 = vadd.f32 %v1806_v10, %v816_v8  ;;  %v1808_v39 = vpop.f32.mrb[135].mxu0 }
 0x25d   : > { %7937 = vst [vmem:[#allocation85_spill] sm:$0xff] %v5758_v60  ;;  %v5760_v62 = vadd.f32 %v1808_v39, %v816_v8  ;;  %2298 = vmatmul.mubr.bf16.gmra.mrb[36].mxu1 %v2097_v63 }
 0x25e   : > { %7936 = vst [vmem:[#allocation84_spill] sm:$0xff] %v5756_v59  ;;  %2307 = vmatprep.mubr.bf16.mxu1 %v7891_v45 }
 0x25f   : > { %7938 = vst [vmem:[#allocation86_spill] sm:$0xff] %v5760_v62 }
 0x261   : > { %v1812_v2 = vpop.f32.mrb[136].mxu0 }
 0x262   : > { %v1814_v57 = vpop.f32.mrb[137].mxu0  ;;  %v5769_v36 = vadd.f32 %v1812_v2, %v821_v51  ;;  %v2107_v2 = vpack.c.bf16 %v5645_v24, %v5635_v3 }
 0x263   : > { %v1816_v52 = vpop.f32.mrb[138].mxu0  ;;  %v5773_v63 = vadd.f32 %v1814_v57, %v821_v51  ;;  %v2103_v51 = vpack.c.bf16 %v5610_v49, %v5604_v4  ;;  %v4296_v49 = vld [vmem:[%s7765_s1 + $0x234] ss:$8 sps:$4 sm:$0xff]  }
 0x264   : > { %7939 = vst [vmem:[#allocation87_spill] sm:$0xff] %v5769_v36  ;;  %v5771_v5 = vadd.f32 %v1816_v52, %v826_v21  ;;  %v1818_v8 = vpop.f32.mrb[139].mxu0  ;;  %1820 = vmatprep.mubr.bf16.mxu0 %v4296_v49 }
 0x265   : > { %7941 = vst [vmem:[#allocation89_spill] sm:$0xff] %v5773_v63  ;;  %v5775_v10 = vadd.f32 %v1818_v8, %v826_v21  ;;  %2308 = vmatmul.mubr.bf16.gmra.mrb[40].mxu1 %v2099_v34  ;;  %v2105_v34 = vpack.c.bf16 %v5622_v18, %v5616_v61  ;;  %1821 = vmatmul.mubr.bf16.gmra.mrb[140].mxu0 %v4298_v25 }
 0x266   : > { %7940 = vst [vmem:[#allocation88_spill] sm:$0xff] %v5771_v5  ;;  %2317 = vmatprep.mubr.bf16.mxu1 %v7891_v45 }
 0x267   : > { %7942 = vst [vmem:[#allocation90_spill] sm:$0xff] %v5775_v10 }
 0x26d   : > { %2318 = vmatmul.mubr.bf16.gmra.mrb[44].mxu1 %v2101_v54 }
 0x26e   : > { %2327 = vmatprep.mubr.bf16.mxu1 %v7891_v45 }
 0x275   : > { %2328 = vmatmul.mubr.bf16.gmra.mrb[48].mxu1 %v2103_v51 }
 0x276   : > { %2337 = vmatprep.mubr.bf16.mxu1 %v7891_v45 }
 0x27d   : > { %2338 = vmatmul.mubr.bf16.gmra.mrb[52].mxu1 %v2105_v34 }
 0x27e   : > { %2347 = vmatprep.mubr.bf16.mxu1 %v7891_v45 }
 0x285   : > { %2348 = vmatmul.mubr.bf16.gmra.mrb[56].mxu1 %v2107_v2 }
 0x286   : > { %2357 = vmatprep.mubr.bf16.mxu1 %v7891_v45 }
 0x28d   : > { %2358 = vmatmul.mubr.bf16.gmra.mrb[60].mxu1 %v2109_v56 }
 0x28e   : > { %2912 = vmatprep.mubr.bf16.mxu1 %v2144_v48 }
 0x2e8   : > { %v5802_v4 = vpop.f32.mrb[0].mxu1 }
 0x2e9   : > { %v5804_v61 = vpop.f32.mrb[1].mxu1 }
 0x2ea   : > { %v5806_v18 = vpop.f32.mrb[2].mxu1  ;;  %v2368_v3 = vmax.f32 %v5802_v4, %v5804_v61 }
 0x2eb   : > { %v5810_v24 = vpop.f32.mrb[3].mxu1 }
 0x2ec   : > { %2369 = vmax.xlane.f32.xlu0 %v2368_v3  ;;  %v2371_v55 = vmax.f32 %v5806_v18, %v5810_v24 }
 0x2ee   : > { %2372 = vmax.xlane.f32.xlu1 %v2371_v55 }
 0x2f0   : > { %v5814_v22 = vpop.f32.mrb[4].mxu1 }
 0x2f1   : > { %v5816_v48 = vpop.f32.mrb[5].mxu1 }
 0x2f2   : > { %v5818_v57 = vpop.f32.mrb[6].mxu1  ;;  %v2374_v21 = vmax.f32 %v5814_v22, %v5816_v48 }
 0x2f3   : > { %v5822_v52 = vpop.f32.mrb[7].mxu1 }
 0x2f4   : > { %2375 = vmax.xlane.f32.xlu0 %v2374_v21  ;;  %v2377_v8 = vmax.f32 %v5818_v57, %v5822_v52 }
 0x2f8   : > { %2378 = vmax.xlane.f32.xlu0 %v2377_v8  ;;  %v5826_v54 = vpop.f32.mrb[8].mxu1 }
 0x2f9   : > { %v5828_v51 = vpop.f32.mrb[9].mxu1 }
 0x2fa   : > { %v5830_v34 = vpop.f32.mrb[10].mxu1  ;;  %v2380_v2 = vmax.f32 %v5826_v54, %v5828_v51 }
 0x2fb   : > { %v5834_v56 = vpop.f32.mrb[11].mxu1 }
 0x2fc   : > { %2381 = vmax.xlane.f32.xlu1 %v2380_v2  ;;  %v2383_v49 = vmax.f32 %v5830_v34, %v5834_v56 }
 0x2fe   : > { %2384 = vmax.xlane.f32.xlu0 %v2383_v49 }
 0x300   : > { %v5838_v25 = vpop.f32.mrb[12].mxu1 }
 0x301   : > { %v5840_v3 = vpop.f32.mrb[13].mxu1 }
 0x302   : > { %v5842_v55 = vpop.f32.mrb[14].mxu1  ;;  %v2386_v21 = vmax.f32 %v5838_v25, %v5840_v3 }
 0x303   : > { %v5846_v8 = vpop.f32.mrb[15].mxu1 }
 0x304   : > { %2387 = vmax.xlane.f32.xlu1 %v2386_v21  ;;  %v2389_v39 = vmax.f32 %v5842_v55, %v5846_v8 }
 0x306   : > { %2390 = vmax.xlane.f32.xlu0 %v2389_v39 }
 0x308   : > { %v5850_v2 = vpop.f32.mrb[16].mxu1 }
 0x309   : > { %v5852_v6 = vpop.f32.mrb[17].mxu1 }
 0x30a   : > { %v5854_v49 = vpop.f32.mrb[18].mxu1  ;;  %v2392_v20 = vmax.f32 %v5850_v2, %v5852_v6 }
 0x30b   : > { %v5858_v40 = vpop.f32.mrb[19].mxu1 }
 0x30c   : > { %2393 = vmax.xlane.f32.xlu1 %v2392_v20  ;;  %v2395_v13 = vmax.f32 %v5854_v49, %v5858_v40 }
 0x30e   : > { %2396 = vmax.xlane.f32.xlu0 %v2395_v13 }
 0x310   : > { %v5862_v21 = vpop.f32.mrb[20].mxu1 }
 0x311   : > { %v5864_v45 = vpop.f32.mrb[21].mxu1 }
 0x312   : > { %v5866_v39 = vpop.f32.mrb[22].mxu1  ;;  %v2398_v36 = vmax.f32 %v5862_v21, %v5864_v45 }
 0x313   : > { %v5870_v5 = vpop.f32.mrb[23].mxu1 }
 0x314   : > { %2399 = vmax.xlane.f32.xlu1 %v2398_v36  ;;  %v2401_v63 = vmax.f32 %v5866_v39, %v5870_v5 }
 0x316   : > { %2402 = vmax.xlane.f32.xlu0 %v2401_v63 }
 0x318   : > { %v5874_v20 = vpop.f32.mrb[24].mxu1 }
 0x319   : > { %v5876_v10 = vpop.f32.mrb[25].mxu1 }
 0x31a   : > { %v5878_v13 = vpop.f32.mrb[26].mxu1  ;;  %v2404_v17 = vmax.f32 %v5874_v20, %v5876_v10 }
 0x31b   : > { %v5882_v59 = vpop.f32.mrb[27].mxu1 }
 0x31c   : > { %2405 = vmax.xlane.f32.xlu1 %v2404_v17  ;;  %v2407_v60 = vmax.f32 %v5878_v13, %v5882_v59 }
 0x31e   : > { %2408 = vmax.xlane.f32.xlu0 %v2407_v60 }
 0x320   : > { %v5886_v36 = vpop.f32.mrb[28].mxu1 }
 0x321   : > { %v5888_v62 = vpop.f32.mrb[29].mxu1 }
 0x322   : > { %v5890_v63 = vpop.f32.mrb[30].mxu1  ;;  %v2410_v23 = vmax.f32 %v5886_v36, %v5888_v62 }
 0x323   : > { %v5894_v53 = vpop.f32.mrb[31].mxu1 }
 0x324   : > { %v2413_v16 = vmax.f32 %v5890_v63, %v5894_v53  ;;  %2411 = vmax.xlane.f32.xlu1 %v2410_v23 }
 0x326   : > { %2414 = vmax.xlane.f32.xlu0 %v2413_v16 }
 0x328   : > { %v5898_v17 = vpop.f32.mrb[32].mxu1 }
 0x329   : > { %v5900_v14 = vpop.f32.mrb[33].mxu1 }
 0x32a   : > { %v2416_v60 = vmax.f32 %v5898_v17, %v5900_v14  ;;  %v5904_v12 = vpop.f32.mrb[34].mxu1 }
 0x32b   : > { %v5906_v7 = vpop.f32.mrb[35].mxu1 }
 0x32c   : > { %v2419_v32 = vmax.f32 %v5904_v12, %v5906_v7  ;;  %2417 = vmax.xlane.f32.xlu1 %v2416_v60 }
 0x32e   : > { %2420 = vmax.xlane.f32.xlu0 %v2419_v32 }
 0x330   : > { %v5910_v0 = vpop.f32.mrb[36].mxu1 }
 0x331   : > { %v5912_v23 = vpop.f32.mrb[37].mxu1 }
 0x332   : > { %v2422_v16 = vmax.f32 %v5910_v0, %v5912_v23  ;;  %v5916_v30 = vpop.f32.mrb[38].mxu1 }
 0x333   : > { %v5918_v1 = vpop.f32.mrb[39].mxu1 }
 0x334   : > { %v2425_v28 = vmax.f32 %v5916_v30, %v5918_v1  ;;  %2423 = vmax.xlane.f32.xlu1 %v2422_v16 }
 0x336   : > { %2426 = vmax.xlane.f32.xlu0 %v2425_v28 }
 0x338   : > { %v5922_v19 = vpop.f32.mrb[40].mxu1 }
 0x339   : > { %v5924_v60 = vpop.f32.mrb[41].mxu1 }
 0x33a   : > { %v2428_v32 = vmax.f32 %v5922_v19, %v5924_v60  ;;  %v5928_v26 = vpop.f32.mrb[42].mxu1 }
 0x33b   : > { %v5930_v50 = vpop.f32.mrb[43].mxu1 }
 0x33c   : > { %v2431_v46 = vmax.f32 %v5928_v26, %v5930_v50  ;;  %2429 = vmax.xlane.f32.xlu1 %v2428_v32 }
 0x33e   : > { %2432 = vmax.xlane.f32.xlu0 %v2431_v46 }
 0x340   : > { %v5934_v44 = vpop.f32.mrb[44].mxu1 }
 0x341   : > { %v5936_v16 = vpop.f32.mrb[45].mxu1 }
 0x342   : > { %v2434_v28 = vmax.f32 %v5934_v44, %v5936_v16  ;;  %v5940_v47 = vpop.f32.mrb[46].mxu1 }
 0x343   : > { %v5942_v42 = vpop.f32.mrb[47].mxu1 }
 0x344   : > { %v2437_v43 = vmax.f32 %v5940_v47, %v5942_v42  ;;  %2435 = vmax.xlane.f32.xlu1 %v2434_v28 }
 0x346   : > { %2438 = vmax.xlane.f32.xlu0 %v2437_v43 }
 0x348   : > { %v5946_v37 = vpop.f32.mrb[48].mxu1 }
 0x349   : > { %v5948_v32 = vpop.f32.mrb[49].mxu1 }
 0x34a   : > { %v2440_v46 = vmax.f32 %v5946_v37, %v5948_v32  ;;  %v5952_v11 = vpop.f32.mrb[50].mxu1 }
 0x34b   : > { %v5954_v35 = vpop.f32.mrb[51].mxu1 }
 0x34c   : > { %7943 = vst [vmem:[#allocation91_spill] sm:$0xff] %v5954_v35  ;;  %v2443_v9 = vmax.f32 %v5952_v11, %v5954_v35  ;;  %2441 = vmax.xlane.f32.xlu1 %v2440_v46 }
 0x34e   : > { %2444 = vmax.xlane.f32.xlu0 %v2443_v9 }
 0x350   : > { %v5958_v33 = vpop.f32.mrb[52].mxu1 }
 0x351   : > { %7944 = vst [vmem:[#allocation92_spill] sm:$0xff] %v5958_v33  ;;  %v5960_v28 = vpop.f32.mrb[53].mxu1 }
 0x352   : > { %7945 = vst [vmem:[#allocation93_spill] sm:$0xff] %v5960_v28  ;;  %v2446_v43 = vmax.f32 %v5958_v33, %v5960_v28  ;;  %v5964_v38 = vpop.f32.mrb[54].mxu1 }
 0x353   : > { %7946 = vst [vmem:[#allocation94_spill] sm:$0xff] %v5964_v38  ;;  %v5966_v31 = vpop.f32.mrb[55].mxu1 }
 0x354   : > { %7947 = vst [vmem:[#allocation95_spill] sm:$0xff] %v5966_v31  ;;  %v2449_v58 = vmax.f32 %v5964_v38, %v5966_v31  ;;  %2447 = vmax.xlane.f32.xlu1 %v2446_v43 }
 0x356   : > { %2450 = vmax.xlane.f32.xlu0 %v2449_v58 }
 0x358   : > { %v5970_v29 = vpop.f32.mrb[56].mxu1 }
 0x359   : > { %7948 = vst [vmem:[#allocation96_spill] sm:$0xff] %v5970_v29  ;;  %v5972_v46 = vpop.f32.mrb[57].mxu1 }
 0x35a   : > { %7949 = vst [vmem:[#allocation97_spill] sm:$0xff] %v5972_v46  ;;  %v2452_v9 = vmax.f32 %v5970_v29, %v5972_v46  ;;  %v5976_v41 = vpop.f32.mrb[58].mxu1  ;;  %v4305_v29 = vld [vmem:[%s7765_s1 + $0x264] ss:$8 sps:$4 sm:$0xff]  }
 0x35b   : > { %7950 = vst [vmem:[#allocation98_spill] sm:$0xff] %v5976_v41  ;;  %v5978_v27 = vpop.f32.mrb[59].mxu1 }
 0x35c   : > { %7951 = vst [vmem:[#allocation99_spill] sm:$0xff] %v5978_v27  ;;  %v2455_v15 = vmax.f32 %v5976_v41, %v5978_v27  ;;  %2453 = vmax.xlane.f32.xlu1 %v2452_v9  ;;  %v4301_v9 = vld [vmem:[%s7765_s1 + $0x240] ss:$8 sps:$4 sm:$0xff]  }
 0x35e   : > { %2456 = vmax.xlane.f32.xlu0 %v2455_v15  ;;  %v4299_v15 = vld [vmem:[%s7765_s1 + $0x244] ss:$8 sps:$4 sm:$0xff]  }
 0x35f   : > { %1830 = vmatprep.mubr.bf16.mxu0 %v4299_v15 }
 0x360   : > { %v5982_v28 = vpop.f32.mrb[60].mxu1  ;;  %1831 = vmatmul.mubr.bf16.gmra.mrb[144].mxu0 %v4301_v9 }
 0x361   : > { %7952 = vst [vmem:[#allocation100_spill] sm:$0xff] %v5982_v28  ;;  %v5984_v43 = vpop.f32.mrb[61].mxu1 }
 0x362   : > { %7953 = vst [vmem:[#allocation101_spill] sm:$0xff] %v5984_v43  ;;  %v2458_v58 = vmax.f32 %v5982_v28, %v5984_v43  ;;  %v5988_v31 = vpop.f32.mrb[62].mxu1  ;;  %v6000_v43 = vpop.permute.xlu0 %620 }
 0x363   : > { %7954 = vst [vmem:[#allocation102_spill] sm:$0xff] %v5988_v31  ;;  %v5990_v38 = vpop.f32.mrb[63].mxu1  ;;  %7956 = vst [vmem:[#allocation104_spill] sm:$0xff] %v6000_v43  ;;  %v6002_v28 = vpop.permute.xlu1 %615 }
 0x364   : > { %7955 = vst [vmem:[#allocation103_spill] sm:$0xff] %v5990_v38  ;;  %v2461_v46 = vmax.f32 %v5988_v31, %v5990_v38  ;;  %2459 = vmax.xlane.f32.xlu1 %v2458_v58  ;;  %7957 = vst [vmem:[#allocation105_spill] sm:$0xff] %v6002_v28  ;;  %v4302_v58 = vld [vmem:[%s7765_s1 + $0x254] ss:$8 sps:$4 sm:$0xff]  }
 0x365   : > { %1840 = vmatprep.mubr.bf16.mxu0 %v4302_v58 }
 0x366   : > { %2462 = vmax.xlane.f32.xlu0 %v2461_v46  ;;  %v4304_v46 = vld [vmem:[%s7765_s1 + $0x250] ss:$8 sps:$4 sm:$0xff]  }
 0x368   : > { %1841 = vmatmul.mubr.bf16.gmra.mrb[148].mxu0 %v4304_v46 }
 0x369   : > { %1850 = vmatprep.mubr.bf16.mxu0 %v4305_v29 }
 0x379   : > { %v2370_v27 = vpop.xlane.xlu0 %2369 }
 0x37a   : > { %v2464_v38 = vsub.f32 %v5802_v4, %v2370_v27  ;;  %v2465_v31 = vsub.f32 %v5804_v61, %v2370_v27  ;;  %v4307_v27 = vld [vmem:[%s7765_s1 + $0x260] ss:$8 sps:$4 sm:$0xff]  }
 0x37b   : > { %v2373_v41 = vpop.xlane.xlu1 %2372  ;;  %1851 = vmatmul.mubr.bf16.gmra.mrb[152].mxu0 %v4307_v27 }
 0x37c   : > { %v2528_v15 = vmul.f32 1.442695, %v2464_v38  ;;  %v2530_v9 = vmul.f32 1.442695, %v2465_v31  ;;  %v2466_v43 = vsub.f32 %v5806_v18, %v2373_v41  ;;  %v2467_v28 = vsub.f32 %v5810_v24, %v2373_v41 }
 0x37e   : > { %4335 = vpow2.f32 %v2528_v15  ;;  %v2532_v33 = vmul.f32 1.442695, %v2466_v43  ;;  %v2534_v35 = vmul.f32 1.442695, %v2467_v28 }
 0x37f   : > { %4337 = vpow2.f32 %v2530_v9 }
 0x380   : > { %4339 = vpow2.f32 %v2532_v33 }
 0x381   : > { %4341 = vpow2.f32 %v2534_v35  ;;  %v2376_v31 = vpop.xlane.xlu0 %2375 }
 0x382   : > { %v2468_v38 = vsub.f32 %v5814_v22, %v2376_v31  ;;  %v2469_v41 = vsub.f32 %v5816_v48, %v2376_v31 }
 0x384   : > { %v2536_v4 = vmul.f32 1.442695, %v2468_v38  ;;  %v2538_v61 = vmul.f32 1.442695, %v2469_v41 }
 0x385   : > { %v2379_v18 = vpop.xlane.xlu0 %2378 }
 0x386   : > { %4343 = vpow2.f32 %v2536_v4  ;;  %v2470_v24 = vsub.f32 %v5818_v57, %v2379_v18  ;;  %v2471_v29 = vsub.f32 %v5822_v52, %v2379_v18 }
 0x387   : > { %4345 = vpow2.f32 %v2538_v61 }
 0x388   : > { %v6024_v33 = vpop.eup %4335  ;;  %v2540_v28 = vmul.f32 1.442695, %v2470_v24  ;;  %v2542_v43 = vmul.f32 1.442695, %v2471_v29 }
 0x389   : > { %v6026_v35 = vpop.eup %4337  ;;  %v2382_v58 = vpop.xlane.xlu1 %2381 }
 0x38a   : > { %v6028_v22 = vpop.eup %4339  ;;  %4347 = vpow2.f32 %v2540_v28  ;;  %v2472_v48 = vsub.f32 %v5826_v54, %v2382_v58  ;;  %v2473_v46 = vsub.f32 %v5828_v51, %v2382_v58  ;;  %v2656_v57 = vadd.f32 %v6026_v35, %v6024_v33  ;;  %v4308_v54 = vld [vmem:[%s7765_s1 + $0x274] ss:$8 sps:$4 sm:$0xff]   ;;  %v4310_v51 = vld [vmem:[%s7765_s1 + $0x270] ss:$8 sps:$4 sm:$0xff]  }
 0x38b   : > { %v6034_v15 = vpop.eup %4341  ;;  %4349 = vpow2.f32 %v2542_v43  ;;  %1860 = vmatprep.mubr.bf16.mxu0 %v4308_v54  ;;  %v411_v43 = vld [vmem:[%s7766_s2 + $0xe8] sm:$0xff]  ;;  %v452_v58 = vld [vmem:[%s7766_s2 + $0x230] sm:$0xff] }
 0x38c   : > { %v2544_v52 = vmul.f32 1.442695, %v2472_v48  ;;  %v2546_v9 = vmul.f32 1.442695, %v2473_v46  ;;  %2657 = vadd.xlane.f32.xlu1 %v2656_v57  ;;  %v2659_v27 = vadd.f32 %v6034_v15, %v6028_v22  ;;  %1861 = vmatmul.mubr.bf16.gmra.mrb[156].mxu0 %v4310_v51  ;;  %v6068_v48 = vpop.f32.mrb[140].mxu0  ;;  %v2385_v57 = vpop.xlane.xlu0 %2384 }
 0x38d   : > { %7961 = vst [vmem:[#allocation109_spill] sm:$0xff] %v6068_v48  ;;  %v6070_v46 = vpop.f32.mrb[141].mxu0 }
 0x38e   : > { %4351 = vpow2.f32 %v2544_v52  ;;  %2660 = vadd.xlane.f32.xlu0 %v2659_v27  ;;  %7962 = vst [vmem:[#allocation110_spill] sm:$0xff] %v6070_v46  ;;  %v2475_v27 = vsub.f32 %v5834_v56, %v2385_v57 }
 0x38f   : > { %4353 = vpow2.f32 %v2546_v9  ;;  %v2474_v9 = vsub.f32 %v5830_v34, %v2385_v57 }
 0x390   : > { %v6044_v31 = vpop.eup %4343  ;;  %v2550_v48 = vmul.f32 1.442695, %v2475_v27 }
 0x391   : > { %v6046_v38 = vpop.eup %4345  ;;  %v2388_v52 = vpop.xlane.xlu1 %2387 }
 0x392   : > { %v2662_v41 = vadd.f32 %v6046_v38, %v6044_v31  ;;  %v2476_v51 = vsub.f32 %v5838_v25, %v2388_v52 }
 0x393   : > { %v2391_v54 = vpop.xlane.xlu0 %2390 }
 0x394   : > { %v6050_v4 = vpop.eup %4347  ;;  %2663 = vadd.xlane.f32.xlu1 %v2662_v41  ;;  %v2477_v41 = vsub.f32 %v5840_v3, %v2388_v52 }
 0x395   : > { %7958 = vst [vmem:[#allocation106_spill] sm:$0xff] %v6050_v4  ;;  %v6052_v61 = vpop.eup %4349 }
 0x396   : > { %v2665_v18 = vadd.f32 %v6052_v61, %v6050_v4  ;;  %v2554_v4 = vmul.f32 1.442695, %v2477_v41 }
 0x398   : > { %v6056_v24 = vpop.eup %4351  ;;  %2666 = vadd.xlane.f32.xlu0 %v2665_v18 }
 0x399   : > { %7959 = vst [vmem:[#allocation107_spill] sm:$0xff] %v6056_v24  ;;  %v6058_v29 = vpop.eup %4353  ;;  %v2394_v18 = vpop.xlane.xlu1 %2393 }
 0x39a   : > { %7960 = vst [vmem:[#allocation108_spill] sm:$0xff] %v6058_v29  ;;  %v2668_v28 = vadd.f32 %v6058_v29, %v6056_v24  ;;  %v2478_v24 = vsub.f32 %v5842_v55, %v2391_v54  ;;  %v2480_v29 = vsub.f32 %v5850_v2, %v2394_v18  ;;  %v2481_v34 = vsub.f32 %v5852_v6, %v2394_v18 }
 0x39b   : > { %v2397_v46 = vpop.xlane.xlu0 %2396 }
 0x39c   : > { %2669 = vadd.xlane.f32.xlu1 %v2668_v28  ;;  %v2548_v28 = vmul.f32 1.442695, %v2474_v9  ;;  %v2556_v57 = vmul.f32 1.442695, %v2478_v24  ;;  %v2482_v25 = vsub.f32 %v5854_v49, %v2397_v46  ;;  %v2483_v52 = vsub.f32 %v5858_v40, %v2397_v46 }
 0x39d   : > { %v2560_v9 = vmul.f32 1.442695, %v2480_v29  ;;  %v2562_v27 = vmul.f32 1.442695, %v2481_v34 }
 0x39e   : > { %4355 = vpow2.f32 %v2548_v28  ;;  %v2564_v6 = vmul.f32 1.442695, %v2482_v25  ;;  %v2566_v49 = vmul.f32 1.442695, %v2483_v52 }
 0x39f   : > { %4357 = vpow2.f32 %v2550_v48 }
 0x3a1   : > { %v2400_v56 = vpop.xlane.xlu1 %2399 }
 0x3a2   : > { %v2485_v2 = vsub.f32 %v5864_v45, %v2400_v56 }
 0x3a3   : > { %v2403_v55 = vpop.xlane.xlu0 %2402 }
 0x3a4   : > { %v2486_v24 = vsub.f32 %v5866_v39, %v2403_v55  ;;  %v2487_v48 = vsub.f32 %v5870_v5, %v2403_v55 }
 0x3a6   : > { %v2572_v45 = vmul.f32 1.442695, %v2486_v24  ;;  %v2574_v39 = vmul.f32 1.442695, %v2487_v48 }
 0x3a8   : > { %v6090_v5 = vpop.eup %4355 }
 0x3ad   : > { %625 = vperm.xlu1 %4190, %v411_v43   ;;  %v2479_v43 = vsub.f32 %v5846_v8, %v2391_v54  ;;  %v2484_v8 = vsub.f32 %v5862_v21, %v2400_v56  ;;  %v2406_v54 = vpop.xlane.xlu1 %2405  ;;  %v2570_v21 = vmul.f32 1.442695, %v2485_v2 }
 0x3ae   : > { %830 = vperm.xlu0 %4189, %v452_v58   ;;  %v2552_v58 = vmul.f32 1.442695, %v2476_v51  ;;  %v2409_v51 = vpop.xlane.xlu0 %2408  ;;  %v2488_v29 = vsub.f32 %v5874_v20, %v2406_v54 }
 0x3af   : > { %v2558_v3 = vmul.f32 1.442695, %v2479_v43  ;;  %v2568_v40 = vmul.f32 1.442695, %v2484_v8  ;;  %v2490_v41 = vsub.f32 %v5878_v13, %v2409_v51  ;;  %v2491_v18 = vsub.f32 %v5882_v59, %v2409_v51 }
 0x3b0   : > { %4359 = vpow2.f32 %v2552_v58  ;;  %v2576_v43 = vmul.f32 1.442695, %v2488_v29  ;;  %v6093_v58 = vpop.eup %4357 }
 0x3b1   : > { %4361 = vpow2.f32 %v2554_v4  ;;  %v2489_v4 = vsub.f32 %v5876_v10, %v2406_v54  ;;  %v2412_v46 = vpop.xlane.xlu1 %2411  ;;  %v2580_v13 = vmul.f32 1.442695, %v2490_v41  ;;  %v2671_v54 = vadd.f32 %v6093_v58, %v6090_v5 }
 0x3b2   : > { %4363 = vpow2.f32 %v2556_v57  ;;  %v2492_v20 = vsub.f32 %v5886_v36, %v2412_v46  ;;  %v2493_v34 = vsub.f32 %v5888_v62, %v2412_v46 }
 0x3b3   : > { %4365 = vpow2.f32 %v2558_v3  ;;  %v2415_v28 = vpop.xlane.xlu0 %2414  ;;  %v2578_v10 = vmul.f32 1.442695, %v2489_v4  ;;  %v2582_v3 = vmul.f32 1.442695, %v2491_v18 }
 0x3b4   : > { %4367 = vpow2.f32 %v2560_v9  ;;  %v2494_v59 = vsub.f32 %v5890_v63, %v2415_v28  ;;  %v2495_v52 = vsub.f32 %v5894_v53, %v2415_v28  ;;  %v2584_v9 = vmul.f32 1.442695, %v2492_v20 }
 0x3b5   : > { %4369 = vpow2.f32 %v2562_v27  ;;  %v2586_v27 = vmul.f32 1.442695, %v2493_v34 }
 0x3b6   : > { %4371 = vpow2.f32 %v2564_v6  ;;  %v2588_v53 = vmul.f32 1.442695, %v2494_v59 }
 0x3b7   : > { %4373 = vpow2.f32 %v2566_v49 }
 0x3b8   : > { %4375 = vpow2.f32 %v2568_v40 }
 0x3b9   : > { %4377 = vpow2.f32 %v2570_v21  ;;  %v2418_v56 = vpop.xlane.xlu1 %2417 }
 0x3ba   : > { %v6096_v57 = vpop.eup %4359  ;;  %4379 = vpow2.f32 %v2572_v45  ;;  %v2496_v62 = vsub.f32 %v5898_v17, %v2418_v56  ;;  %v2497_v2 = vsub.f32 %v5900_v14, %v2418_v56  ;;  %v2590_v17 = vmul.f32 1.442695, %v2495_v52 }
 0x3bb   : > { %v6099_v25 = vpop.eup %4361  ;;  %4381 = vpow2.f32 %v2574_v39  ;;  %v2421_v36 = vpop.xlane.xlu0 %2420 }
 0x3bc   : > { %v6102_v55 = vpop.eup %4363  ;;  %4383 = vpow2.f32 %v2576_v43  ;;  %v2498_v24 = vsub.f32 %v5904_v12, %v2421_v36  ;;  %v2499_v48 = vsub.f32 %v5906_v7, %v2421_v36  ;;  %v2592_v14 = vmul.f32 1.442695, %v2496_v62 }
 0x3bd   : > { %v6105_v8 = vpop.eup %4365  ;;  %4385 = vpow2.f32 %v2578_v10  ;;  %v2674_v21 = vadd.f32 %v6099_v25, %v6096_v57  ;;  %v2594_v12 = vmul.f32 1.442695, %v2497_v2 }
 0x3be   : > { %v6110_v6 = vpop.eup %4367  ;;  %4387 = vpow2.f32 %v2580_v13  ;;  %v2677_v7 = vadd.f32 %v6105_v8, %v6102_v55  ;;  %v2596_v39 = vmul.f32 1.442695, %v2498_v24  ;;  %v2598_v28 = vmul.f32 1.442695, %v2499_v48 }
 0x3bf   : > { %v6113_v49 = vpop.eup %4369  ;;  %4389 = vpow2.f32 %v2582_v3 }
 0x3c0   : > { %v6116_v40 = vpop.eup %4371  ;;  %4391 = vpow2.f32 %v2584_v9  ;;  %v2680_v56 = vadd.f32 %v6113_v49, %v6110_v6 }
 0x3c1   : > { %v2424_v63 = vpop.xlane.xlu1 %2423  ;;  %v6121_v4 = vpop.eup %4373  ;;  %4393 = vpow2.f32 %v2586_v27 }
 0x3c2   : > { %v2500_v29 = vsub.f32 %v5910_v0, %v2424_v63  ;;  %v2501_v46 = vsub.f32 %v5912_v23, %v2424_v63  ;;  %v6126_v41 = vpop.eup %4375  ;;  %4395 = vpow2.f32 %v2588_v53 }
 0x3c3   : > { %v2427_v51 = vpop.xlane.xlu0 %2426  ;;  %v6129_v0 = vpop.eup %4377  ;;  %4397 = vpow2.f32 %v2590_v17 }
 0x3c4   : > { %v2502_v18 = vsub.f32 %v5916_v30, %v2427_v51  ;;  %v2503_v43 = vsub.f32 %v5918_v1, %v2427_v51  ;;  %v6132_v23 = vpop.eup %4379  ;;  %4399 = vpow2.f32 %v2592_v14  ;;  %v2600_v10 = vmul.f32 1.442695, %v2500_v29 }
 0x3c5   : > { %v6137_v13 = vpop.eup %4381  ;;  %4401 = vpow2.f32 %v2594_v12  ;;  %v2602_v30 = vmul.f32 1.442695, %v2501_v46  ;;  %v2683_v1 = vadd.f32 %v6121_v4, %v6116_v40  ;;  %v2686_v53 = vadd.f32 %v6129_v0, %v6126_v41 }
 0x3c6   : > { %v6142_v52 = vpop.eup %4383  ;;  %4403 = vpow2.f32 %v2596_v39  ;;  %v2604_v36 = vmul.f32 1.442695, %v2502_v18  ;;  %v2606_v62 = vmul.f32 1.442695, %v2503_v43 }
 0x3c7   : > { %4405 = vpow2.f32 %v2598_v28 }
 0x3c8   : > { %4407 = vpow2.f32 %v2600_v10 }
 0x3c9   : > { %v2430_v45 = vpop.xlane.xlu1 %2429  ;;  %4409 = vpow2.f32 %v2602_v30  ;;  %v7963_v30 = vld [vmem:[#allocation91_spill] sm:$0xff] }
 0x3ca   : > { %v2504_v34 = vsub.f32 %v5922_v19, %v2430_v45  ;;  %v2505_v59 = vsub.f32 %v5924_v60, %v2430_v45  ;;  %v6145_v19 = vpop.eup %4385  ;;  %4411 = vpow2.f32 %v2604_v36 }
 0x3cb   : > { %v2433_v20 = vpop.xlane.xlu0 %2432  ;;  %v6148_v60 = vpop.eup %4387  ;;  %4413 = vpow2.f32 %v2606_v62 }
 0x3cc   : > { %v2506_v9 = vsub.f32 %v5928_v26, %v2433_v20  ;;  %v2507_v27 = vsub.f32 %v5930_v50, %v2433_v20  ;;  %v2608_v63 = vmul.f32 1.442695, %v2504_v34  ;;  %v6153_v24 = vpop.eup %4389  ;;  %v2610_v26 = vmul.f32 1.442695, %v2505_v59 }
 0x3cd   : > { %2672 = vadd.xlane.f32.xlu0 %v2671_v54  ;;  %v2689_v50 = vadd.f32 %v6137_v13, %v6132_v23  ;;  %v6158_v48 = vpop.eup %4391 }
 0x3ce   : > { %v2612_v51 = vmul.f32 1.442695, %v2506_v9  ;;  %v6161_v29 = vpop.eup %4393  ;;  %4415 = vpow2.f32 %v2608_v63 }
 0x3cf   : > { %v6164_v46 = vpop.eup %4395  ;;  %4417 = vpow2.f32 %v2610_v26  ;;  %v2698_v36 = vadd.f32 %v6161_v29, %v6158_v48 }
 0x3d0   : > { %v6169_v39 = vpop.eup %4397  ;;  %4419 = vpow2.f32 %v2612_v51 }
 0x3d1   : > { %2675 = vadd.xlane.f32.xlu1 %v2674_v21  ;;  %2678 = vadd.xlane.f32.xlu0 %v2677_v7  ;;  %v2436_v3 = vpop.xlane.xlu1 %2435  ;;  %v2692_v7 = vadd.f32 %v6145_v19, %v6142_v52  ;;  %v6174_v43 = vpop.eup %4399  ;;  %v2701_v9 = vadd.f32 %v6169_v39, %v6164_v46 }
 0x3d2   : > { %v2508_v54 = vsub.f32 %v5934_v44, %v2436_v3  ;;  %v2509_v17 = vsub.f32 %v5936_v16, %v2436_v3  ;;  %v2614_v44 = vmul.f32 1.442695, %v2507_v27  ;;  %v6176_v10 = vpop.eup %4401 }
 0x3d3   : > { %v2439_v2 = vpop.xlane.xlu0 %2438 }
 0x3d4   : > { %v2510_v14 = vsub.f32 %v5940_v47, %v2439_v2  ;;  %v2511_v21 = vsub.f32 %v5942_v42, %v2439_v2  ;;  %v2616_v16 = vmul.f32 1.442695, %v2508_v54  ;;  %v2618_v47 = vmul.f32 1.442695, %v2509_v17  ;;  %v7965_v17 = vld [vmem:[#allocation93_spill] sm:$0xff] }
 0x3d5   : > { %2681 = vadd.xlane.f32.xlu1 %v2680_v56  ;;  %2684 = vadd.xlane.f32.xlu0 %v2683_v1  ;;  %v2695_v42 = vadd.f32 %v6153_v24, %v6148_v60  ;;  %4421 = vpow2.f32 %v2614_v44  ;;  %v6179_v56 = vpop.eup %4403  ;;  %v2704_v44 = vadd.f32 %v6176_v10, %v6174_v43 }
 0x3d6   : > { %v2620_v20 = vmul.f32 1.442695, %v2510_v14  ;;  %4423 = vpow2.f32 %v2616_v16  ;;  %v6182_v3 = vpop.eup %4405 }
 0x3d7   : > { %4425 = vpow2.f32 %v2618_v47  ;;  %v6188_v62 = vpop.eup %4407 }
 0x3d8   : > { %4427 = vpow2.f32 %v2620_v20 }
 0x3d9   : > { %2687 = vadd.xlane.f32.xlu1 %v2686_v53  ;;  %2690 = vadd.xlane.f32.xlu0 %v2689_v50  ;;  %v2442_v12 = vpop.xlane.xlu1 %2441  ;;  %v7964_v53 = vld [vmem:[#allocation92_spill] sm:$0xff] }
 0x3da   : > { %v2512_v45 = vsub.f32 %v5946_v37, %v2442_v12  ;;  %v2513_v18 = vsub.f32 %v5948_v32, %v2442_v12  ;;  %v2622_v37 = vmul.f32 1.442695, %v2511_v21  ;;  %v2707_v21 = vadd.f32 %v6182_v3, %v6179_v56 }
 0x3db   : > { %v2445_v28 = vpop.xlane.xlu0 %2444 }
 0x3dc   : > { %v2514_v34 = vsub.f32 %v5952_v11, %v2445_v28  ;;  %v2624_v32 = vmul.f32 1.442695, %v2512_v45  ;;  %v2515_v59 = vsub.f32 %v7963_v30, %v2445_v28  ;;  %v2626_v1 = vmul.f32 1.442695, %v2513_v18  ;;  %v6190_v11 = vpop.eup %4409  ;;  %v7967_v18 = vld [vmem:[#allocation95_spill] sm:$0xff] }
 0x3dd   : > { %2693 = vadd.xlane.f32.xlu1 %v2692_v7  ;;  %2696 = vadd.xlane.f32.xlu0 %v2695_v42  ;;  %4429 = vpow2.f32 %v2622_v37  ;;  %v6192_v63 = vpop.eup %4411  ;;  %v7966_v7 = vld [vmem:[#allocation94_spill] sm:$0xff]  ;;  %v2710_v30 = vadd.f32 %v6190_v11, %v6188_v62 }
 0x3de   : > { %v2628_v27 = vmul.f32 1.442695, %v2514_v34  ;;  %4431 = vpow2.f32 %v2624_v32  ;;  %v2630_v54 = vmul.f32 1.442695, %v2515_v59  ;;  %v6196_v51 = vpop.eup %4413 }
 0x3df   : > { %4433 = vpow2.f32 %v2626_v1  ;;  %v6202_v12 = vpop.eup %4415  ;;  %v2713_v59 = vadd.f32 %v6196_v51, %v6192_v63 }
 0x3e0   : > { %v6206_v42 = vpop.eup %4417  ;;  %4435 = vpow2.f32 %v2628_v27 }
 0x3e1   : > { %2699 = vadd.xlane.f32.xlu1 %v2698_v36  ;;  %2702 = vadd.xlane.f32.xlu0 %v2701_v9  ;;  %v2448_v2 = vpop.xlane.xlu1 %2447  ;;  %v6208_v20 = vpop.eup %4419  ;;  %4437 = vpow2.f32 %v2630_v54 }
 0x3e2   : > { %v2516_v26 = vsub.f32 %v7964_v53, %v2448_v2  ;;  %v2517_v50 = vsub.f32 %v7965_v17, %v2448_v2  ;;  %v6210_v32 = vpop.eup %4421  ;;  %v7969_v2 = vld [vmem:[#allocation96_spill] sm:$0xff]  ;;  %v7970_v53 = vld [vmem:[#allocation97_spill] sm:$0xff] }
 0x3e3   : > { %v2451_v14 = vpop.xlane.xlu0 %2450  ;;  %v6216_v1 = vpop.eup %4423 }
 0x3e4   : > { %v2632_v16 = vmul.f32 1.442695, %v2516_v26  ;;  %v2634_v45 = vmul.f32 1.442695, %v2517_v50  ;;  %v2518_v47 = vsub.f32 %v7966_v7, %v2451_v14  ;;  %v2519_v28 = vsub.f32 %v7967_v18, %v2451_v14  ;;  %v6218_v36 = vpop.eup %4425 }
 0x3e5   : > { %2705 = vadd.xlane.f32.xlu1 %v2704_v44  ;;  %2708 = vadd.xlane.f32.xlu0 %v2707_v21  ;;  %v6220_v27 = vpop.eup %4427  ;;  %v2716_v50 = vadd.f32 %v6206_v42, %v6202_v12  ;;  %v2719_v14 = vadd.f32 %v6210_v32, %v6208_v20 }
 0x3e6   : > { %v2636_v37 = vmul.f32 1.442695, %v2518_v47  ;;  %v2638_v34 = vmul.f32 1.442695, %v2519_v28  ;;  %4439 = vpow2.f32 %v2632_v16  ;;  %7968 = vst [vmem:[#allocation91_spill] sm:$0xff] %v6220_v27  ;;  %v2722_v47 = vadd.f32 %v6218_v36, %v6216_v1 }
 0x3e7   : > { %4441 = vpow2.f32 %v2634_v45  ;;  %v6224_v17 = vpop.eup %4429 }
 0x3e8   : > { %4443 = vpow2.f32 %v2636_v37  ;;  %v6230_v44 = vpop.eup %4431  ;;  %v2725_v18 = vadd.f32 %v6224_v17, %v6220_v27 }
 0x3e9   : > { %2711 = vadd.xlane.f32.xlu1 %v2710_v30  ;;  %2714 = vadd.xlane.f32.xlu0 %v2713_v59  ;;  %v2454_v9 = vpop.xlane.xlu1 %2453  ;;  %4445 = vpow2.f32 %v2638_v34  ;;  %7971 = vst [vmem:[#allocation92_spill] sm:$0xff] %v6230_v44  ;;  %v6232_v45 = vpop.eup %4433 }
 0x3ea   : > { %v2520_v54 = vsub.f32 %v7969_v2, %v2454_v9  ;;  %v2521_v26 = vsub.f32 %v7970_v53, %v2454_v9  ;;  %7972 = vst [vmem:[#allocation93_spill] sm:$0xff] %v6232_v45  ;;  %v6234_v7 = vpop.eup %4435  ;;  %v2728_v59 = vadd.f32 %v6232_v45, %v6230_v44  ;;  %v7984_v44 = vld [vmem:[#allocation101_spill] sm:$0xff] }
 0x3eb   : > { %7973 = vst [vmem:[#allocation94_spill] sm:$0xff] %v6234_v7  ;;  %v6240_v28 = vpop.eup %4437 }
 0x3ec   : > { %v2640_v21 = vmul.f32 1.442695, %v2520_v54  ;;  %v2642_v16 = vmul.f32 1.442695, %v2521_v26  ;;  %7974 = vst [vmem:[#allocation95_spill] sm:$0xff] %v6240_v28  ;;  %v2731_v9 = vadd.f32 %v6240_v28, %v6234_v7 }
 0x3ed   : > { %2717 = vadd.xlane.f32.xlu1 %v2716_v50  ;;  %2720 = vadd.xlane.f32.xlu0 %v2719_v14 }
 0x3ee   : > { %4447 = vpow2.f32 %v2640_v21  ;;  %v453_v21 = vld [vmem:[%s7766_s2 + $0x238] sm:$0xff] }
 0x3ef   : > { %4449 = vpow2.f32 %v2642_v16  ;;  %v412_v16 = vld [vmem:[%s7766_s2 + $0xf0] sm:$0xff] }
 0x3f0   : > { %v6242_v37 = vpop.eup %4439 }
 0x3f1   : > { %7975 = vst [vmem:[#allocation96_spill] sm:$0xff] %v6242_v37  ;;  %2723 = vadd.xlane.f32.xlu1 %v2722_v47  ;;  %2726 = vadd.xlane.f32.xlu0 %v2725_v18  ;;  %v6244_v34 = vpop.eup %4441  ;;  %v6270_v47 = vpop.f32.mrb[142].mxu0 }
 0x3f2   : > { %7976 = vst [vmem:[#allocation97_spill] sm:$0xff] %v6244_v34  ;;  %v6246_v30 = vpop.eup %4443  ;;  %v2734_v54 = vadd.f32 %v6244_v34, %v6242_v37  ;;  %v6272_v18 = vpop.f32.mrb[143].mxu0 }
 0x3f3   : > { %7977 = vst [vmem:[#allocation111_spill] sm:$0xff] %v6246_v30  ;;  %v6252_v2 = vpop.eup %4445 }
 0x3f4   : > { %7978 = vst [vmem:[#allocation112_spill] sm:$0xff] %v6252_v2  ;;  %v2737_v53 = vadd.f32 %v6252_v2, %v6246_v30  ;;  %v7983_v2 = vld [vmem:[#allocation100_spill] sm:$0xff] }
 0x3f5   : > { %2729 = vadd.xlane.f32.xlu1 %v2728_v59  ;;  %2732 = vadd.xlane.f32.xlu0 %v2731_v9  ;;  %v2457_v59 = vpop.xlane.xlu0 %2456  ;;  %v2460_v9 = vpop.xlane.xlu1 %2459 }
 0x3f6   : > { %v2524_v34 = vsub.f32 %v7983_v2, %v2460_v9  ;;  %v2525_v28 = vsub.f32 %v7984_v44, %v2460_v9 }
 0x3f8   : > { %v6258_v26 = vpop.eup %4447 }
 0x3f9   : > { %7979 = vst [vmem:[#allocation113_spill] sm:$0xff] %v6258_v26  ;;  %v6260_v50 = vpop.eup %4449  ;;  %2735 = vadd.xlane.f32.xlu1 %v2734_v54  ;;  %2738 = vadd.xlane.f32.xlu0 %v2737_v53  ;;  %v7981_v54 = vld [vmem:[#allocation98_spill] sm:$0xff] }
 0x3fa   : > { %7980 = vst [vmem:[#allocation114_spill] sm:$0xff] %v6260_v50  ;;  %v2740_v14 = vadd.f32 %v6260_v50, %v6258_v26  ;;  %v2522_v53 = vsub.f32 %v7981_v54, %v2457_v59  ;;  %v7982_v26 = vld [vmem:[#allocation99_spill] sm:$0xff]  ;;  %v6276_v50 = vpop.xlane.xlu0 %2462 }
 0x3fc   : > { %v2644_v37 = vmul.f32 1.442695, %v2522_v53 }
 0x3fd   : > { %2741 = vadd.xlane.f32.xlu1 %v2740_v14  ;;  %v2523_v14 = vsub.f32 %v7982_v26, %v2457_v59 }
 0x3ff   : > { %v2646_v7 = vmul.f32 1.442695, %v2523_v14 }
 0x40e   : > { %835 = vperm.xlu1 %4190, %v453_v21   ;;  %v2648_v21 = vmul.f32 1.442695, %v2524_v34 }
 0x40f   : > { %630 = vperm.xlu0 %4189, %v412_v16   ;;  %v2650_v16 = vmul.f32 1.442695, %v2525_v28 }
 0x419   : > { %v2658_v30 = vpop.xlane.xlu1 %2657 }
 0x41a   : > { %4451 = vrcp.f32 %v2658_v30 }
 0x41b   : > { %v2661_v45 = vpop.xlane.xlu0 %2660 }
 0x41c   : > { %4453 = vrcp.f32 %v2661_v45 }
 0x41d   : > { %4455 = vpow2.f32 %v2644_v37 }
 0x41e   : > { %4457 = vpow2.f32 %v2646_v7 }
 0x41f   : > { %4459 = vpow2.f32 %v2648_v21 }
 0x420   : > { %4461 = vpow2.f32 %v2650_v16  ;;  %v7987_v16 = vld [vmem:[#allocation106_spill] sm:$0xff] }
 0x421   : > { %v2664_v27 = vpop.xlane.xlu1 %2663 }
 0x422   : > { %4463 = vrcp.f32 %v2664_v27 }
 0x424   : > { %v4452_v26 = vpop.eup %4451 }
 0x425   : > { %v2667_v59 = vpop.xlane.xlu0 %2666  ;;  %v2785_v2 = vmul.f32 %v4452_v26, %v6026_v35  ;;  %v2784_v45 = vmul.f32 %v4452_v26, %v6024_v33 }
 0x426   : > { %4465 = vrcp.f32 %v2667_v59  ;;  %v4454_v54 = vpop.eup %4453 }
 0x427   : > { %v6280_v53 = vpop.eup %4455  ;;  %v2787_v44 = vmul.f32 %v4454_v54, %v6034_v15  ;;  %v2786_v37 = vmul.f32 %v4454_v54, %v6028_v22 }
 0x428   : > { %v6286_v7 = vpop.eup %4457 }
 0x429   : > { %v2849_v28 = vpack.c.bf16 %v2787_v44, %v2785_v2  ;;  %v2848_v34 = vpack.c.bf16 %v2786_v37, %v2784_v45  ;;  %v6288_v30 = vpop.eup %4459  ;;  %v2743_v27 = vadd.f32 %v6286_v7, %v6280_v53  ;;  %v413_v2 = vld [vmem:[%s7766_s2 + $0xf8] sm:$0xff]  ;;  %v454_v44 = vld [vmem:[%s7766_s2 + $0x240] sm:$0xff] }
 0x42a   : > { %7985 = vst [vmem:[#allocation98_spill] sm:$0xff] %v6288_v30  ;;  %v6292_v9 = vpop.eup %4461  ;;  %v430_v45 = vld [vmem:[%s7766_s2 + $0x180] sm:$0xff] }
 0x42b   : > { %2880 = vmatprep.subr.bf16.mxu1 %v2849_v28  ;;  %7986 = vst [vmem:[#allocation99_spill] sm:$0xff] %v6292_v9  ;;  %v2746_v33 = vadd.f32 %v6292_v9, %v6288_v30 }
 0x42c   : > { %2881 = vmatpush1.bf16.xpose.msra.mxu1 %v2848_v34  ;;  %v4464_v35 = vpop.eup %4463  ;;  %v431_v34 = vld [vmem:[%s7766_s2 + $0x188] sm:$0xff] }
 0x42d   : > { %v2789_v22 = vmul.f32 %v4464_v35, %v6046_v38  ;;  %v2788_v21 = vmul.f32 %v4464_v35, %v6044_v31  ;;  %v455_v31 = vld [vmem:[%s7766_s2 + $0x248] sm:$0xff]  ;;  %v433_v35 = vld [vmem:[%s7766_s2 + $0x198] sm:$0xff] }
 0x42e   : > { %2744 = vadd.xlane.f32.xlu0 %v2743_v27  ;;  %v432_v27 = vld [vmem:[%s7766_s2 + $0x190] sm:$0xff] }
 0x430   : > { %v4466_v15 = vpop.eup %4465 }
 0x431   : > { %v2791_v14 = vmul.f32 %v4466_v15, %v6052_v61  ;;  %v2790_v26 = vmul.f32 %v4466_v15, %v7987_v16  ;;  %v456_v15 = vld [vmem:[%s7766_s2 + $0x250] sm:$0xff] }
 0x432   : > { %2747 = vadd.xlane.f32.xlu1 %v2746_v33 }
 0x433   : > { %v2851_v59 = vpack.c.bf16 %v2791_v14, %v2789_v22  ;;  %v2850_v54 = vpack.c.bf16 %v2790_v26, %v2788_v21  ;;  %v6306_v38 = vpop.f32.mrb[144].mxu0  ;;  %v457_v22 = vld [vmem:[%s7766_s2 + $0x258] sm:$0xff]  ;;  %v434_v21 = vld [vmem:[%s7766_s2 + $0x1a0] sm:$0xff]  ;;  %v2670_v26 = vpop.xlane.xlu1 %2669 }
 0x434   : > { %v6311_v61 = vpop.f32.mrb[145].mxu0  ;;  %4467 = vrcp.f32 %v2670_v26 }
 0x435   : > { %2882 = vmatprep.subr.bf16.mxu1 %v2851_v59  ;;  %v6316_v37 = vpop.f32.mrb[146].mxu0 }
 0x436   : > { %2883 = vmatpush1.bf16.xpose.msra.mxu1 %v2850_v54  ;;  %v6318_v28 = vpop.f32.mrb[147].mxu0  ;;  %v435_v54 = vld [vmem:[%s7766_s2 + $0x1a8] sm:$0xff] }
 0x43b   : > { %v6332_v33 = vpop.f32.mrb[148].mxu0 }
 0x43c   : > { %7988 = vst [vmem:[#allocation100_spill] sm:$0xff] %v6332_v33  ;;  %v6337_v14 = vpop.f32.mrb[149].mxu0 }
 0x43d   : > { %7989 = vst [vmem:[#allocation101_spill] sm:$0xff] %v6337_v14  ;;  %v6342_v16 = vpop.f32.mrb[150].mxu0  ;;  %v461_v14 = vld [vmem:[%s7766_s2 + $0x278] sm:$0xff] }
 0x43e   : > { %7990 = vst [vmem:[#allocation106_spill] sm:$0xff] %v6342_v16  ;;  %v6344_v59 = vpop.f32.mrb[151].mxu0  ;;  %v7998_v16 = vld [vmem:[#allocation107_spill] sm:$0xff] }
 0x43f   : > { %7991 = vst [vmem:[#allocation115_spill] sm:$0xff] %v6344_v59 }
 0x443   : > { %635 = vperm.xlu1 %4190, %v413_v2   ;;  %v436_v2 = vld [vmem:[%s7766_s2 + $0x1b0] sm:$0xff] }
 0x444   : > { %840 = vperm.xlu0 %4189, %v454_v44   ;;  %v6352_v44 = vpop.permute.xlu0 %830 }
 0x447   : > { %845 = vperm.xlu1 %4190, %v455_v31   ;;  %v437_v31 = vld [vmem:[%s7766_s2 + $0x1b8] sm:$0xff] }
 0x448   : > { %720 = vperm.xlu0 %4189, %v430_v45   ;;  %v6357_v45 = vpop.permute.xlu1 %625 }
 0x449   : > { %7992 = vst [vmem:[#allocation116_spill] sm:$0xff] %v6357_v45 }
 0x44b   : > { %725 = vperm.xlu1 %4190, %v431_v34   ;;  %v458_v34 = vld [vmem:[%s7766_s2 + $0x260] sm:$0xff] }
 0x44c   : > { %730 = vperm.xlu0 %4189, %v432_v27  }
 0x44f   : > { %735 = vperm.xlu1 %4190, %v433_v35   ;;  %v6362_v35 = vpop.f32.mrb[152].mxu0 }
 0x450   : > { %850 = vperm.xlu0 %4189, %v456_v15   ;;  %7993 = vst [vmem:[#allocation117_spill] sm:$0xff] %v6362_v35  ;;  %v6364_v15 = vpop.f32.mrb[153].mxu0 }
 0x451   : > { %7994 = vst [vmem:[#allocation118_spill] sm:$0xff] %v6364_v15  ;;  %v4468_v15 = vpop.eup %4467 }
 0x453   : > { %855 = vperm.xlu1 %4190, %v457_v22   ;;  %v459_v22 = vld [vmem:[%s7766_s2 + $0x268] sm:$0xff] }
 0x454   : > { %740 = vperm.xlu0 %4189, %v434_v21   ;;  %v438_v21 = vld [vmem:[%s7766_s2 + $0x1c0] sm:$0xff] }
 0x457   : > { %745 = vperm.xlu1 %4190, %v435_v54  }
 0x458   : > { %750 = vperm.xlu0 %4189, %v436_v2   ;;  %v6372_v2 = vpop.f32.mrb[154].mxu0 }
 0x459   : > { %7995 = vst [vmem:[#allocation119_spill] sm:$0xff] %v6372_v2  ;;  %v7997_v2 = vld [vmem:[#allocation108_spill] sm:$0xff] }
 0x45a   : > { %v2673_v27 = vpop.xlane.xlu0 %2672  ;;  %v2793_v35 = vmul.f32 %v4468_v15, %v7997_v2 }
 0x45b   : > { %4469 = vrcp.f32 %v2673_v27  ;;  %755 = vperm.xlu1 %4190, %v437_v31   ;;  %v439_v31 = vld [vmem:[%s7766_s2 + $0x1c8] sm:$0xff]  ;;  %v440_v27 = vld [vmem:[%s7766_s2 + $0x1d0] sm:$0xff] }
 0x45c   : > { %860 = vperm.xlu0 %4189, %v458_v34   ;;  %v6377_v34 = vpop.f32.mrb[155].mxu0 }
 0x45d   : > { %7996 = vst [vmem:[#allocation120_spill] sm:$0xff] %v6377_v34 }
 0x45e   : > { %v2676_v26 = vpop.xlane.xlu1 %2675  ;;  %v2679_v54 = vpop.xlane.xlu0 %2678 }
 0x45f   : > { %4471 = vrcp.f32 %v2676_v26  ;;  %865 = vperm.xlu1 %4190, %v459_v22   ;;  %v441_v22 = vld [vmem:[%s7766_s2 + $0x1d8] sm:$0xff]  ;;  %v460_v26 = vld [vmem:[%s7766_s2 + $0x270] sm:$0xff] }
 0x460   : > { %4473 = vrcp.f32 %v2679_v54  ;;  %760 = vperm.xlu0 %4189, %v438_v21  }
 0x462   : > { %v2682_v30 = vpop.xlane.xlu1 %2681  ;;  %v2685_v9 = vpop.xlane.xlu0 %2684 }
 0x463   : > { %4475 = vrcp.f32 %v2682_v30  ;;  %765 = vperm.xlu1 %4190, %v439_v31   ;;  %v2792_v30 = vmul.f32 %v4468_v15, %v7998_v16  ;;  %v6392_v31 = vpop.f32.mrb[156].mxu0 }
 0x464   : > { %4477 = vrcp.f32 %v2685_v9  ;;  %770 = vperm.xlu0 %4189, %v440_v27   ;;  %v6397_v45 = vpop.f32.mrb[157].mxu0 }
 0x465   : > { %v4470_v21 = vpop.eup %4469 }
 0x466   : > { %v2688_v54 = vpop.xlane.xlu1 %2687  ;;  %v2691_v34 = vpop.xlane.xlu0 %2690  ;;  %v2795_v59 = vmul.f32 %v4470_v21, %v6093_v58  ;;  %v2794_v9 = vmul.f32 %v4470_v21, %v6090_v5  ;;  %v442_v58 = vld [vmem:[%s7766_s2 + $0x1e0] sm:$0xff] }
 0x467   : > { %775 = vperm.xlu1 %4190, %v441_v22   ;;  %4479 = vrcp.f32 %v2688_v54 }
 0x468   : > { %870 = vperm.xlu0 %4189, %v460_v26   ;;  %v2853_v27 = vpack.c.bf16 %v2795_v59, %v2793_v35  ;;  %v2852_v33 = vpack.c.bf16 %v2794_v9, %v2792_v30  ;;  %4481 = vrcp.f32 %v2691_v34  ;;  %v6404_v35 = vpop.f32.mrb[158].mxu0  ;;  %v443_v34 = vld [vmem:[%s7766_s2 + $0x1e8] sm:$0xff] }
 0x469   : > { %v4472_v2 = vpop.eup %4471  ;;  %v6409_v22 = vpop.f32.mrb[159].mxu0 }
 0x46a   : > { %v4474_v5 = vpop.eup %4473  ;;  %v2694_v16 = vpop.xlane.xlu1 %2693  ;;  %2884 = vmatprep.subr.bf16.mxu1 %v2853_v27  ;;  %v2797_v15 = vmul.f32 %v4472_v2, %v6099_v25  ;;  %7999 = vst [vmem:[#allocation108_spill] sm:$0xff] %v6409_v22  ;;  %v2796_v54 = vmul.f32 %v4472_v2, %v6096_v57  ;;  %v445_v27 = vld [vmem:[%s7766_s2 + $0x1f8] sm:$0xff] }
 0x46b   : > { %875 = vperm.xlu1 %4190, %v461_v14   ;;  %2885 = vmatpush1.bf16.xpose.msra.mxu1 %v2852_v33  ;;  %v2799_v59 = vmul.f32 %v4474_v5, %v6105_v8  ;;  %v2798_v30 = vmul.f32 %v4474_v5, %v6102_v55  ;;  %v2697_v14 = vpop.xlane.xlu0 %2696  ;;  %4483 = vrcp.f32 %v2694_v16  ;;  %v8000_v5 = vld [vmem:[#allocation102_spill] sm:$0xff] }
 0x46c   : > { %780 = vperm.xlu0 %4189, %v442_v58   ;;  %4485 = vrcp.f32 %v2697_v14 }
 0x46d   : > { %v4476_v21 = vpop.eup %4475  ;;  %v2855_v26 = vpack.c.bf16 %v2799_v59, %v2797_v15  ;;  %v2854_v58 = vpack.c.bf16 %v2798_v30, %v2796_v54  ;;  %v2526_v59 = vsub.f32 %v8000_v5, %v6276_v50 }
 0x46e   : > { %v4478_v25 = vpop.eup %4477  ;;  %v2700_v33 = vpop.xlane.xlu1 %2699  ;;  %v2801_v8 = vmul.f32 %v4476_v21, %v6113_v49  ;;  %v8001_v49 = vld [vmem:[#allocation103_spill] sm:$0xff] }
 0x46f   : > { %2886 = vmatprep.subr.bf16.mxu1 %v2855_v26  ;;  %785 = vperm.xlu1 %4190, %v443_v34   ;;  %v2803_v9 = vmul.f32 %v4478_v25, %v6121_v4  ;;  %v2527_v34 = vsub.f32 %v8001_v49, %v6276_v50  ;;  %v2800_v4 = vmul.f32 %v4476_v21, %v6110_v6  ;;  %v2703_v26 = vpop.xlane.xlu0 %2702  ;;  %4487 = vrcp.f32 %v2700_v33 }
 0x470   : > { %v2802_v16 = vmul.f32 %v4478_v25, %v6116_v40  ;;  %4489 = vrcp.f32 %v2703_v26 }
 0x471   : > { %v4480_v15 = vpop.eup %4479  ;;  %v2857_v2 = vpack.c.bf16 %v2803_v9, %v2801_v8  ;;  %v2652_v8 = vmul.f32 1.442695, %v2526_v59  ;;  %v2654_v9 = vmul.f32 1.442695, %v2527_v34 }
 0x472   : > { %v2706_v57 = vpop.xlane.xlu1 %2705  ;;  %v4482_v55 = vpop.eup %4481  ;;  %v2805_v54 = vmul.f32 %v4480_v15, %v6129_v0  ;;  %v2804_v6 = vmul.f32 %v4480_v15, %v6126_v41 }
 0x473   : > { %795 = vperm.xlu1 %4190, %v445_v27   ;;  %2887 = vmatpush1.bf16.xpose.msra.mxu1 %v2854_v58  ;;  %v2807_v30 = vmul.f32 %v4482_v55, %v6137_v13  ;;  %v2856_v27 = vpack.c.bf16 %v2802_v16, %v2800_v4  ;;  %4491 = vpow2.f32 %v2652_v8  ;;  %v2806_v40 = vmul.f32 %v4482_v55, %v6132_v23  ;;  %v2709_v0 = vpop.xlane.xlu0 %2708 }
 0x474   : > { %2888 = vmatprep.subr.bf16.mxu1 %v2857_v2  ;;  %4493 = vpow2.f32 %v2654_v9 }
 0x475   : > { %v4484_v58 = vpop.eup %4483  ;;  %v2859_v22 = vpack.c.bf16 %v2807_v30, %v2805_v54  ;;  %4495 = vrcp.f32 %v2706_v57  ;;  %v2858_v33 = vpack.c.bf16 %v2806_v40, %v2804_v6 }
 0x476   : > { %v2712_v14 = vpop.xlane.xlu1 %2711  ;;  %v4486_v50 = vpop.eup %4485  ;;  %v2809_v13 = vmul.f32 %v4484_v58, %v6145_v19  ;;  %4497 = vrcp.f32 %v2709_v0  ;;  %v2808_v41 = vmul.f32 %v4484_v58, %v6142_v52 }
 0x477   : > { %v2811_v25 = vmul.f32 %v4486_v50, %v6153_v24  ;;  %v2810_v23 = vmul.f32 %v4486_v50, %v6148_v60  ;;  %v2715_v19 = vpop.xlane.xlu0 %2714  ;;  %4499 = vrcp.f32 %v2712_v14  ;;  %v8003_v50 = vld [vmem:[#allocation110_spill] sm:$0xff] }
 0x478   : > { %4501 = vrcp.f32 %v2715_v19  ;;  %v6456_v6 = vadd.f32 %v8003_v50, %v6352_v44 }
 0x479   : > { %v4488_v2 = vpop.eup %4487  ;;  %v2861_v49 = vpack.c.bf16 %v2811_v25, %v2809_v13  ;;  %v2860_v16 = vpack.c.bf16 %v2810_v23, %v2808_v41  ;;  %v8005_v41 = vld [vmem:[#allocation9_spill] sm:$0xff] }
 0x47a   : > { %v2718_v5 = vpop.xlane.xlu1 %2717  ;;  %v4490_v34 = vpop.eup %4489  ;;  %v2813_v57 = vmul.f32 %v4488_v2, %v6161_v29  ;;  %v2812_v30 = vmul.f32 %v4488_v2, %v6158_v48 }
 0x47b   : > { %2889 = vmatpush1.bf16.xpose.msra.mxu1 %v2856_v27  ;;  %v2815_v55 = vmul.f32 %v4490_v34, %v6169_v39  ;;  %v2814_v29 = vmul.f32 %v4490_v34, %v6164_v46  ;;  %v2721_v8 = vpop.xlane.xlu0 %2720  ;;  %v8002_v27 = vld [vmem:[#allocation109_spill] sm:$0xff]  ;;  %4503 = vrcp.f32 %v2718_v5  ;;  %v8004_v34 = vld [vmem:[#allocation52_spill] sm:$0xff] }
 0x47c   : > { %2890 = vmatprep.subr.bf16.mxu1 %v2859_v22  ;;  %v6452_v58 = vadd.f32 %v8002_v27, %v6352_v44  ;;  %4505 = vrcp.f32 %v2721_v8  ;;  %v1555_v23 = vadd.f32 %v8005_v41, %v8004_v34 }
 0x47d   : > { %v6432_v22 = vpop.eup %4491  ;;  %v2863_v52 = vpack.c.bf16 %v2815_v55, %v2813_v57  ;;  %v2862_v46 = vpack.c.bf16 %v2814_v29, %v2812_v30  ;;  %v8006_v55 = vld [vmem:[#allocation57_spill] sm:$0xff] }
 0x47e   : > { %v2724_v21 = vpop.xlane.xlu1 %2723  ;;  %v6436_v15 = vpop.eup %4493 }
 0x47f   : > { %v2749_v4 = vadd.f32 %v6436_v15, %v6432_v22  ;;  %v4496_v26 = vpop.eup %4495  ;;  %4507 = vrcp.f32 %v2724_v21  ;;  %v444_v21 = vld [vmem:[%s7766_s2 + $0x1f0] sm:$0xff] }
 0x480   : > { %v4498_v60 = vpop.eup %4497  ;;  %v2817_v14 = vmul.f32 %v4496_v26, %v6176_v10 }
 0x481   : > { %v2819_v9 = vmul.f32 %v4498_v60, %v6182_v3  ;;  %v4500_v0 = vpop.eup %4499  ;;  %v2818_v44 = vmul.f32 %v4498_v60, %v6179_v56  ;;  %v8009_v60 = vld [vmem:[#allocation13_spill] sm:$0xff] }
 0x482   : > { %v6430_v59 = vpop.xlane.xlu1 %2729  ;;  %v4502_v25 = vpop.eup %4501  ;;  %v2821_v5 = vmul.f32 %v4500_v0, %v6190_v11  ;;  %v8007_v11 = vld [vmem:[#allocation11_spill] sm:$0xff]  ;;  %v8079_v3 = vld [vmem:[#allocation53_spill] sm:$0xff] }
 0x483   : > { %2891 = vmatpush1.bf16.xpose.msra.mxu1 %v2858_v33  ;;  %v2865_v13 = vpack.c.bf16 %v2819_v9, %v2817_v14  ;;  %v2823_v33 = vmul.f32 %v4502_v25, %v6196_v51  ;;  %v2822_v56 = vmul.f32 %v4502_v25, %v6192_v63  ;;  %v8008_v63 = vld [vmem:[#allocation62_spill] sm:$0xff]  ;;  %v8011_v14 = vld [vmem:[#allocation15_spill] sm:$0xff]  ;;  %v8013_v25 = vld [vmem:[#allocation17_spill] sm:$0xff] }
 0x484   : > { %2892 = vmatprep.subr.bf16.mxu1 %v2861_v49  ;;  %v1565_v30 = vadd.f32 %v8009_v60, %v8008_v63  ;;  %v8025_v60 = vld [vmem:[#allocation97_spill] sm:$0xff] }
 0x485   : > { %v4504_v49 = vpop.eup %4503  ;;  %v2867_v19 = vpack.c.bf16 %v2823_v33, %v2821_v5  ;;  %v8015_v5 = vld [vmem:[#allocation64_spill] sm:$0xff] }
 0x486   : > { %v6438_v24 = vpop.xlane.xlu1 %2735  ;;  %v4506_v57 = vpop.eup %4505 }
 0x48a   : > { %v6444_v54 = vpop.xlane.xlu1 %2741 }
 0x48b   : > { %2750 = vadd.xlane.f32.xlu0 %v2749_v4  ;;  %2893 = vmatpush1.bf16.xpose.msra.mxu1 %v2860_v16  ;;  %v1559_v4 = vadd.f32 %v8007_v11, %v8006_v55  ;;  %v2825_v16 = vmul.f32 %v4504_v49, %v6206_v42  ;;  %v2826_v42 = vmul.f32 %v4506_v57, %v6208_v20 }
 0x48c   : > { %2894 = vmatprep.subr.bf16.mxu1 %v2863_v52  ;;  %v4508_v52 = vpop.eup %4507 }
 0x48d   : > { %v2829_v27 = vmul.f32 %v4508_v52, %v6218_v36  ;;  %v2828_v20 = vmul.f32 %v4508_v52, %v6216_v1  ;;  %v8021_v1 = vld [vmem:[#allocation92_spill] sm:$0xff] }
 0x48e   : > { %v836_v39 = vpop.permute.xlu1 %835 }
 0x48f   : > { %v6459_v40 = vadd.f32 %v6270_v47, %v836_v39  ;;  %v6462_v48 = vadd.f32 %v6272_v18, %v836_v39  ;;  %v2816_v47 = vmul.f32 %v4496_v26, %v6174_v43  ;;  %v2727_v18 = vpop.xlane.xlu0 %2726  ;;  %v2820_v43 = vmul.f32 %v4500_v0, %v6188_v62 }
 0x490   : > { %4509 = vrcp.f32 %v2727_v18  ;;  %v2827_v26 = vmul.f32 %v4506_v57, %v6210_v32  ;;  %v2824_v39 = vmul.f32 %v4504_v49, %v6202_v12  ;;  %v8010_v32 = vld [vmem:[#allocation59_spill] sm:$0xff] }
 0x491   : > { %v2864_v2 = vpack.c.bf16 %v2818_v44, %v2816_v47  ;;  %4511 = vrcp.f32 %v6430_v59  ;;  %v2866_v62 = vpack.c.bf16 %v2822_v56, %v2820_v43  ;;  %v1569_v59 = vadd.f32 %v8011_v14, %v8010_v32  ;;  %v8014_v18 = vld [vmem:[#allocation91_spill] sm:$0xff]  ;;  %v8020_v43 = vld [vmem:[#allocation21_spill] sm:$0xff] }
 0x492   : > { %v2869_v29 = vpack.c.bf16 %v2827_v26, %v2825_v16  ;;  %v8018_v49 = vld [vmem:[#allocation95_spill] sm:$0xff]  ;;  %v8023_v26 = vld [vmem:[#allocation70_spill] sm:$0xff]  ;;  %v8027_v14 = vld [vmem:[#allocation77_spill] sm:$0xff] }
 0x493   : > { %2895 = vmatpush1.bf16.xpose.msra.mxu1 %v2862_v46  ;;  %v2733_v51 = vpop.xlane.xlu0 %2732  ;;  %v2868_v46 = vpack.c.bf16 %v2826_v42, %v2824_v39  ;;  %v8019_v57 = vld [vmem:[#allocation71_spill] sm:$0xff] }
 0x494   : > { %2896 = vmatprep.subr.bf16.mxu1 %v2865_v13  ;;  %4513 = vrcp.f32 %v2733_v51  ;;  %v8012_v13 = vld [vmem:[#allocation65_spill] sm:$0xff]  ;;  %v1585_v56 = vadd.f32 %v8020_v43, %v8019_v57  ;;  %v8037_v43 = vld [vmem:[#allocation27_spill] sm:$0xff] }
 0x495   : > { %4515 = vrcp.f32 %v6438_v24  ;;  %v1575_v47 = vadd.f32 %v8013_v25, %v8012_v13  ;;  %v8017_v24 = vld [vmem:[#allocation93_spill] sm:$0xff]  ;;  %v8030_v25 = vld [vmem:[#allocation96_spill] sm:$0xff] }
 0x497   : > { %v2739_v9 = vpop.xlane.xlu0 %2738 }
 0x498   : > { %4517 = vrcp.f32 %v2739_v9 }
 0x499   : > { %4519 = vrcp.f32 %v6444_v54  ;;  %v8033_v54 = vld [vmem:[#allocation10_spill] sm:$0xff] }
 0x49a   : > { %v4510_v8 = vpop.eup %4509 }
 0x49b   : > { %2897 = vmatpush1.bf16.xpose.msra.mxu1 %v2864_v2  ;;  %v2831_v50 = vmul.f32 %v4510_v8, %v6224_v17  ;;  %v4512_v0 = vpop.eup %4511  ;;  %v2830_v36 = vmul.f32 %v4510_v8, %v8014_v18  ;;  %v8016_v17 = vld [vmem:[#allocation19_spill] sm:$0xff]  ;;  %v6509_v39 = vpop.permute.xlu0 %630 }
 0x49c   : > { %2047 = vxpose.xlu1.b32.start [1/16] %v1555_v23, 128  ;;  %2898 = vmatprep.subr.bf16.mxu1 %v2867_v19  ;;  %v1579_v33 = vadd.f32 %v8016_v17, %v8015_v5  ;;  %v2833_v2 = vmul.f32 %v4512_v0, %v8017_v24  ;;  %v2832_v51 = vmul.f32 %v4512_v0, %v8021_v1  ;;  %v8032_v18 = vld [vmem:[#allocation75_spill] sm:$0xff] }
 0x49d   : > { %v2871_v12 = vpack.c.bf16 %v2831_v50, %v2829_v27  ;;  %v2870_v23 = vpack.c.bf16 %v2830_v36, %v2828_v20  ;;  %v1557_v36 = vadd.f32 %v8033_v54, %v8006_v55  ;;  %v8038_v55 = vld [vmem:[#allocation114_spill] sm:$0xff]  ;;  %v8048_v54 = vld [vmem:[#allocation116_spill] sm:$0xff] }
 0x49e   : > { %v4514_v44 = vpop.eup %4513 }
 0x49f   : > { %v2835_v41 = vmul.f32 %v4514_v44, %v8018_v49  ;;  %v4516_v19 = vpop.eup %4515  ;;  %v8035_v49 = vld [vmem:[#allocation12_spill] sm:$0xff] }
 0x4a0   : > { %2048 = vxpose.xlu1.b32.cont [2/16] %v1559_v4, 128 }
 0x4a1   : > { %790 = vperm.xlu0 %4189, %v444_v21   ;;  %v2873_v11 = vpack.c.bf16 %v2835_v41, %v2833_v2  ;;  %v8022_v21 = vld [vmem:[#allocation94_spill] sm:$0xff]  ;;  %v1563_v41 = vadd.f32 %v8035_v49, %v8008_v63 }
 0x4a2   : > { %v4518_v4 = vpop.eup %4517  ;;  %v2834_v16 = vmul.f32 %v4514_v44, %v8022_v21  ;;  %v8039_v21 = vld [vmem:[#allocation113_spill] sm:$0xff] }
 0x4a3   : > { %2899 = vmatpush1.bf16.xpose.msra.mxu1 %v2866_v62  ;;  %v8024_v62 = vld [vmem:[#allocation23_spill] sm:$0xff]  ;;  %v4520_v2 = vpop.eup %4519 }
 0x4a4   : > { %2049 = vxpose.xlu1.b32.cont [3/16] %v1565_v30, 128  ;;  %2900 = vmatprep.subr.bf16.mxu1 %v2869_v29  ;;  %v1589_v52 = vadd.f32 %v8024_v62, %v8023_v26  ;;  %v2837_v30 = vmul.f32 %v4516_v19, %v8025_v60  ;;  %v8026_v29 = vld [vmem:[#allocation112_spill] sm:$0xff]  ;;  %v2872_v42 = vpack.c.bf16 %v2834_v16, %v2832_v51 }
 0x4a5   : > { %v2839_v8 = vmul.f32 %v4518_v4, %v8026_v29  ;;  %v2841_v1 = vmul.f32 %v4520_v2, %v8038_v55  ;;  %v2840_v16 = vmul.f32 %v4520_v2, %v8039_v21  ;;  %v8040_v29 = vld [vmem:[#allocation14_spill] sm:$0xff]  ;;  %v8055_v21 = vld [vmem:[#allocation33_spill] sm:$0xff] }
 0x4a7   : > { %v2875_v27 = vpack.c.bf16 %v2839_v8, %v2837_v30 }
 0x4a8   : > { %2050 = vxpose.xlu1.b32.cont [4/16] %v1569_v59, 128  ;;  %v8028_v59 = vld [vmem:[#allocation25_spill] sm:$0xff] }
 0x4a9   : > { %v1595_v9 = vadd.f32 %v8028_v59, %v8027_v14  ;;  %v8041_v59 = vld [vmem:[#allocation104_spill] sm:$0xff] }
 0x4ab   : > { %2901 = vmatpush1.bf16.xpose.msra.mxu1 %v2868_v46  ;;  %v8029_v46 = vld [vmem:[#allocation8_spill] sm:$0xff] }
 0x4ac   : > { %2051 = vxpose.xlu1.b32.cont [5/16] %v1575_v47, 128  ;;  %2902 = vmatprep.subr.bf16.mxu1 %v2871_v12  ;;  %v1553_v0 = vadd.f32 %v8029_v46, %v8004_v34  ;;  %v2836_v47 = vmul.f32 %v4516_v19, %v8030_v25  ;;  %v8031_v12 = vld [vmem:[#allocation111_spill] sm:$0xff]  ;;  %v8034_v34 = vld [vmem:[#allocation82_spill] sm:$0xff]  ;;  %v8036_v19 = vld [vmem:[#allocation105_spill] sm:$0xff] }
 0x4ad   : > { %v2838_v44 = vmul.f32 %v4518_v4, %v8031_v12  ;;  %v8044_v46 = vld [vmem:[#allocation37_spill] sm:$0xff] }
 0x4af   : > { %v2874_v17 = vpack.c.bf16 %v2838_v44, %v2836_v47  ;;  %v8046_v47 = vld [vmem:[#allocation39_spill] sm:$0xff]  ;;  %v8047_v44 = vld [vmem:[#allocation16_spill] sm:$0xff] }
 0x4b0   : > { %2052 = vxpose.xlu1.b32.cont [6/16] %v1579_v33, 128 }
 0x4b3   : > { %2903 = vmatpush1.bf16.xpose.msra.mxu1 %v2870_v23 }
 0x4b4   : > { %2053 = vxpose.xlu1.b32.cont [7/16] %v1585_v56, 128  ;;  %2904 = vmatprep.subr.bf16.mxu1 %v2873_v11  ;;  %v1609_v56 = vadd.f32 %v8037_v43, %v8036_v19  ;;  %v8051_v43 = vld [vmem:[#allocation41_spill] sm:$0xff] }
 0x4b8   : > { %2054 = vxpose.xlu1.b32.cont [8/16] %v1589_v52, 128 }
 0x4bb   : > { %2905 = vmatpush1.bf16.xpose.msra.mxu1 %v2872_v42  ;;  %v2745_v50 = vpop.xlane.xlu0 %2744 }
 0x4bc   : > { %4521 = vrcp.f32 %v2745_v50  ;;  %2055 = vxpose.xlu1.b32.cont [9/16] %v1595_v9, 128  ;;  %2906 = vmatprep.subr.bf16.mxu1 %v2875_v27  ;;  %v8043_v27 = vld [vmem:[#allocation36_spill] sm:$0xff] }
 0x4bf   : > { %v6518_v20 = vpop.xlane.xlu1 %2747  ;;  %2015 = vxpose.xlu0.b32.start [1/16] %v1553_v0, 128  ;;  %v8045_v0 = vld [vmem:[#allocation38_spill] sm:$0xff] }
 0x4c0   : > { %2056 = vxpose.xlu1.b32.cont [10/16] %v8032_v18, 128  ;;  %v1573_v18 = vadd.f32 %v8047_v44, %v8012_v13  ;;  %v8052_v13 = vld [vmem:[#allocation42_spill] sm:$0xff]  ;;  %v8061_v44 = vld [vmem:[#allocation35_spill] sm:$0xff]  ;;  %4523 = vrcp.f32 %v6518_v20 }
 0x4c3   : > { %v6523_v33 = vpop.permute.xlu1 %635  ;;  %2016 = vxpose.xlu0.b32.cont [2/16] %v1557_v36, 128  ;;  %2907 = vmatpush1.bf16.xpose.msra.mxu1 %v2874_v17  ;;  %v841_v24 = vpop.permute.xlu0 %840  ;;  %v8049_v36 = vld [vmem:[#allocation31_spill] sm:$0xff] }
 0x4c4   : > { %2057 = vxpose.xlu1.b32.cont [11/16] %v8034_v34, 128  ;;  %v6535_v52 = vadd.f32 %v6306_v38, %v841_v24  ;;  %v6538_v63 = vadd.f32 %v6311_v61, %v841_v24  ;;  %v1619_v17 = vadd.f32 %v8049_v36, %v8048_v54  ;;  %v8077_v36 = vld [vmem:[#allocation120_spill] sm:$0xff]  ;;  %v8078_v38 = vld [vmem:[#allocation74_spill] sm:$0xff] }
 0x4c5   : > { %v8096_v24 = vld [vmem:[#allocation68_spill] sm:$0xff] }
 0x4c6   : > { %v4522_v23 = vpop.eup %4521 }
 0x4c7   : > { %v846_v11 = vpop.permute.xlu1 %845  ;;  %2017 = vxpose.xlu0.b32.cont [3/16] %v1563_v41, 128  ;;  %v721_v4 = vpop.permute.xlu0 %720  ;;  %v2843_v51 = vmul.f32 %v4522_v23, %v6286_v7  ;;  %v2842_v62 = vmul.f32 %v4522_v23, %v6280_v53  ;;  %v1567_v7 = vadd.f32 %v8040_v29, %v8010_v32  ;;  %v8042_v53 = vld [vmem:[#allocation29_spill] sm:$0xff]  ;;  %v8050_v41 = vld [vmem:[#allocation40_spill] sm:$0xff] }
 0x4c8   : > { %v6541_v60 = vadd.f32 %v6316_v37, %v846_v11  ;;  %v6544_v30 = vadd.f32 %v6318_v28, %v846_v11  ;;  %2058 = vxpose.xlu1.b32.cont [12/16] %v1609_v56, 128  ;;  %v1615_v9 = vadd.f32 %v8042_v53, %v8041_v59  ;;  %v6555_v50 = vadd.f32 %v8043_v27, %v721_v4  ;;  %v8059_v27 = vld [vmem:[#allocation115_spill] sm:$0xff] }
 0x4c9   : > { %v2877_v8 = vpack.c.bf16 %v2843_v51, %v2841_v1  ;;  %v2876_v42 = vpack.c.bf16 %v2842_v62, %v2840_v16  ;;  %v6558_v32 = vadd.f32 %v8044_v46, %v721_v4  ;;  %v8053_v4 = vld [vmem:[#allocation43_spill] sm:$0xff]  ;;  %v8054_v1 = vld [vmem:[#allocation18_spill] sm:$0xff]  ;;  %v1625_v16 = vadd.f32 %v8055_v21, %v6509_v39 }
 0x4ca   : > { %v1577_v51 = vadd.f32 %v8054_v1, %v8015_v5  ;;  %v8064_v1 = vld [vmem:[#allocation46_spill] sm:$0xff] }
 0x4cb   : > { %v726_v37 = vpop.permute.xlu1 %725  ;;  %2018 = vxpose.xlu0.b32.cont [4/16] %v1567_v7, 128  ;;  %2908 = vmatprep.subr.bf16.mxu1 %v2877_v8  ;;  %v731_v28 = vpop.permute.xlu0 %730 }
 0x4cc   : > { %v6561_v25 = vadd.f32 %v8045_v0, %v726_v37  ;;  %v6564_v12 = vadd.f32 %v8046_v47, %v726_v37  ;;  %2059 = vxpose.xlu1.b32.cont [13/16] %v1615_v9, 128  ;;  %2909 = vmatpush1.bf16.xpose.msra.mxu1 %v2876_v42  ;;  %v6575_v23 = vadd.f32 %v8050_v41, %v731_v28  ;;  %v8056_v42 = vld [vmem:[#allocation100_spill] sm:$0xff]  ;;  %v8057_v9 = vld [vmem:[#allocation101_spill] sm:$0xff] }
 0x4cd   : > { %v6578_v56 = vadd.f32 %v8051_v43, %v731_v28  ;;  %v8058_v28 = vld [vmem:[#allocation106_spill] sm:$0xff]  ;;  %v8060_v0 = vld [vmem:[#allocation20_spill] sm:$0xff] }
 0x4ce   : > { %v1583_v47 = vadd.f32 %v8060_v0, %v8019_v57  ;;  %v8062_v41 = vld [vmem:[#allocation44_spill] sm:$0xff] }
 0x4cf   : > { %v736_v34 = vpop.permute.xlu1 %735  ;;  %2019 = vxpose.xlu0.b32.cont [5/16] %v1573_v18, 128  ;;  %v851_v49 = vpop.permute.xlu0 %850  ;;  %v1629_v18 = vadd.f32 %v8061_v44, %v6523_v33 }
 0x4d0   : > { %v6581_v11 = vadd.f32 %v8052_v13, %v736_v34  ;;  %v6584_v55 = vadd.f32 %v8053_v4, %v736_v34  ;;  %2060 = vxpose.xlu1.b32.cont [14/16] %v1619_v17, 128  ;;  %v6595_v53 = vadd.f32 %v8056_v42, %v851_v49  ;;  %v6598_v37 = vadd.f32 %v8057_v9, %v851_v49  ;;  %v8063_v13 = vld [vmem:[#allocation45_spill] sm:$0xff]  ;;  %v8084_v42 = vld [vmem:[#allocation58_spill] sm:$0xff] }
 0x4d3   : > { %v856_v7 = vpop.permute.xlu1 %855  ;;  %2020 = vxpose.xlu0.b32.cont [6/16] %v1577_v51, 128  ;;  %v741_v8 = vpop.permute.xlu0 %740  ;;  %v8065_v51 = vld [vmem:[#allocation47_spill] sm:$0xff] }
 0x4d4   : > { %v6601_v5 = vadd.f32 %v8058_v28, %v856_v7  ;;  %v6604_v46 = vadd.f32 %v8059_v27, %v856_v7  ;;  %2061 = vxpose.xlu1.b32.cont [15/16] %v1625_v16, 128  ;;  %v6615_v43 = vadd.f32 %v8062_v41, %v741_v8  ;;  %v6618_v4 = vadd.f32 %v8063_v13, %v741_v8  ;;  %v8066_v16 = vld [vmem:[#allocation22_spill] sm:$0xff]  ;;  %v8067_v27 = vld [vmem:[#allocation48_spill] sm:$0xff]  ;;  %v8070_v41 = vld [vmem:[#allocation51_spill] sm:$0xff] }
 0x4d5   : > { %v1587_v7 = vadd.f32 %v8066_v16, %v8023_v26  ;;  %v8071_v13 = vld [vmem:[#allocation24_spill] sm:$0xff]  ;;  %v8083_v16 = vld [vmem:[#allocation81_spill] sm:$0xff] }
 0x4d7   : > { %v746_v34 = vpop.permute.xlu1 %745  ;;  %2021 = vxpose.xlu0.b32.cont [7/16] %v1583_v47, 128  ;;  %v751_v49 = vpop.permute.xlu0 %750  ;;  %v8068_v47 = vld [vmem:[#allocation49_spill] sm:$0xff] }
 0x4d8   : > { %v6621_v57 = vadd.f32 %v8064_v1, %v746_v34  ;;  %v6624_v21 = vadd.f32 %v8065_v51, %v746_v34  ;;  %2062 = vxpose.xlu1.b32.end [16/16] %v1629_v18, 128  ;;  %v6633_v0 = vadd.f32 %v8067_v27, %v751_v49  ;;  %v6636_v44 = vadd.f32 %v8068_v47, %v751_v49  ;;  %v8069_v34 = vld [vmem:[#allocation50_spill] sm:$0xff]  ;;  %v8072_v49 = vld [vmem:[#allocation117_spill] sm:$0xff] }
 0x4d9   : > { %v1593_v1 = vadd.f32 %v8071_v13, %v8027_v14  ;;  %v8088_v13 = vld [vmem:[#allocation26_spill] sm:$0xff] }
 0x4da   : > { %v1607_v29 = vadd.f32 %v8088_v13, %v8036_v19  ;;  %v8093_v19 = vld [vmem:[#allocation28_spill] sm:$0xff] }
 0x4db   : > { %v756_v28 = vpop.permute.xlu1 %755  ;;  %2022 = vxpose.xlu0.b32.cont [8/16] %v1587_v7, 128  ;;  %v861_v8 = vpop.permute.xlu0 %860  ;;  %v1613_v13 = vadd.f32 %v8093_v19, %v8041_v59 }
 0x4dc   : > { %v6639_v18 = vadd.f32 %v8069_v34, %v756_v28  ;;  %v6642_v26 = vadd.f32 %v8070_v41, %v756_v28  ;;  %v6651_v47 = vadd.f32 %v8072_v49, %v861_v8  ;;  %v8074_v34 = vld [vmem:[#allocation118_spill] sm:$0xff]  ;;  %v8075_v28 = vld [vmem:[#allocation119_spill] sm:$0xff] }
 0x4dd   : > { %v6654_v17 = vadd.f32 %v8074_v34, %v861_v8  ;;  %v8080_v8 = vld [vmem:[#allocation54_spill] sm:$0xff] }
 0x4de   : > { %8073 = vst [vmem:[#allocation107_spill] sm:$0xff] %v6651_v47  ;;  %v8098_v47 = vld [vmem:[#allocation30_spill] sm:$0xff] }
 0x4df   : > { %v866_v7 = vpop.permute.xlu1 %865  ;;  %2023 = vxpose.xlu0.b32.cont [9/16] %v1593_v1, 128  ;;  %v761_v27 = vpop.permute.xlu0 %760  ;;  %v1617_v59 = vadd.f32 %v8098_v47, %v8048_v54 }
 0x4e0   : > { %v6657_v41 = vadd.f32 %v8075_v28, %v866_v7  ;;  %v6660_v14 = vadd.f32 %v8077_v36, %v866_v7  ;;  %v6668_v10 = vadd.f32 %v8079_v3, %v761_v27  ;;  %v6671_v34 = vadd.f32 %v8080_v8, %v761_v27  ;;  %v8081_v28 = vld [vmem:[#allocation55_spill] sm:$0xff]  ;;  %v8082_v36 = vld [vmem:[#allocation56_spill] sm:$0xff] }
 0x4e1   : > { %v8085_v27 = vld [vmem:[#allocation60_spill] sm:$0xff] }
 0x4e2   : > { %8076 = vst [vmem:[#allocation102_spill] sm:$0xff] %v6657_v41 }
 0x4e3   : > { %v766_v1 = vpop.permute.xlu1 %765  ;;  %2024 = vxpose.xlu0.b32.cont [10/16] %v8078_v38, 128  ;;  %v771_v49 = vpop.permute.xlu0 %770 }
 0x4e4   : > { %v6674_v51 = vadd.f32 %v8081_v28, %v766_v1  ;;  %v6677_v7 = vadd.f32 %v8082_v36, %v766_v1  ;;  %v6685_v9 = vadd.f32 %v8084_v42, %v771_v49  ;;  %v6688_v8 = vadd.f32 %v8085_v27, %v771_v49  ;;  %v8086_v28 = vld [vmem:[#allocation61_spill] sm:$0xff]  ;;  %v8087_v1 = vld [vmem:[#allocation63_spill] sm:$0xff] }
 0x4e7   : > { %v776_v38 = vpop.permute.xlu1 %775  ;;  %2025 = vxpose.xlu0.b32.cont [11/16] %v8083_v16, 128  ;;  %v871_v3 = vpop.permute.xlu0 %870 }
 0x4e8   : > { %v6691_v62 = vadd.f32 %v8086_v28, %v776_v38  ;;  %v6694_v36 = vadd.f32 %v8087_v1, %v776_v38  ;;  %v6703_v49 = vadd.f32 %v6392_v31, %v871_v3  ;;  %v6706_v27 = vadd.f32 %v6397_v45, %v871_v3  ;;  %v8092_v28 = vld [vmem:[#allocation108_spill] sm:$0xff]  ;;  %v8094_v45 = vld [vmem:[#allocation66_spill] sm:$0xff] }
 0x4ea   : > { %v2138_v16 = vpack.c.bf16 %v6694_v36, %v6688_v8  ;;  %8089 = vst [vmem:[#allocation103_spill] sm:$0xff] %v6703_v49  ;;  %8090 = vst [vmem:[#allocation109_spill] sm:$0xff] %v6706_v27  ;;  %v8095_v36 = vld [vmem:[#allocation67_spill] sm:$0xff]  ;;  %v8099_v8 = vld [vmem:[#allocation32_spill] sm:$0xff] }
 0x4eb   : > { %v876_v42 = vpop.permute.xlu1 %875  ;;  %2026 = vxpose.xlu0.b32.cont [12/16] %v1607_v29, 128  ;;  %v781_v61 = vpop.permute.xlu0 %780  ;;  %v1623_v27 = vadd.f32 %v8099_v8, %v6509_v39 }
 0x4ec   : > { %v6709_v38 = vadd.f32 %v6404_v35, %v876_v42  ;;  %v6712_v1 = vadd.f32 %v8092_v28, %v876_v42  ;;  %v1773_v3 = vadd.f32 %v8094_v45, %v781_v61  ;;  %v1775_v35 = vadd.f32 %v8095_v36, %v781_v61  ;;  %v8097_v42 = vld [vmem:[#allocation69_spill] sm:$0xff]  ;;  %v4524_v45 = vpop.eup %4523  ;;  %v8101_v36 = vld [vmem:[#allocation76_spill] sm:$0xff] }
 0x4ee   : > { %8091 = vst [vmem:[#allocation110_spill] sm:$0xff] %v6709_v38 }
 0x4ef   : > { %v786_v29 = vpop.permute.xlu1 %785  ;;  %2027 = vxpose.xlu0.b32.cont [13/16] %v1613_v13, 128  ;;  %v8100_v13 = vld [vmem:[#allocation34_spill] sm:$0xff] }
 0x4f0   : > { %v1777_v2 = vadd.f32 %v8096_v24, %v786_v29  ;;  %v1779_v28 = vadd.f32 %v8097_v42, %v786_v29  ;;  %v1627_v31 = vadd.f32 %v8100_v13, %v6523_v33  ;;  %v8104_v42 = vld [vmem:[#allocation73_spill] sm:$0xff]  ;;  %v8105_v33 = vld [vmem:[#allocation99_spill] sm:$0xff] }
 0x4f2   : > { %v2139_v19 = vpack.c.bf16 %v1777_v2, %v1773_v3  ;;  %v2140_v41 = vpack.c.bf16 %v1779_v28, %v1775_v35  ;;  %v8102_v2 = vld [vmem:[#allocation78_spill] sm:$0xff]  ;;  %v8103_v3 = vld [vmem:[#allocation72_spill] sm:$0xff] }
 0x4f3   : > { %2028 = vxpose.xlu0.b32.cont [14/16] %v1617_v59, 128  ;;  %v796_v24 = vpop.permute.xlu1 %795  ;;  %v8106_v59 = vld [vmem:[#allocation98_spill] sm:$0xff] }
 0x4f4   : > { %v1787_v54 = vadd.f32 %v8101_v36, %v796_v24  ;;  %v1789_v47 = vadd.f32 %v8102_v2, %v796_v24  ;;  %v2844_v13 = vmul.f32 %v4524_v45, %v8106_v59  ;;  %v8107_v24 = vpack.c.bf16 %v6564_v12, %v6558_v32  ;;  %v8109_v36 = vld [vmem:[#allocation79_spill] sm:$0xff]  ;;  %v8111_v2 = vld [vmem:[#allocation86_spill] sm:$0xff] }
 0x4f5   : > { %v8116_v32 = vpack.c.bf16 %v6581_v11, %v6575_v23  ;;  %v8117_v12 = vpack.c.bf16 %v6624_v21, %v6618_v4  ;;  %v8125_v23 = vpack.c.bf16 %v6642_v26, %v6636_v44  ;;  %v8127_v11 = vpack.c.bf16 %v6677_v7, %v6671_v34  ;;  %v8129_v4 = vld [vmem:[#allocation87_spill] sm:$0xff]  ;;  %v8140_v26 = vld [vmem:[#allocation102_spill] sm:$0xff] }
 0x4f6   : > { %v8134_v44 = vpack.c.bf16 %v6459_v40, %v6452_v58  ;;  %v8138_v58 = vpack.c.bf16 %v6601_v5, %v6595_v53  ;;  %v8139_v40 = vpack.c.bf16 %v6660_v14, %v6654_v17  ;;  %v8146_v34 = vld [vmem:[#allocation103_spill] sm:$0xff]  ;;  %v8148_v53 = vmov 0  }
 0x4f7   : > { %2029 = vxpose.xlu0.b32.cont [15/16] %v1623_v27, 128 }
 0x4fb   : > { %2030 = vxpose.xlu0.b32.end [16/16] %v1627_v31, 128  ;;  %v2845_v31 = vmul.f32 %v4524_v45, %v8105_v33 }
 0x518   : > { %v2751_v61 = vpop.xlane.xlu0 %2750 }
 0x519   : > { %4525 = vrcp.f32 %v2751_v61 }
 0x51c   : > { %v2063_v33 = vpop.trf.xlu1 }
 0x520   : > { %v791_v29 = vpop.permute.xlu0 %790  ;;  %v2064_v59 = vpop.trf.xlu1 }
 0x521   : > { %v1783_v35 = vadd.f32 %v8103_v3, %v791_v29  ;;  %v1785_v39 = vadd.f32 %v8104_v42, %v791_v29  ;;  %v8108_v29 = vld [vmem:[#allocation80_spill] sm:$0xff]  ;;  %v8122_v42 = vld [vmem:[#allocation89_spill] sm:$0xff] }
 0x523   : > { %v4526_v27 = vpop.eup %4525  ;;  %v2141_v8 = vpack.c.bf16 %v1787_v54, %v1783_v35  ;;  %v2142_v28 = vpack.c.bf16 %v1789_v47, %v1785_v39  ;;  %v8110_v54 = vpack.c.bf16 %v8108_v29, %v8109_v36  ;;  %v8112_v47 = vld [vmem:[#allocation85_spill] sm:$0xff]  ;;  %v8121_v35 = vld [vmem:[#allocation90_spill] sm:$0xff] }
 0x524   : > { %v2847_v20 = vmul.f32 %v4526_v27, %v6436_v15  ;;  %v2846_v61 = vmul.f32 %v4526_v27, %v6432_v22  ;;  %v8113_v3 = vpack.c.bf16 %v8111_v2, %v8112_v47  ;;  %v8114_v15 = vpack.c.bf16 %v6561_v25, %v6555_v50 }
 0x525   : > { %v8115_v22 = vpack.c.bf16 %v6584_v55, %v6578_v56  ;;  %v8123_v50 = vpack.c.bf16 %v8121_v35, %v8122_v42  ;;  %v8124_v25 = vpack.c.bf16 %v6621_v57, %v6615_v43  ;;  %v8126_v56 = vpack.c.bf16 %v6639_v18, %v6633_v0  ;;  %v8128_v55 = vld [vmem:[#allocation88_spill] sm:$0xff] }
 0x526   : > { %v2879_v49 = vpack.c.bf16 %v2847_v20, %v2845_v31  ;;  %v2878_v38 = vpack.c.bf16 %v2846_v61, %v2844_v13  ;;  %v8130_v21 = vpack.c.bf16 %v8128_v55, %v8129_v4  ;;  %v8131_v43 = vpack.c.bf16 %v6462_v48, %v6456_v6 }
 0x527   : > { %v8132_v57 = vpack.c.bf16 %v6674_v51, %v6668_v10  ;;  %v8133_v0 = vpack.c.bf16 %v6691_v62, %v6685_v9  ;;  %v8135_v18 = vpack.c.bf16 %v6544_v30, %v6538_v63  ;;  %v8136_v10 = vpack.c.bf16 %v6541_v60, %v6535_v52  ;;  %v8141_v51 = vld [vmem:[#allocation107_spill] sm:$0xff]  ;;  %v8143_v52 = vld [vmem:[#allocation109_spill] sm:$0xff] }
 0x528   : > { %2910 = vmatprep.subr.bf16.mxu1 %v2879_v49  ;;  %v8118_v49 = vld [vmem:[#allocation84_spill] sm:$0xff]  ;;  %v8137_v62 = vpack.c.bf16 %v6604_v46, %v6598_v37  ;;  %v8144_v60 = vpack.c.bf16 %v6712_v1, %v8143_v52  ;;  %v8145_v46 = vld [vmem:[#allocation110_spill] sm:$0xff] }
 0x529   : > { %2911 = vmatpush1.bf16.xpose.msra.mxu1 %v2878_v38  ;;  %v8119_v38 = vld [vmem:[#allocation83_spill] sm:$0xff]  ;;  %v8147_v7 = vpack.c.bf16 %v8145_v46, %v8146_v34  ;;  %v4725_v34 = vld [vmem:[%s5018_s11 + $0x30] sm:$0xff] }
 0x52a   : > { %2993 = vmatprep.subr.bf16.mxu1 %v8107_v24  ;;  %v8120_v45 = vpack.c.bf16 %v8118_v49, %v8119_v38  ;;  %v2065_v24 = vpop.trf.xlu1 }
 0x530   : > { %2913 = vmatmul.mubr.bf16.vlgmr.msra.gmra.mrb[64].mxu1 %v8110_v54  ;;  %v2066_v54 = vpop.trf.xlu1 }
 0x531   : > { %2922 = vmatprep.mubr.bf16.mxu1 %v8113_v3  ;;  %2994 = vmatpush1.bf16.msra.mxu1 %v8114_v15 }
 0x532   : > { %2995 = vmatprep.subr.bf16.mxu1 %v8115_v22  ;;  %v2096_v22 = vpack.c.bf16 %v2064_v59, %v2063_v33 }
 0x534   : > { %v2067_v47 = vpop.trf.xlu1 }
 0x535   : > { %2996 = vmatpush1.bf16.msra.mxu1 %v8116_v32 }
 0x536   : > { %2997 = vmatprep.subr.bf16.mxu1 %v8117_v12  ;;  %v2098_v12 = vpack.c.bf16 %v2066_v54, %v2065_v24 }
 0x538   : > { %2923 = vmatmul.mubr.bf16.gmra.mrb[68].mxu1 %v8120_v45  ;;  %v2068_v15 = vpop.trf.xlu1 }
 0x539   : > { %2932 = vmatprep.mubr.bf16.mxu1 %v8123_v50  ;;  %2998 = vmatpush1.bf16.msra.mxu1 %v8124_v25  ;;  %v2100_v45 = vpack.c.bf16 %v2068_v15, %v2067_v47  ;;  %v4733_v47 = vld [vmem:[%s5018_s11 + $0x70] sm:$0xff] }
 0x53a   : > { %2999 = vmatprep.subr.bf16.mxu1 %v8125_v23 }
 0x53c   : > { %v2069_v32 = vpop.trf.xlu1 }
 0x53d   : > { %3000 = vmatpush1.bf16.msra.mxu1 %v8126_v56 }
 0x53e   : > { %3001 = vmatprep.subr.bf16.mxu1 %v8127_v11 }
 0x53f   : > { %v2031_v6 = vpop.trf.xlu0 }
 0x540   : > { %2933 = vmatmul.mubr.bf16.gmra.mrb[72].mxu1 %v8130_v21  ;;  %v2070_v49 = vpop.trf.xlu1 }
 0x541   : > { %2942 = vmatprep.mubr.bf16.mxu1 %v8131_v43  ;;  %3002 = vmatpush1.bf16.msra.mxu1 %v8132_v57  ;;  %v2102_v42 = vpack.c.bf16 %v2070_v49, %v2069_v32  ;;  %v4735_v49 = vld [vmem:[%s5018_s11 + $0x80] sm:$0xff] }
 0x542   : > { %3003 = vmatprep.subr.bf16.mxu1 %v2138_v16 }
 0x543   : > { %v2032_v48 = vpop.trf.xlu0 }
 0x544   : > { %v2080_v17 = vpack.c.bf16 %v2032_v48, %v2031_v6  ;;  %v2071_v38 = vpop.trf.xlu1  ;;  %v4720_v48 = vld [vmem:[%s5018_s11 + $0x8] sm:$0xff] }
 0x545   : > { %3004 = vmatpush1.bf16.msra.mxu1 %v8133_v0 }
 0x546   : > { %3005 = vmatprep.subr.bf16.mxu1 %v2140_v41  ;;  %v8142_v41 = vpack.c.bf16 %v8140_v26, %v8141_v51  ;;  %v4723_v51 = vld [vmem:[%s5018_s11 + $0x20] sm:$0xff] }
 0x547   : > { %v2033_v9 = vpop.trf.xlu0 }
 0x548   : > { %2943 = vmatmul.mubr.bf16.gmra.mrb[76].mxu1 %v8134_v44  ;;  %v2072_v35 = vpop.trf.xlu1  ;;  %v4719_v44 = vld [vmem:[%s5018_s11] sm:$0xff] }
 0x549   : > { %2952 = vmatprep.mubr.bf16.mxu1 %v8135_v18  ;;  %3006 = vmatpush1.bf16.msra.mxu1 %v2139_v19  ;;  %v2104_v23 = vpack.c.bf16 %v2072_v35, %v2071_v38  ;;  %v4736_v35 = vld [vmem:[%s5018_s11 + $0x88] sm:$0xff] }
 0x54a   : > { %3007 = vmatprep.subr.bf16.mxu1 %v2142_v28 }
 0x54b   : > { %v2034_v63 = vpop.trf.xlu0 }
 0x54c   : > { %v2082_v16 = vpack.c.bf16 %v2034_v63, %v2033_v9  ;;  %v2073_v50 = vpop.trf.xlu1  ;;  %v4721_v9 = vld [vmem:[%s5018_s11 + $0x10] sm:$0xff]  ;;  %v4722_v63 = vld [vmem:[%s5018_s11 + $0x18] sm:$0xff] }
 0x54d   : > { %3008 = vmatpush1.bf16.msra.mxu1 %v2141_v8 }
 0x54f   : > { %v2035_v30 = vpop.trf.xlu0 }
 0x550   : > { %2953 = vmatmul.mubr.bf16.gmra.mrb[80].mxu1 %v8136_v10  ;;  %v2074_v25 = vpop.trf.xlu1 }
 0x551   : > { %2962 = vmatprep.mubr.bf16.mxu1 %v8137_v62  ;;  %v2106_v11 = vpack.c.bf16 %v2074_v25, %v2073_v50  ;;  %v4737_v25 = vld [vmem:[%s5018_s11 + $0x90] sm:$0xff] }
 0x553   : > { %v2036_v37 = vpop.trf.xlu0 }
 0x554   : > { %v2084_v1 = vpack.c.bf16 %v2036_v37, %v2035_v30  ;;  %v2075_v56 = vpop.trf.xlu1 }
 0x557   : > { %v2037_v5 = vpop.trf.xlu0 }
 0x558   : > { %2963 = vmatmul.mubr.bf16.gmra.mrb[84].mxu1 %v8138_v58  ;;  %v2076_v55 = vpop.trf.xlu1 }
 0x559   : > { %2972 = vmatprep.mubr.bf16.mxu1 %v8139_v40  ;;  %v2108_v21 = vpack.c.bf16 %v2076_v55, %v2075_v56 }
 0x55b   : > { %v2038_v14 = vpop.trf.xlu0 }
 0x55c   : > { %v2086_v8 = vpack.c.bf16 %v2038_v14, %v2037_v5  ;;  %v2077_v4 = vpop.trf.xlu1  ;;  %v4726_v5 = vld [vmem:[%s5018_s11 + $0x38] sm:$0xff] }
 0x55f   : > { %v2039_v19 = vpop.trf.xlu0 }
 0x560   : > { %2973 = vmatmul.mubr.bf16.gmra.mrb[88].mxu1 %v8142_v41  ;;  %v2078_v43 = vpop.trf.xlu1 }
 0x561   : > { %2982 = vmatprep.mubr.bf16.mxu1 %v8144_v60  ;;  %v2110_v57 = vpack.c.bf16 %v2078_v43, %v2077_v4  ;;  %v4724_v60 = vld [vmem:[%s5018_s11 + $0x28] sm:$0xff] }
 0x563   : > { %v2040_v39 = vpop.trf.xlu0 }
 0x564   : > { %v2088_v31 = vpack.c.bf16 %v2040_v39, %v2039_v19  ;;  %v4728_v39 = vld [vmem:[%s5018_s11 + $0x48] sm:$0xff] }
 0x567   : > { %v2041_v27 = vpop.trf.xlu0 }
 0x568   : > { %2983 = vmatmul.mubr.bf16.gmra.mrb[92].mxu1 %v8147_v7 }
 0x569   : > { %3025 = vmatprep.mubr.bf16.mxu1 %v8148_v53 }
 0x56b   : > { %v2042_v28 = vpop.trf.xlu0 }
 0x56c   : > { %v2090_v13 = vpack.c.bf16 %v2042_v28, %v2041_v27  ;;  %v4729_v28 = vld [vmem:[%s5018_s11 + $0x50] sm:$0xff] }
 0x56f   : > { %v2043_v20 = vpop.trf.xlu0 }
 0x570   : > { %3026 = vmatmul.mubr.bf16.vlgmr.msra.gmra.mrb[96].mxu1 %v2080_v17 }
 0x571   : > { %3035 = vmatprep.mubr.bf16.mxu1 %v8148_v53 }
 0x573   : > { %v2044_v61 = vpop.trf.xlu0 }
 0x574   : > { %v2092_v36 = vpack.c.bf16 %v2044_v61, %v2043_v20  ;;  %v4730_v20 = vld [vmem:[%s5018_s11 + $0x58] sm:$0xff]  ;;  %v4731_v61 = vld [vmem:[%s5018_s11 + $0x60] sm:$0xff] }
 0x577   : > { %v2045_v29 = vpop.trf.xlu0 }
 0x578   : > { %3036 = vmatmul.mubr.bf16.gmra.mrb[100].mxu1 %v2082_v16  ;;  %v4727_v16 = vld [vmem:[%s5018_s11 + $0x40] sm:$0xff] }
 0x579   : > { %3045 = vmatprep.mubr.bf16.mxu1 %v8148_v53 }
 0x57b   : > { %v2046_v2 = vpop.trf.xlu0 }
 0x57c   : > { %v2094_v3 = vpack.c.bf16 %v2046_v2, %v2045_v29 }
 0x580   : > { %3046 = vmatmul.mubr.bf16.gmra.mrb[104].mxu1 %v2084_v1 }
 0x581   : > { %3055 = vmatprep.mubr.bf16.mxu1 %v8148_v53 }
 0x588   : > { %3056 = vmatmul.mubr.bf16.gmra.mrb[108].mxu1 %v2086_v8 }
 0x589   : > { %3065 = vmatprep.mubr.bf16.mxu1 %v8148_v53 }
 0x590   : > { %3066 = vmatmul.mubr.bf16.gmra.mrb[112].mxu1 %v2088_v31 }
 0x591   : > { %3075 = vmatprep.mubr.bf16.mxu1 %v8148_v53 }
 0x598   : > { %3076 = vmatmul.mubr.bf16.gmra.mrb[116].mxu1 %v2090_v13 }
 0x599   : > { %3085 = vmatprep.mubr.bf16.mxu1 %v8148_v53 }
 0x5a0   : > { %3086 = vmatmul.mubr.bf16.gmra.mrb[120].mxu1 %v2092_v36  ;;  %v4732_v36 = vld [vmem:[%s5018_s11 + $0x68] sm:$0xff] }
 0x5a1   : > { %3095 = vmatprep.mubr.bf16.mxu1 %v8148_v53 }
 0x5a8   : > { %3096 = vmatmul.mubr.bf16.gmra.mrb[124].mxu1 %v2094_v3 }
 0x5a9   : > { %3105 = vmatprep.mubr.bf16.mxu1 %v8148_v53 }
 0x5b0   : > { %3106 = vmatmul.mubr.bf16.gmra.mrb[128].mxu1 %v2096_v22  ;;  %v4734_v22 = vld [vmem:[%s5018_s11 + $0x78] sm:$0xff] }
 0x5b1   : > { %3115 = vmatprep.mubr.bf16.mxu1 %v8148_v53 }
 0x5b8   : > { %3116 = vmatmul.mubr.bf16.gmra.mrb[132].mxu1 %v2098_v12 }
 0x5b9   : > { %3125 = vmatprep.mubr.bf16.mxu1 %v8148_v53 }
 0x5c0   : > { %3126 = vmatmul.mubr.bf16.gmra.mrb[136].mxu1 %v2100_v45 }
 0x5c1   : > { %3135 = vmatprep.mubr.bf16.mxu1 %v8148_v53 }
 0x5c8   : > { %3136 = vmatmul.mubr.bf16.gmra.mrb[140].mxu1 %v2102_v42 }
 0x5c9   : > { %3145 = vmatprep.mubr.bf16.mxu1 %v8148_v53 }
 0x5d0   : > { %3146 = vmatmul.mubr.bf16.gmra.mrb[144].mxu1 %v2104_v23 }
 0x5d1   : > { %3155 = vmatprep.mubr.bf16.mxu1 %v8148_v53 }
 0x5d8   : > { %3156 = vmatmul.mubr.bf16.gmra.mrb[148].mxu1 %v2106_v11  ;;  %v4738_v11 = vld [vmem:[%s5018_s11 + $0x98] sm:$0xff] }
 0x5d9   : > { %3165 = vmatprep.mubr.bf16.mxu1 %v8148_v53 }
 0x5e0   : > { %3166 = vmatmul.mubr.bf16.gmra.mrb[152].mxu1 %v2108_v21  ;;  %v4739_v21 = vld [vmem:[%s5018_s11 + $0xa0] sm:$0xff] }
 0x5e1   : > { %3175 = vmatprep.mubr.bf16.mxu1 %v8148_v53 }
 0x5e8   : > { %3176 = vmatmul.mubr.bf16.gmra.mrb[156].mxu1 %v2110_v57 }
 0x603   : > { %v2914_v0 = vpop.f32.mrb[64].mxu1 }
 0x604   : > { %v3811_v18 = vadd.f32 %v4719_v44, %v2914_v0  ;;  %v2916_v6 = vpop.f32.mrb[65].mxu1  ;;  %v4740_v0 = vld [vmem:[%s5018_s11 + $0xa8] sm:$0xff] }
 0x605   : > { %v3812_v10 = vadd.f32 %v4720_v48, %v2916_v6  ;;  %v2918_v62 = vpop.f32.mrb[66].mxu1  ;;  %v4741_v6 = vld [vmem:[%s5018_s11 + $0xb0] sm:$0xff] }
 0x606   : > { %3875 = vst [vmem:[%s6837_s17] sm:$0xff] %v3811_v18  ;;  %v3813_v58 = vadd.f32 %v4721_v9, %v2918_v62  ;;  %v2920_v40 = vpop.f32.mrb[67].mxu1  ;;  %v4742_v62 = vld [vmem:[%s5018_s11 + $0xb8] sm:$0xff] }
 0x607   : > { %3876 = vst [vmem:[%s6837_s17 + $0x8] sm:$0xff] %v3812_v10  ;;  %v3814_v30 = vadd.f32 %v4722_v63, %v2920_v40  ;;  %v4743_v40 = vld [vmem:[%s5018_s11 + $0xc0] sm:$0xff] }
 0x608   : > { %3877 = vst [vmem:[%s6837_s17 + $0x10] sm:$0xff] %v3813_v58 }
 0x609   : > { %3878 = vst [vmem:[%s6837_s17 + $0x18] sm:$0xff] %v3814_v30 }
 0x60b   : > { %v2924_v26 = vpop.f32.mrb[68].mxu1 }
 0x60c   : > { %v3815_v41 = vadd.f32 %v4723_v51, %v2924_v26  ;;  %v2926_v52 = vpop.f32.mrb[69].mxu1  ;;  %v4744_v26 = vld [vmem:[%s5018_s11 + $0xc8] sm:$0xff] }
 0x60d   : > { %v3816_v37 = vadd.f32 %v4724_v60, %v2926_v52  ;;  %v2928_v46 = vpop.f32.mrb[70].mxu1  ;;  %v4745_v52 = vld [vmem:[%s5018_s11 + $0xd0] sm:$0xff] }
 0x60e   : > { %3879 = vst [vmem:[%s6837_s17 + $0x20] sm:$0xff] %v3815_v41  ;;  %v3817_v7 = vadd.f32 %v4725_v34, %v2928_v46  ;;  %v2930_v53 = vpop.f32.mrb[71].mxu1  ;;  %v4746_v46 = vld [vmem:[%s5018_s11 + $0xd8] sm:$0xff] }
 0x60f   : > { %3880 = vst [vmem:[%s6837_s17 + $0x28] sm:$0xff] %v3816_v37  ;;  %v3818_v17 = vadd.f32 %v4726_v5, %v2930_v53  ;;  %v4747_v53 = vld [vmem:[%s5018_s11 + $0xe0] sm:$0xff] }
 0x610   : > { %3881 = vst [vmem:[%s6837_s17 + $0x30] sm:$0xff] %v3817_v7 }
 0x611   : > { %3882 = vst [vmem:[%s6837_s17 + $0x38] sm:$0xff] %v3818_v17 }
 0x613   : > { %v2934_v14 = vpop.f32.mrb[72].mxu1 }
 0x614   : > { %v3819_v19 = vadd.f32 %v4727_v16, %v2934_v14  ;;  %v2936_v1 = vpop.f32.mrb[73].mxu1  ;;  %v4748_v14 = vld [vmem:[%s5018_s11 + $0xe8] sm:$0xff] }
 0x615   : > { %v3820_v27 = vadd.f32 %v4728_v39, %v2936_v1  ;;  %v2938_v8 = vpop.f32.mrb[74].mxu1  ;;  %v4749_v1 = vld [vmem:[%s5018_s11 + $0xf0] sm:$0xff] }
 0x616   : > { %3883 = vst [vmem:[%s6837_s17 + $0x40] sm:$0xff] %v3819_v19  ;;  %v3821_v33 = vadd.f32 %v4729_v28, %v2938_v8  ;;  %v2940_v31 = vpop.f32.mrb[75].mxu1  ;;  %v4750_v8 = vld [vmem:[%s5018_s11 + $0xf8] sm:$0xff] }
 0x617   : > { %3884 = vst [vmem:[%s6837_s17 + $0x48] sm:$0xff] %v3820_v27  ;;  %v3822_v59 = vadd.f32 %v4730_v20, %v2940_v31 }
 0x618   : > { %3885 = vst [vmem:[%s6837_s17 + $0x50] sm:$0xff] %v3821_v33 }
 0x619   : > { %3886 = vst [vmem:[%s6837_s17 + $0x58] sm:$0xff] %v3822_v59 }
 0x61b   : > { %v2944_v13 = vpop.f32.mrb[76].mxu1 }
 0x61c   : > { %v3823_v24 = vadd.f32 %v4731_v61, %v2944_v13  ;;  %v2946_v29 = vpop.f32.mrb[77].mxu1 }
 0x61d   : > { %v3824_v54 = vadd.f32 %v4732_v36, %v2946_v29  ;;  %v2948_v2 = vpop.f32.mrb[78].mxu1 }
 0x61e   : > { %3887 = vst [vmem:[%s6837_s17 + $0x60] sm:$0xff] %v3823_v24  ;;  %v3825_v3 = vadd.f32 %v4733_v47, %v2948_v2  ;;  %v2950_v15 = vpop.f32.mrb[79].mxu1 }
 0x61f   : > { %3888 = vst [vmem:[%s6837_s17 + $0x68] sm:$0xff] %v3824_v54  ;;  %v3826_v32 = vadd.f32 %v4734_v22, %v2950_v15 }
 0x620   : > { %3889 = vst [vmem:[%s6837_s17 + $0x70] sm:$0xff] %v3825_v3 }
 0x621   : > { %3890 = vst [vmem:[%s6837_s17 + $0x78] sm:$0xff] %v3826_v32 }
 0x623   : > { %v2954_v12 = vpop.f32.mrb[80].mxu1 }
 0x624   : > { %v3827_v38 = vadd.f32 %v4735_v49, %v2954_v12  ;;  %v2956_v45 = vpop.f32.mrb[81].mxu1 }
 0x625   : > { %v3828_v42 = vadd.f32 %v4736_v35, %v2956_v45  ;;  %v2958_v50 = vpop.f32.mrb[82].mxu1 }
 0x626   : > { %3891 = vst [vmem:[%s6837_s17 + $0x80] sm:$0xff] %v3827_v38  ;;  %v3829_v23 = vadd.f32 %v4737_v25, %v2958_v50  ;;  %v2960_v56 = vpop.f32.mrb[83].mxu1 }
 0x627   : > { %3892 = vst [vmem:[%s6837_s17 + $0x88] sm:$0xff] %v3828_v42  ;;  %v3830_v55 = vadd.f32 %v4738_v11, %v2960_v56 }
 0x628   : > { %3893 = vst [vmem:[%s6837_s17 + $0x90] sm:$0xff] %v3829_v23 }
 0x629   : > { %3894 = vst [vmem:[%s6837_s17 + $0x98] sm:$0xff] %v3830_v55 }
 0x62b   : > { %v2964_v4 = vpop.f32.mrb[84].mxu1 }
 0x62c   : > { %v3831_v43 = vadd.f32 %v4739_v21, %v2964_v4  ;;  %v2966_v57 = vpop.f32.mrb[85].mxu1 }
 0x62d   : > { %v3832_v44 = vadd.f32 %v4740_v0, %v2966_v57  ;;  %v2968_v18 = vpop.f32.mrb[86].mxu1 }
 0x62e   : > { %3895 = vst [vmem:[%s6837_s17 + $0xa0] sm:$0xff] %v3831_v43  ;;  %v3833_v48 = vadd.f32 %v4741_v6, %v2968_v18  ;;  %v2970_v10 = vpop.f32.mrb[87].mxu1 }
 0x62f   : > { %3896 = vst [vmem:[%s6837_s17 + $0xa8] sm:$0xff] %v3832_v44  ;;  %v3834_v9 = vadd.f32 %v4742_v62, %v2970_v10 }
 0x630   : > { %3897 = vst [vmem:[%s6837_s17 + $0xb0] sm:$0xff] %v3833_v48 }
 0x631   : > { %3898 = vst [vmem:[%s6837_s17 + $0xb8] sm:$0xff] %v3834_v9 }
 0x633   : > { %v2974_v58 = vpop.f32.mrb[88].mxu1 }
 0x634   : > { %v3835_v63 = vadd.f32 %v4743_v40, %v2974_v58  ;;  %v2976_v30 = vpop.f32.mrb[89].mxu1 }
 0x635   : > { %v3836_v51 = vadd.f32 %v4744_v26, %v2976_v30  ;;  %v2978_v41 = vpop.f32.mrb[90].mxu1 }
 0x636   : > { %3899 = vst [vmem:[%s6837_s17 + $0xc0] sm:$0xff] %v3835_v63  ;;  %v3837_v60 = vadd.f32 %v4745_v52, %v2978_v41  ;;  %v2980_v37 = vpop.f32.mrb[91].mxu1 }
 0x637   : > { %3900 = vst [vmem:[%s6837_s17 + $0xc8] sm:$0xff] %v3836_v51  ;;  %v3838_v34 = vadd.f32 %v4746_v46, %v2980_v37 }
 0x638   : > { %3901 = vst [vmem:[%s6837_s17 + $0xd0] sm:$0xff] %v3837_v60 }
 0x639   : > { %3902 = vst [vmem:[%s6837_s17 + $0xd8] sm:$0xff] %v3838_v34 }
 0x63b   : > { %v2984_v7 = vpop.f32.mrb[92].mxu1 }
 0x63c   : > { %v3839_v5 = vadd.f32 %v4747_v53, %v2984_v7  ;;  %v2986_v17 = vpop.f32.mrb[93].mxu1 }
 0x63d   : > { %v3840_v16 = vadd.f32 %v4748_v14, %v2986_v17  ;;  %v2988_v19 = vpop.f32.mrb[94].mxu1 }
 0x63e   : > { %3903 = vst [vmem:[%s6837_s17 + $0xe0] sm:$0xff] %v3839_v5  ;;  %v3841_v39 = vadd.f32 %v4749_v1, %v2988_v19  ;;  %v2990_v27 = vpop.f32.mrb[95].mxu1 }
 0x63f   : > { %3904 = vst [vmem:[%s6837_s17 + $0xe8] sm:$0xff] %v3840_v16  ;;  %v3842_v28 = vadd.f32 %v4750_v8, %v2990_v27 }
 0x640   : > { %3905 = vst [vmem:[%s6837_s17 + $0xf0] sm:$0xff] %v3841_v39 }
 0x641   : > { %3906 = vst [vmem:[%s6837_s17 + $0xf8] sm:$0xff] %v3842_v28 }
 0x643   : > { %v6901_v33 = vpop.f32.mrb[96].mxu1 }
 0x644   : > { %v6903_v31 = vpop.f32.mrb[97].mxu1 }
 0x645   : > { %v3186_v20 = vmax.f32 %v6901_v33, %v6903_v31  ;;  %v6907_v59 = vpop.f32.mrb[98].mxu1 }
 0x646   : > { %v6909_v13 = vpop.f32.mrb[99].mxu1 }
 0x647   : > { %v3189_v61 = vmax.f32 %v6907_v59, %v6909_v13  ;;  %3187 = vmax.xlane.f32.xlu0 %v3186_v20 }
 0x649   : > { %3190 = vmax.xlane.f32.xlu1 %v3189_v61 }
 0x64b   : > { %v6913_v24 = vpop.f32.mrb[100].mxu1 }
 0x64c   : > { %v6915_v29 = vpop.f32.mrb[101].mxu1 }
 0x64d   : > { %v3192_v36 = vmax.f32 %v6913_v24, %v6915_v29  ;;  %v6919_v54 = vpop.f32.mrb[102].mxu1 }
 0x64e   : > { %v6921_v2 = vpop.f32.mrb[103].mxu1 }
 0x64f   : > { %3193 = vmax.xlane.f32.xlu0 %v3192_v36  ;;  %v3195_v47 = vmax.f32 %v6919_v54, %v6921_v2 }
 0x653   : > { %3196 = vmax.xlane.f32.xlu0 %v3195_v47  ;;  %v6925_v3 = vpop.f32.mrb[104].mxu1 }
 0x654   : > { %v6927_v15 = vpop.f32.mrb[105].mxu1 }
 0x655   : > { %v3198_v22 = vmax.f32 %v6925_v3, %v6927_v15  ;;  %v6931_v32 = vpop.f32.mrb[106].mxu1 }
 0x656   : > { %v6933_v12 = vpop.f32.mrb[107].mxu1 }
 0x657   : > { %v3201_v49 = vmax.f32 %v6931_v32, %v6933_v12  ;;  %3199 = vmax.xlane.f32.xlu1 %v3198_v22 }
 0x659   : > { %3202 = vmax.xlane.f32.xlu0 %v3201_v49 }
 0x65b   : > { %v6937_v38 = vpop.f32.mrb[108].mxu1 }
 0x65c   : > { %v6939_v45 = vpop.f32.mrb[109].mxu1 }
 0x65d   : > { %v3204_v35 = vmax.f32 %v6937_v38, %v6939_v45  ;;  %v6943_v42 = vpop.f32.mrb[110].mxu1 }
 0x65e   : > { %v6945_v50 = vpop.f32.mrb[111].mxu1 }
 0x65f   : > { %v3207_v25 = vmax.f32 %v6943_v42, %v6945_v50  ;;  %3205 = vmax.xlane.f32.xlu1 %v3204_v35 }
 0x661   : > { %3208 = vmax.xlane.f32.xlu0 %v3207_v25 }
 0x663   : > { %v6949_v23 = vpop.f32.mrb[112].mxu1 }
 0x664   : > { %v6951_v56 = vpop.f32.mrb[113].mxu1 }
 0x665   : > { %v3210_v11 = vmax.f32 %v6949_v23, %v6951_v56  ;;  %v6955_v55 = vpop.f32.mrb[114].mxu1 }
 0x666   : > { %v6957_v4 = vpop.f32.mrb[115].mxu1 }
 0x667   : > { %v3213_v21 = vmax.f32 %v6955_v55, %v6957_v4  ;;  %3211 = vmax.xlane.f32.xlu1 %v3210_v11 }
 0x669   : > { %3214 = vmax.xlane.f32.xlu0 %v3213_v21 }
 0x66b   : > { %v6961_v43 = vpop.f32.mrb[116].mxu1 }
 0x66c   : > { %v6963_v57 = vpop.f32.mrb[117].mxu1 }
 0x66d   : > { %v3216_v0 = vmax.f32 %v6961_v43, %v6963_v57  ;;  %v6967_v44 = vpop.f32.mrb[118].mxu1 }
 0x66e   : > { %v6969_v18 = vpop.f32.mrb[119].mxu1 }
 0x66f   : > { %v3219_v6 = vmax.f32 %v6967_v44, %v6969_v18  ;;  %3217 = vmax.xlane.f32.xlu1 %v3216_v0 }
 0x671   : > { %3220 = vmax.xlane.f32.xlu0 %v3219_v6 }
 0x673   : > { %v6973_v48 = vpop.f32.mrb[120].mxu1 }
 0x674   : > { %v6975_v10 = vpop.f32.mrb[121].mxu1 }
 0x675   : > { %v3222_v62 = vmax.f32 %v6973_v48, %v6975_v10  ;;  %v6979_v9 = vpop.f32.mrb[122].mxu1 }
 0x676   : > { %v6981_v58 = vpop.f32.mrb[123].mxu1 }
 0x677   : > { %v3225_v40 = vmax.f32 %v6979_v9, %v6981_v58  ;;  %3223 = vmax.xlane.f32.xlu1 %v3222_v62 }
 0x679   : > { %3226 = vmax.xlane.f32.xlu0 %v3225_v40  ;;  %v4313_v40 = vld [vmem:[%s7765_s1 + $0x280] ss:$8 sps:$4 sm:$0xff]  }
 0x67b   : > { %v6985_v63 = vpop.f32.mrb[124].mxu1 }
 0x67c   : > { %v6987_v30 = vpop.f32.mrb[125].mxu1 }
 0x67d   : > { %v3228_v26 = vmax.f32 %v6985_v63, %v6987_v30  ;;  %v6991_v51 = vpop.f32.mrb[126].mxu1 }
 0x67e   : > { %v6993_v41 = vpop.f32.mrb[127].mxu1 }
 0x67f   : > { %v3231_v52 = vmax.f32 %v6991_v51, %v6993_v41  ;;  %3229 = vmax.xlane.f32.xlu1 %v3228_v26 }
 0x681   : > { %3232 = vmax.xlane.f32.xlu0 %v3231_v52 }
 0x683   : > { %v6997_v60 = vpop.f32.mrb[128].mxu1 }
 0x684   : > { %v6999_v37 = vpop.f32.mrb[129].mxu1 }
 0x685   : > { %v3234_v46 = vmax.f32 %v6997_v60, %v6999_v37  ;;  %v7003_v34 = vpop.f32.mrb[130].mxu1 }
 0x686   : > { %v7005_v7 = vpop.f32.mrb[131].mxu1 }
 0x687   : > { %v3237_v53 = vmax.f32 %v7003_v34, %v7005_v7  ;;  %3235 = vmax.xlane.f32.xlu1 %v3234_v46 }
 0x689   : > { %3238 = vmax.xlane.f32.xlu0 %v3237_v53 }
 0x68b   : > { %v7009_v5 = vpop.f32.mrb[132].mxu1 }
 0x68c   : > { %v7011_v17 = vpop.f32.mrb[133].mxu1 }
 0x68d   : > { %8149 = vst [vmem:[#allocation52_spill] sm:$0xff] %v7011_v17  ;;  %v3240_v14 = vmax.f32 %v7009_v5, %v7011_v17  ;;  %v7015_v16 = vpop.f32.mrb[134].mxu1 }
 0x68e   : > { %8150 = vst [vmem:[#allocation9_spill] sm:$0xff] %v7015_v16  ;;  %v7017_v19 = vpop.f32.mrb[135].mxu1 }
 0x68f   : > { %8151 = vst [vmem:[#allocation57_spill] sm:$0xff] %v7017_v19  ;;  %v3243_v1 = vmax.f32 %v7015_v16, %v7017_v19  ;;  %3241 = vmax.xlane.f32.xlu1 %v3240_v14  ;;  %v4322_v19 = vld [vmem:[%s7765_s1 + $0x2b0] ss:$8 sps:$4 sm:$0xff]  }
 0x691   : > { %3244 = vmax.xlane.f32.xlu0 %v3243_v1  ;;  %v4314_v1 = vld [vmem:[%s7765_s1 + $0x294] ss:$8 sps:$4 sm:$0xff]  }
 0x693   : > { %v7021_v39 = vpop.f32.mrb[136].mxu1 }
 0x694   : > { %8152 = vst [vmem:[#allocation11_spill] sm:$0xff] %v7021_v39  ;;  %v7023_v27 = vpop.f32.mrb[137].mxu1 }
 0x695   : > { %8153 = vst [vmem:[#allocation62_spill] sm:$0xff] %v7023_v27  ;;  %v3246_v8 = vmax.f32 %v7021_v39, %v7023_v27  ;;  %v7027_v28 = vpop.f32.mrb[138].mxu1 }
 0x696   : > { %8154 = vst [vmem:[#allocation13_spill] sm:$0xff] %v7027_v28  ;;  %v7029_v20 = vpop.f32.mrb[139].mxu1 }
 0x697   : > { %8155 = vst [vmem:[#allocation59_spill] sm:$0xff] %v7029_v20  ;;  %v3249_v61 = vmax.f32 %v7027_v28, %v7029_v20  ;;  %3247 = vmax.xlane.f32.xlu1 %v3246_v8 }
 0x699   : > { %3250 = vmax.xlane.f32.xlu0 %v3249_v61 }
 0x69b   : > { %v7033_v36 = vpop.f32.mrb[140].mxu1 }
 0x69c   : > { %8156 = vst [vmem:[#allocation15_spill] sm:$0xff] %v7033_v36  ;;  %v7035_v47 = vpop.f32.mrb[141].mxu1 }
 0x69d   : > { %8157 = vst [vmem:[#allocation65_spill] sm:$0xff] %v7035_v47  ;;  %v3252_v22 = vmax.f32 %v7033_v36, %v7035_v47  ;;  %v7039_v49 = vpop.f32.mrb[142].mxu1  ;;  %v4316_v47 = vld [vmem:[%s7765_s1 + $0x290] ss:$8 sps:$4 sm:$0xff]  }
 0x69e   : > { %8158 = vst [vmem:[#allocation17_spill] sm:$0xff] %v7039_v49  ;;  %v7041_v35 = vpop.f32.mrb[143].mxu1 }
 0x69f   : > { %8159 = vst [vmem:[#allocation91_spill] sm:$0xff] %v7041_v35  ;;  %v3255_v25 = vmax.f32 %v7039_v49, %v7041_v35  ;;  %3253 = vmax.xlane.f32.xlu1 %v3252_v22  ;;  %v4311_v49 = vld [vmem:[%s7765_s1 + $0x284] ss:$8 sps:$4 sm:$0xff]  }
 0x6a0   : > { %1870 = vmatprep.mubr.bf16.mxu0 %v4311_v49  ;;  %v4317_v22 = vld [vmem:[%s7765_s1 + $0x2a4] ss:$8 sps:$4 sm:$0xff]   ;;  %v4319_v49 = vld [vmem:[%s7765_s1 + $0x2a0] ss:$8 sps:$4 sm:$0xff]  }
 0x6a1   : > { %3256 = vmax.xlane.f32.xlu0 %v3255_v25  ;;  %1871 = vmatmul.mubr.bf16.gmra.mrb[160].mxu0 %v4313_v40  ;;  %v4320_v40 = vld [vmem:[%s7765_s1 + $0x2b4] ss:$8 sps:$4 sm:$0xff]  }
 0x6a2   : > { %1880 = vmatprep.mubr.bf16.mxu0 %v4314_v1 }
 0x6a3   : > { %v7045_v11 = vpop.f32.mrb[144].mxu1 }
 0x6a4   : > { %8160 = vst [vmem:[#allocation64_spill] sm:$0xff] %v7045_v11  ;;  %v7047_v21 = vpop.f32.mrb[145].mxu1 }
 0x6a5   : > { %8161 = vst [vmem:[#allocation19_spill] sm:$0xff] %v7047_v21  ;;  %v3258_v0 = vmax.f32 %v7045_v11, %v7047_v21  ;;  %v7051_v6 = vpop.f32.mrb[146].mxu1 }
 0x6a6   : > { %v7053_v62 = vpop.f32.mrb[147].mxu1 }
 0x6a7   : > { %3259 = vmax.xlane.f32.xlu1 %v3258_v0 }
 0x6a9   : > { %1881 = vmatmul.mubr.bf16.gmra.mrb[164].mxu0 %v4316_v47 }
 0x6aa   : > { %1890 = vmatprep.mubr.bf16.mxu0 %v4317_v22 }
 0x6ab   : > { %v7057_v26 = vpop.f32.mrb[148].mxu1 }
 0x6ac   : > { %v7059_v52 = vpop.f32.mrb[149].mxu1 }
 0x6ad   : > { %v7063_v53 = vpop.f32.mrb[150].mxu1 }
 0x6ae   : > { %v7065_v14 = vpop.f32.mrb[151].mxu1 }
 0x6b1   : > { %1891 = vmatmul.mubr.bf16.gmra.mrb[168].mxu0 %v4319_v49 }
 0x6b2   : > { %1900 = vmatprep.mubr.bf16.mxu0 %v4320_v40 }
 0x6b3   : > { %v7069_v8 = vpop.f32.mrb[152].mxu1 }
 0x6b4   : > { %v7071_v61 = vpop.f32.mrb[153].mxu1 }
 0x6b5   : > { %v7075_v25 = vpop.f32.mrb[154].mxu1 }
 0x6b6   : > { %v7077_v0 = vpop.f32.mrb[155].mxu1 }
 0x6b9   : > { %1901 = vmatmul.mubr.bf16.gmra.mrb[172].mxu0 %v4322_v19 }
 0x6bb   : > { %v7081_v46 = vpop.f32.mrb[156].mxu1 }
 0x6bc   : > { %v7083_v21 = vpop.f32.mrb[157].mxu1 }
 0x6bd   : > { %v7087_v11 = vpop.f32.mrb[158].mxu1 }
 0x6be   : > { %v7089_v35 = vpop.f32.mrb[159].mxu1 }
 0x6d4   : > { %v3188_v36 = vpop.xlane.xlu0 %3187 }
 0x6d5   : > { %v3282_v20 = vsub.f32 %v6901_v33, %v3188_v36  ;;  %v3283_v1 = vsub.f32 %v6903_v31, %v3188_v36  ;;  %v4323_v33 = vld [vmem:[%s7765_s1 + $0x2c4] ss:$8 sps:$4 sm:$0xff]  }
 0x6d6   : > { %v3191_v28 = vpop.xlane.xlu1 %3190  ;;  %1910 = vmatprep.mubr.bf16.mxu0 %v4323_v33 }
 0x6d7   : > { %v3346_v27 = vmul.f32 1.442695, %v3282_v20  ;;  %v3348_v39 = vmul.f32 1.442695, %v3283_v1  ;;  %v3284_v47 = vsub.f32 %v6907_v59, %v3191_v28  ;;  %v3285_v22 = vsub.f32 %v6909_v13, %v3191_v28 }
 0x6d9   : > { %4527 = vpow2.f32 %v3346_v27  ;;  %v3350_v16 = vmul.f32 1.442695, %v3284_v47  ;;  %v3352_v17 = vmul.f32 1.442695, %v3285_v22  ;;  %v4325_v27 = vld [vmem:[%s7765_s1 + $0x2c0] ss:$8 sps:$4 sm:$0xff]  }
 0x6da   : > { %4529 = vpow2.f32 %v3348_v39  ;;  %1911 = vmatmul.mubr.bf16.gmra.mrb[176].mxu0 %v4325_v27 }
 0x6db   : > { %4531 = vpow2.f32 %v3350_v16 }
 0x6dc   : > { %4533 = vpow2.f32 %v3352_v17  ;;  %v3194_v31 = vpop.xlane.xlu0 %3193  ;;  %v4326_v17 = vld [vmem:[%s7765_s1 + $0x2d4] ss:$8 sps:$4 sm:$0xff]  }
 0x6dd   : > { %v3286_v59 = vsub.f32 %v6913_v24, %v3194_v31  ;;  %v3287_v13 = vsub.f32 %v6915_v29, %v3194_v31  ;;  %1920 = vmatprep.mubr.bf16.mxu0 %v4326_v17 }
 0x6df   : > { %v3354_v28 = vmul.f32 1.442695, %v3286_v59  ;;  %v3356_v20 = vmul.f32 1.442695, %v3287_v13 }
 0x6e0   : > { %v3197_v36 = vpop.xlane.xlu0 %3196 }
 0x6e1   : > { %4535 = vpow2.f32 %v3354_v28  ;;  %v3288_v49 = vsub.f32 %v6919_v54, %v3197_v36  ;;  %v3289_v16 = vsub.f32 %v6921_v2, %v3197_v36 }
 0x6e2   : > { %4537 = vpow2.f32 %v3356_v20 }
 0x6e3   : > { %v7134_v24 = vpop.eup %4527  ;;  %v3358_v29 = vmul.f32 1.442695, %v3288_v49  ;;  %v3360_v19 = vmul.f32 1.442695, %v3289_v16 }
 0x6e4   : > { %v7136_v39 = vpop.eup %4529  ;;  %v3200_v40 = vpop.xlane.xlu1 %3199 }
 0x6e5   : > { %v7138_v1 = vpop.eup %4531  ;;  %4539 = vpow2.f32 %v3358_v29  ;;  %v3290_v54 = vsub.f32 %v6925_v3, %v3200_v40  ;;  %v3291_v2 = vsub.f32 %v6927_v15, %v3200_v40  ;;  %v3474_v47 = vadd.f32 %v7136_v39, %v7134_v24  ;;  %v4328_v15 = vld [vmem:[%s7765_s1 + $0x2d0] ss:$8 sps:$4 sm:$0xff]  }
 0x6e6   : > { %v7144_v22 = vpop.eup %4533  ;;  %4541 = vpow2.f32 %v3360_v19  ;;  %v3203_v33 = vpop.xlane.xlu0 %3202  ;;  %1921 = vmatmul.mubr.bf16.gmra.mrb[180].mxu0 %v4328_v15  ;;  %v8163_v19 = vmax.f32 %v7051_v6, %v7053_v62 }
 0x6e7   : > { %v3362_v31 = vmul.f32 1.442695, %v3290_v54  ;;  %v3364_v59 = vmul.f32 1.442695, %v3291_v2  ;;  %3475 = vadd.xlane.f32.xlu1 %v3474_v47  ;;  %v3292_v13 = vsub.f32 %v6931_v32, %v3203_v33  ;;  %v3293_v28 = vsub.f32 %v6933_v12, %v3203_v33 }
 0x6e8   : > { %v3477_v3 = vadd.f32 %v7144_v22, %v7138_v1  ;;  %v8162_v32 = vmax.f32 %v7057_v26, %v7059_v52 }
 0x6e9   : > { %4543 = vpow2.f32 %v3362_v31  ;;  %v3366_v20 = vmul.f32 1.442695, %v3292_v13  ;;  %v3368_v36 = vmul.f32 1.442695, %v3293_v28 }
 0x6ea   : > { %4545 = vpow2.f32 %v3364_v59  ;;  %3478 = vadd.xlane.f32.xlu0 %v3477_v3  ;;  %v8164_v3 = vmax.f32 %v7069_v8, %v7071_v61 }
 0x6eb   : > { %v7153_v27 = vpop.eup %4535  ;;  %4547 = vpow2.f32 %v3366_v20  ;;  %3265 = vmax.xlane.f32.xlu1 %v8162_v32 }
 0x6ec   : > { %v7158_v12 = vpop.eup %4537  ;;  %4549 = vpow2.f32 %v3368_v36  ;;  %v3206_v49 = vpop.xlane.xlu1 %3205 }
 0x6ed   : > { %v3294_v16 = vsub.f32 %v6937_v38, %v3206_v49  ;;  %v3295_v17 = vsub.f32 %v6939_v45, %v3206_v49  ;;  %v3480_v29 = vadd.f32 %v7158_v12, %v7153_v27  ;;  %v4329_v49 = vld [vmem:[%s7765_s1 + $0x2e4] ss:$8 sps:$4 sm:$0xff]  }
 0x6ee   : > { %3262 = vmax.xlane.f32.xlu0 %v8163_v19  ;;  %v3209_v40 = vpop.xlane.xlu0 %3208  ;;  %1930 = vmatprep.mubr.bf16.mxu0 %v4329_v49  ;;  %v4332_v49 = vld [vmem:[%s7765_s1 + $0x2f4] ss:$8 sps:$4 sm:$0xff]  }
 0x6ef   : > { %v7167_v54 = vpop.eup %4539  ;;  %v3370_v2 = vmul.f32 1.442695, %v3294_v16  ;;  %v3372_v47 = vmul.f32 1.442695, %v3295_v17  ;;  %3481 = vadd.xlane.f32.xlu1 %v3480_v29  ;;  %v3296_v33 = vsub.f32 %v6943_v42, %v3209_v40  ;;  %v3297_v31 = vsub.f32 %v6945_v50, %v3209_v40  ;;  %v4331_v29 = vld [vmem:[%s7765_s1 + $0x2e0] ss:$8 sps:$4 sm:$0xff]  }
 0x6f0   : > { %v7171_v38 = vpop.eup %4541  ;;  %1931 = vmatmul.mubr.bf16.gmra.mrb[184].mxu0 %v4331_v29 }
 0x6f1   : > { %4551 = vpow2.f32 %v3370_v2  ;;  %v3374_v45 = vmul.f32 1.442695, %v3296_v33  ;;  %v3376_v59 = vmul.f32 1.442695, %v3297_v31  ;;  %v3483_v13 = vadd.f32 %v7171_v38, %v7167_v54  ;;  %1940 = vmatprep.mubr.bf16.mxu0 %v4332_v49 }
 0x6f2   : > { %4553 = vpow2.f32 %v3372_v47  ;;  %v8168_v49 = vmax.f32 %v7087_v11, %v7089_v35 }
 0x6f3   : > { %v7175_v28 = vpop.eup %4543  ;;  %4555 = vpow2.f32 %v3374_v45  ;;  %3271 = vmax.xlane.f32.xlu1 %v8164_v3  ;;  %3484 = vadd.xlane.f32.xlu0 %v3483_v13 }
 0x6f4   : > { %v7180_v42 = vpop.eup %4545  ;;  %4557 = vpow2.f32 %v3376_v59  ;;  %v3212_v50 = vpop.xlane.xlu1 %3211  ;;  %v8166_v59 = vmax.f32 %v7081_v46, %v7083_v21 }
 0x6f5   : > { %v7182_v15 = vpop.eup %4547  ;;  %v3298_v20 = vsub.f32 %v6949_v23, %v3212_v50  ;;  %v3299_v36 = vsub.f32 %v6951_v56, %v3212_v50  ;;  %v3486_v32 = vadd.f32 %v7180_v42, %v7175_v28  ;;  %v8165_v23 = vmax.f32 %v7063_v53, %v7065_v14 }
 0x6f6   : > { %v7191_v16 = vpop.eup %4549  ;;  %v3215_v17 = vpop.xlane.xlu0 %3214 }
 0x6f7   : > { %v3378_v19 = vmul.f32 1.442695, %v3298_v20  ;;  %v3380_v40 = vmul.f32 1.442695, %v3299_v36  ;;  %3487 = vadd.xlane.f32.xlu1 %v3486_v32  ;;  %3268 = vmax.xlane.f32.xlu0 %v8165_v23  ;;  %v3300_v56 = vsub.f32 %v6955_v55, %v3215_v17  ;;  %v3301_v2 = vsub.f32 %v6957_v4, %v3215_v17 }
 0x6f8   : > { %v3489_v31 = vadd.f32 %v7191_v16, %v7182_v15 }
 0x6f9   : > { %4559 = vpow2.f32 %v3378_v19  ;;  %v3382_v47 = vmul.f32 1.442695, %v3300_v56  ;;  %v3384_v33 = vmul.f32 1.442695, %v3301_v2  ;;  %v8167_v19 = vmax.f32 %v7075_v25, %v7077_v0 }
 0x6fa   : > { %4561 = vpow2.f32 %v3380_v40  ;;  %v4334_v40 = vld [vmem:[%s7765_s1 + $0x2f0] ss:$8 sps:$4 sm:$0xff]  }
 0x6fb   : > { %v7203_v45 = vpop.eup %4551  ;;  %4563 = vpow2.f32 %v3382_v47  ;;  %3277 = vmax.xlane.f32.xlu1 %v8166_v59  ;;  %3490 = vadd.xlane.f32.xlu0 %v3489_v31 }
 0x6fc   : > { %v7208_v55 = vpop.eup %4553  ;;  %4565 = vpow2.f32 %v3384_v33  ;;  %v3218_v4 = vpop.xlane.xlu1 %3217  ;;  %1941 = vmatmul.mubr.bf16.gmra.mrb[188].mxu0 %v4334_v40 }
 0x6fd   : > { %v7210_v13 = vpop.eup %4555  ;;  %v3302_v3 = vsub.f32 %v6961_v43, %v3218_v4  ;;  %v3303_v50 = vsub.f32 %v6963_v57, %v3218_v4  ;;  %v3492_v20 = vadd.f32 %v7208_v55, %v7203_v45 }
 0x6fe   : > { %v7216_v36 = vpop.eup %4557  ;;  %v3221_v32 = vpop.xlane.xlu0 %3220 }
 0x6ff   : > { %v3386_v17 = vmul.f32 1.442695, %v3302_v3  ;;  %v3388_v29 = vmul.f32 1.442695, %v3303_v50  ;;  %3493 = vadd.xlane.f32.xlu1 %v3492_v20  ;;  %3274 = vmax.xlane.f32.xlu0 %v8167_v19  ;;  %v3304_v43 = vsub.f32 %v6967_v44, %v3221_v32  ;;  %v3305_v57 = vsub.f32 %v6969_v18, %v3221_v32 }
 0x700   : > { %v3495_v2 = vadd.f32 %v7216_v36, %v7210_v13 }
 0x701   : > { %4567 = vpow2.f32 %v3386_v17  ;;  %v3390_v23 = vmul.f32 1.442695, %v3304_v43  ;;  %v3392_v56 = vmul.f32 1.442695, %v3305_v57 }
 0x702   : > { %4569 = vpow2.f32 %v3388_v29 }
 0x703   : > { %v7231_v47 = vpop.eup %4559  ;;  %4571 = vpow2.f32 %v3390_v23  ;;  %3496 = vadd.xlane.f32.xlu0 %v3495_v2 }
 0x704   : > { %v7233_v44 = vpop.eup %4561  ;;  %4573 = vpow2.f32 %v3392_v56  ;;  %v3224_v18 = vpop.xlane.xlu1 %3223 }
 0x705   : > { %v7235_v33 = vpop.eup %4563  ;;  %v3306_v31 = vsub.f32 %v6973_v48, %v3224_v18  ;;  %v3307_v59 = vsub.f32 %v6975_v10, %v3224_v18  ;;  %v3498_v4 = vadd.f32 %v7233_v44, %v7231_v47 }
 0x706   : > { %v7241_v3 = vpop.eup %4565  ;;  %v3227_v50 = vpop.xlane.xlu0 %3226 }
 0x707   : > { %v3394_v20 = vmul.f32 1.442695, %v3306_v31  ;;  %v3396_v32 = vmul.f32 1.442695, %v3307_v59  ;;  %3499 = vadd.xlane.f32.xlu1 %v3498_v4  ;;  %3280 = vmax.xlane.f32.xlu0 %v8168_v49  ;;  %v3308_v17 = vsub.f32 %v6979_v9, %v3227_v50  ;;  %v3309_v29 = vsub.f32 %v6981_v58, %v3227_v50 }
 0x708   : > { %v3501_v19 = vadd.f32 %v7241_v3, %v7235_v33 }
 0x709   : > { %4575 = vpow2.f32 %v3394_v20  ;;  %v3398_v48 = vmul.f32 1.442695, %v3308_v17  ;;  %v3400_v10 = vmul.f32 1.442695, %v3309_v29 }
 0x70a   : > { %4577 = vpow2.f32 %v3396_v32 }
 0x70b   : > { %v7250_v43 = vpop.eup %4567  ;;  %4579 = vpow2.f32 %v3398_v48  ;;  %3502 = vadd.xlane.f32.xlu0 %v3501_v19 }
 0x70c   : > { %v7252_v57 = vpop.eup %4569  ;;  %4581 = vpow2.f32 %v3400_v10  ;;  %v3230_v40 = vpop.xlane.xlu1 %3229 }
 0x70d   : > { %v7254_v23 = vpop.eup %4571  ;;  %v3310_v9 = vsub.f32 %v6985_v63, %v3230_v40  ;;  %v3311_v58 = vsub.f32 %v6987_v30, %v3230_v40  ;;  %v3504_v56 = vadd.f32 %v7252_v57, %v7250_v43 }
 0x70e   : > { %v7260_v2 = vpop.eup %4573  ;;  %v3233_v18 = vpop.xlane.xlu0 %3232 }
 0x70f   : > { %v3402_v31 = vmul.f32 1.442695, %v3310_v9  ;;  %v3404_v59 = vmul.f32 1.442695, %v3311_v58  ;;  %3505 = vadd.xlane.f32.xlu1 %v3504_v56  ;;  %v3312_v4 = vsub.f32 %v6991_v51, %v3233_v18  ;;  %v3313_v50 = vsub.f32 %v6993_v41, %v3233_v18 }
 0x710   : > { %v3507_v20 = vadd.f32 %v7260_v2, %v7254_v23 }
 0x711   : > { %4583 = vpow2.f32 %v3402_v31  ;;  %v3406_v63 = vmul.f32 1.442695, %v3312_v4  ;;  %v3408_v32 = vmul.f32 1.442695, %v3313_v50 }
 0x712   : > { %4585 = vpow2.f32 %v3404_v59  ;;  %3508 = vadd.xlane.f32.xlu0 %v3507_v20 }
 0x713   : > { %v7266_v30 = vpop.eup %4575  ;;  %4587 = vpow2.f32 %v3406_v63 }
 0x714   : > { %v7268_v49 = vpop.eup %4577  ;;  %4589 = vpow2.f32 %v3408_v32  ;;  %v3236_v17 = vpop.xlane.xlu1 %3235 }
 0x715   : > { %v7270_v29 = vpop.eup %4579  ;;  %v3314_v51 = vsub.f32 %v6997_v60, %v3236_v17  ;;  %v3315_v41 = vsub.f32 %v6999_v37, %v3236_v17  ;;  %v3510_v48 = vadd.f32 %v7268_v49, %v7266_v30 }
 0x716   : > { %v7276_v10 = vpop.eup %4581  ;;  %v3239_v19 = vpop.xlane.xlu0 %3238 }
 0x717   : > { %v3410_v40 = vmul.f32 1.442695, %v3314_v51  ;;  %v3412_v9 = vmul.f32 1.442695, %v3315_v41  ;;  %3511 = vadd.xlane.f32.xlu1 %v3510_v48  ;;  %v3316_v58 = vsub.f32 %v7003_v34, %v3239_v19  ;;  %v3317_v56 = vsub.f32 %v7005_v7, %v3239_v19  ;;  %v8170_v7 = vld [vmem:[#allocation52_spill] sm:$0xff]  ;;  %v8171_v48 = vld [vmem:[#allocation9_spill] sm:$0xff] }
 0x718   : > { %v3513_v18 = vadd.f32 %v7276_v10, %v7270_v29 }
 0x719   : > { %4591 = vpow2.f32 %v3410_v40  ;;  %v3414_v60 = vmul.f32 1.442695, %v3316_v58  ;;  %v3416_v31 = vmul.f32 1.442695, %v3317_v56  ;;  %v8172_v40 = vld [vmem:[#allocation57_spill] sm:$0xff] }
 0x71a   : > { %4593 = vpow2.f32 %v3412_v9  ;;  %3514 = vadd.xlane.f32.xlu0 %v3513_v18 }
 0x71b   : > { %v7282_v37 = vpop.eup %4583  ;;  %4595 = vpow2.f32 %v3414_v60 }
 0x71c   : > { %8169 = vst [vmem:[#allocation93_spill] sm:$0xff] %v7282_v37  ;;  %v7284_v59 = vpop.eup %4585  ;;  %4597 = vpow2.f32 %v3416_v31  ;;  %v3242_v4 = vpop.xlane.xlu1 %3241 }
 0x71d   : > { %v7286_v50 = vpop.eup %4587  ;;  %v3318_v34 = vsub.f32 %v7009_v5, %v3242_v4  ;;  %v3319_v20 = vsub.f32 %v8170_v7, %v3242_v4  ;;  %v3516_v63 = vadd.f32 %v7284_v59, %v7282_v37 }
 0x71e   : > { %v7292_v32 = vpop.eup %4589  ;;  %v3245_v17 = vpop.xlane.xlu0 %3244 }
 0x71f   : > { %v3418_v51 = vmul.f32 1.442695, %v3318_v34  ;;  %v3420_v41 = vmul.f32 1.442695, %v3319_v20  ;;  %3517 = vadd.xlane.f32.xlu1 %v3516_v63  ;;  %v3320_v19 = vsub.f32 %v8171_v48, %v3245_v17  ;;  %v3321_v9 = vsub.f32 %v8172_v40, %v3245_v17  ;;  %v8176_v34 = vld [vmem:[#allocation11_spill] sm:$0xff]  ;;  %v8177_v20 = vld [vmem:[#allocation62_spill] sm:$0xff] }
 0x720   : > { %v3519_v58 = vadd.f32 %v7292_v32, %v7286_v50  ;;  %v8179_v40 = vld [vmem:[#allocation13_spill] sm:$0xff] }
 0x721   : > { %4599 = vpow2.f32 %v3418_v51  ;;  %v3422_v5 = vmul.f32 1.442695, %v3320_v19  ;;  %v3424_v56 = vmul.f32 1.442695, %v3321_v9 }
 0x722   : > { %4601 = vpow2.f32 %v3420_v41  ;;  %3520 = vadd.xlane.f32.xlu0 %v3519_v58  ;;  %v8180_v58 = vld [vmem:[#allocation59_spill] sm:$0xff] }
 0x723   : > { %v7298_v18 = vpop.eup %4591  ;;  %4603 = vpow2.f32 %v3422_v5 }
 0x724   : > { %8173 = vst [vmem:[#allocation95_spill] sm:$0xff] %v7298_v18  ;;  %v7300_v60 = vpop.eup %4593  ;;  %4605 = vpow2.f32 %v3424_v56  ;;  %v3248_v31 = vpop.xlane.xlu1 %3247 }
 0x725   : > { %8174 = vst [vmem:[#allocation71_spill] sm:$0xff] %v7300_v60  ;;  %v7302_v4 = vpop.eup %4595  ;;  %v3322_v7 = vsub.f32 %v8176_v34, %v3248_v31  ;;  %v3323_v63 = vsub.f32 %v8177_v20, %v3248_v31  ;;  %v3522_v17 = vadd.f32 %v7300_v60, %v7298_v18 }
 0x726   : > { %8175 = vst [vmem:[#allocation21_spill] sm:$0xff] %v7302_v4  ;;  %v7308_v51 = vpop.eup %4597  ;;  %v3251_v41 = vpop.xlane.xlu0 %3250 }
 0x727   : > { %8178 = vst [vmem:[#allocation92_spill] sm:$0xff] %v7308_v51  ;;  %v3426_v48 = vmul.f32 1.442695, %v3322_v7  ;;  %v3428_v19 = vmul.f32 1.442695, %v3323_v63  ;;  %3523 = vadd.xlane.f32.xlu1 %v3522_v17  ;;  %v3324_v9 = vsub.f32 %v8179_v40, %v3251_v41  ;;  %v3325_v5 = vsub.f32 %v8180_v58, %v3251_v41  ;;  %v8181_v17 = vld [vmem:[#allocation15_spill] sm:$0xff] }
 0x728   : > { %v3525_v56 = vadd.f32 %v7308_v51, %v7302_v4  ;;  %v8182_v41 = vld [vmem:[#allocation65_spill] sm:$0xff]  ;;  %v8184_v4 = vld [vmem:[#allocation91_spill] sm:$0xff] }
 0x729   : > { %4607 = vpow2.f32 %v3426_v48  ;;  %v3430_v34 = vmul.f32 1.442695, %v3324_v9  ;;  %v3432_v37 = vmul.f32 1.442695, %v3325_v5 }
 0x72a   : > { %4609 = vpow2.f32 %v3428_v19  ;;  %3526 = vadd.xlane.f32.xlu0 %v3525_v56 }
 0x72b   : > { %v7314_v31 = vpop.eup %4599  ;;  %4611 = vpow2.f32 %v3430_v34  ;;  %v8183_v34 = vld [vmem:[#allocation17_spill] sm:$0xff] }
 0x72c   : > { %v7316_v20 = vpop.eup %4601  ;;  %4613 = vpow2.f32 %v3432_v37  ;;  %v3254_v7 = vpop.xlane.xlu1 %3253 }
 0x72d   : > { %v7318_v63 = vpop.eup %4603  ;;  %v3326_v40 = vsub.f32 %v8181_v17, %v3254_v7  ;;  %v3327_v58 = vsub.f32 %v8182_v41, %v3254_v7  ;;  %v3528_v48 = vadd.f32 %v7316_v20, %v7314_v31 }
 0x72e   : > { %v7324_v9 = vpop.eup %4605  ;;  %v3257_v19 = vpop.xlane.xlu0 %3256 }
 0x72f   : > { %v3434_v5 = vmul.f32 1.442695, %v3326_v40  ;;  %v3436_v56 = vmul.f32 1.442695, %v3327_v58  ;;  %3529 = vadd.xlane.f32.xlu1 %v3528_v48  ;;  %v3328_v18 = vsub.f32 %v8183_v34, %v3257_v19  ;;  %v3329_v37 = vsub.f32 %v8184_v4, %v3257_v19  ;;  %v8187_v48 = vld [vmem:[#allocation64_spill] sm:$0xff]  ;;  %v8188_v4 = vld [vmem:[#allocation19_spill] sm:$0xff] }
 0x730   : > { %v3531_v51 = vadd.f32 %v7324_v9, %v7318_v63 }
 0x731   : > { %4615 = vpow2.f32 %v3434_v5  ;;  %v3438_v17 = vmul.f32 1.442695, %v3328_v18  ;;  %v3440_v60 = vmul.f32 1.442695, %v3329_v37 }
 0x732   : > { %4617 = vpow2.f32 %v3436_v56  ;;  %3532 = vadd.xlane.f32.xlu0 %v3531_v51 }
 0x733   : > { %v7330_v7 = vpop.eup %4607  ;;  %4619 = vpow2.f32 %v3438_v17 }
 0x734   : > { %8185 = vst [vmem:[#allocation94_spill] sm:$0xff] %v7330_v7  ;;  %v7332_v41 = vpop.eup %4609  ;;  %4621 = vpow2.f32 %v3440_v60  ;;  %v3260_v40 = vpop.xlane.xlu1 %3259 }
 0x735   : > { %v7334_v58 = vpop.eup %4611  ;;  %v3330_v34 = vsub.f32 %v8187_v48, %v3260_v40  ;;  %v3331_v19 = vsub.f32 %v8188_v4, %v3260_v40  ;;  %v3534_v5 = vadd.f32 %v7332_v41, %v7330_v7 }
 0x736   : > { %8186 = vst [vmem:[#allocation70_spill] sm:$0xff] %v7334_v58  ;;  %v7340_v18 = vpop.eup %4613 }
 0x737   : > { %8189 = vst [vmem:[#allocation23_spill] sm:$0xff] %v7340_v18  ;;  %v3442_v56 = vmul.f32 1.442695, %v3330_v34  ;;  %v3444_v51 = vmul.f32 1.442695, %v3331_v19  ;;  %3535 = vadd.xlane.f32.xlu1 %v3534_v5  ;;  %v3537_v37 = vadd.f32 %v7340_v18, %v7334_v58 }
 0x739   : > { %4623 = vpow2.f32 %v3442_v56  ;;  %3538 = vadd.xlane.f32.xlu0 %v3537_v37 }
 0x73a   : > { %4625 = vpow2.f32 %v3444_v51 }
 0x73b   : > { %v7344_v60 = vpop.eup %4615 }
 0x73c   : > { %8190 = vst [vmem:[#allocation97_spill] sm:$0xff] %v7344_v60  ;;  %v7346_v17 = vpop.eup %4617 }
 0x73d   : > { %8191 = vst [vmem:[#allocation112_spill] sm:$0xff] %v7346_v17  ;;  %v7348_v48 = vpop.eup %4619  ;;  %v3540_v40 = vadd.f32 %v7346_v17, %v7344_v60 }
 0x73e   : > { %8192 = vst [vmem:[#allocation77_spill] sm:$0xff] %v7348_v48  ;;  %v7352_v4 = vpop.eup %4621 }
 0x73f   : > { %8193 = vst [vmem:[#allocation25_spill] sm:$0xff] %v7352_v4  ;;  %3541 = vadd.xlane.f32.xlu1 %v3540_v40  ;;  %v3543_v34 = vadd.f32 %v7352_v4, %v7348_v48 }
 0x741   : > { %3544 = vadd.xlane.f32.xlu0 %v3543_v34 }
 0x743   : > { %v7356_v19 = vpop.eup %4623 }
 0x744   : > { %8194 = vst [vmem:[#allocation8_spill] sm:$0xff] %v7356_v19  ;;  %v7358_v5 = vpop.eup %4625 }
 0x745   : > { %v3546_v56 = vadd.f32 %v7358_v5, %v7356_v19 }
 0x747   : > { %3547 = vadd.xlane.f32.xlu1 %v3546_v56 }
 0x774   : > { %v3476_v51 = vpop.xlane.xlu1 %3475 }
 0x775   : > { %4627 = vrcp.f32 %v3476_v51 }
 0x777   : > { %v3479_v37 = vpop.xlane.xlu0 %3478 }
 0x778   : > { %4629 = vrcp.f32 %v3479_v37  ;;  %v3266_v60 = vpop.xlane.xlu1 %3265 }
 0x779   : > { %v3334_v17 = vsub.f32 %v7057_v26, %v3266_v60  ;;  %v3335_v40 = vsub.f32 %v7059_v52, %v3266_v60 }
 0x77b   : > { %v3450_v7 = vmul.f32 1.442695, %v3334_v17  ;;  %v3452_v48 = vmul.f32 1.442695, %v3335_v40  ;;  %v3263_v34 = vpop.xlane.xlu0 %3262 }
 0x77c   : > { %v3332_v4 = vsub.f32 %v7051_v6, %v3263_v34  ;;  %v3333_v58 = vsub.f32 %v7053_v62, %v3263_v34  ;;  %v3482_v18 = vpop.xlane.xlu1 %3481 }
 0x77d   : > { %4631 = vpow2.f32 %v3450_v7 }
 0x77e   : > { %4633 = vpow2.f32 %v3452_v48  ;;  %v3446_v56 = vmul.f32 1.442695, %v3332_v4  ;;  %v3448_v19 = vmul.f32 1.442695, %v3333_v58 }
 0x77f   : > { %4635 = vrcp.f32 %v3482_v18  ;;  %v4628_v51 = vpop.eup %4627 }
 0x780   : > { %4637 = vpow2.f32 %v3446_v56  ;;  %v7366_v37 = vpop.xlane.xlu1 %3271  ;;  %v3485_v26 = vpop.xlane.xlu0 %3484  ;;  %v3603_v60 = vmul.f32 %v4628_v51, %v7136_v39  ;;  %v3602_v48 = vmul.f32 %v4628_v51, %v7134_v24 }
 0x781   : > { %4639 = vpow2.f32 %v3448_v19 }
 0x782   : > { %v4630_v52 = vpop.eup %4629  ;;  %4641 = vrcp.f32 %v3485_v26 }
 0x783   : > { %v3605_v6 = vmul.f32 %v4630_v52, %v7144_v22  ;;  %v3604_v62 = vmul.f32 %v4630_v52, %v7138_v1 }
 0x784   : > { %v3488_v17 = vpop.xlane.xlu1 %3487  ;;  %v3269_v7 = vpop.xlane.xlu0 %3268 }
 0x785   : > { %v3336_v58 = vsub.f32 %v7063_v53, %v3269_v7  ;;  %v3337_v18 = vsub.f32 %v7065_v14, %v3269_v7  ;;  %v3667_v4 = vpack.c.bf16 %v3605_v6, %v3603_v60  ;;  %v3666_v40 = vpack.c.bf16 %v3604_v62, %v3602_v48 }
 0x786   : > { %4643 = vrcp.f32 %v3488_v17 }
 0x787   : > { %v7374_v34 = vpop.eup %4631  ;;  %v3454_v19 = vmul.f32 1.442695, %v3336_v58  ;;  %v3456_v56 = vmul.f32 1.442695, %v3337_v18  ;;  %3698 = vmatprep.subr.bf16.mxu1 %v3667_v4 }
 0x788   : > { %v7376_v39 = vpop.eup %4633  ;;  %3699 = vmatpush1.bf16.xpose.msra.mxu1 %v3666_v40  ;;  %v7378_v1 = vpop.xlane.xlu1 %3277 }
 0x789   : > { %v3491_v22 = vpop.xlane.xlu0 %3490  ;;  %v4636_v26 = vpop.eup %4635  ;;  %4645 = vpow2.f32 %v3454_v19  ;;  %v3552_v53 = vadd.f32 %v7376_v39, %v7374_v34 }
 0x78a   : > { %v7382_v14 = vpop.eup %4637  ;;  %4647 = vpow2.f32 %v3456_v56  ;;  %v3607_v7 = vmul.f32 %v4636_v26, %v7158_v12  ;;  %v3606_v58 = vmul.f32 %v4636_v26, %v7153_v27 }
 0x78b   : > { %v7384_v24 = vpop.eup %4639  ;;  %4649 = vrcp.f32 %v3491_v22  ;;  %3553 = vadd.xlane.f32.xlu1 %v3552_v53 }
 0x78c   : > { %v4642_v51 = vpop.eup %4641  ;;  %v3549_v52 = vadd.f32 %v7384_v24, %v7382_v14  ;;  %v3494_v6 = vpop.xlane.xlu1 %3493 }
 0x78d   : > { %v3275_v60 = vpop.xlane.xlu0 %3274  ;;  %v3609_v48 = vmul.f32 %v4642_v51, %v7171_v38  ;;  %v3608_v18 = vmul.f32 %v4642_v51, %v7167_v54  ;;  %4651 = vrcp.f32 %v3494_v6 }
 0x78e   : > { %v3340_v62 = vsub.f32 %v7075_v25, %v3275_v60  ;;  %v3341_v17 = vsub.f32 %v7077_v0, %v3275_v60  ;;  %3550 = vadd.xlane.f32.xlu0 %v3549_v52 }
 0x78f   : > { %v3669_v19 = vpack.c.bf16 %v3609_v48, %v3607_v7  ;;  %v3668_v22 = vpack.c.bf16 %v3608_v18, %v3606_v58 }
 0x790   : > { %v3462_v4 = vmul.f32 1.442695, %v3340_v62  ;;  %v3464_v40 = vmul.f32 1.442695, %v3341_v17  ;;  %v4644_v25 = vpop.eup %4643 }
 0x791   : > { %v3497_v56 = vpop.xlane.xlu0 %3496  ;;  %3700 = vmatprep.subr.bf16.mxu1 %v3669_v19  ;;  %v3611_v52 = vmul.f32 %v4644_v25, %v7180_v42  ;;  %v3610_v6 = vmul.f32 %v4644_v25, %v7175_v28 }
 0x792   : > { %4653 = vpow2.f32 %v3462_v4  ;;  %3701 = vmatpush1.bf16.xpose.msra.mxu1 %v3668_v22 }
 0x793   : > { %4655 = vpow2.f32 %v3464_v40  ;;  %v7394_v0 = vpop.eup %4645 }
 0x794   : > { %4657 = vrcp.f32 %v3497_v56  ;;  %v7396_v12 = vpop.eup %4647  ;;  %v3500_v26 = vpop.xlane.xlu1 %3499 }
 0x795   : > { %v3281_v38 = vpop.xlane.xlu0 %3280  ;;  %v4650_v27 = vpop.eup %4649  ;;  %v3555_v51 = vadd.f32 %v7396_v12, %v7394_v0  ;;  %4659 = vrcp.f32 %v3500_v26 }
 0x796   : > { %v3344_v54 = vsub.f32 %v7087_v11, %v3281_v38  ;;  %v3345_v53 = vsub.f32 %v7089_v35, %v3281_v38  ;;  %v3613_v60 = vmul.f32 %v4650_v27, %v7191_v16  ;;  %v3612_v62 = vmul.f32 %v4650_v27, %v7182_v15  ;;  %v462_v35 = vld [vmem:[%s7766_s2 + $0x280] sm:$0xff]  ;;  %v7413_v16 = vpop.f32.mrb[160].mxu0 }
 0x797   : > { %3556 = vadd.xlane.f32.xlu0 %v3555_v51  ;;  %v4652_v18 = vpop.eup %4651  ;;  %v7418_v56 = vpop.f32.mrb[161].mxu0 }
 0x798   : > { %v3470_v17 = vmul.f32 1.442695, %v3344_v54  ;;  %v3472_v7 = vmul.f32 1.442695, %v3345_v53  ;;  %v3671_v48 = vpack.c.bf16 %v3613_v60, %v3611_v52  ;;  %v3670_v11 = vpack.c.bf16 %v3612_v62, %v3610_v6 }
 0x799   : > { %v3503_v58 = vpop.xlane.xlu0 %3502  ;;  %v3615_v19 = vmul.f32 %v4652_v18, %v7208_v55  ;;  %v3614_v25 = vmul.f32 %v4652_v18, %v7203_v45 }
 0x79a   : > { %4661 = vpow2.f32 %v3470_v17  ;;  %3702 = vmatprep.subr.bf16.mxu1 %v3671_v48  ;;  %v3338_v17 = vsub.f32 %v7069_v8, %v7366_v37  ;;  %v3342_v8 = vsub.f32 %v7081_v46, %v7378_v1 }
 0x79b   : > { %4663 = vpow2.f32 %v3472_v7  ;;  %3703 = vmatpush1.bf16.xpose.msra.mxu1 %v3670_v11 }
 0x79c   : > { %v7409_v42 = vpop.eup %4653  ;;  %4665 = vrcp.f32 %v3503_v58  ;;  %880 = vperm.xlu1 %4190, %v462_v35   ;;  %v3506_v15 = vpop.xlane.xlu1 %3505  ;;  %v3339_v35 = vsub.f32 %v7071_v61, %v7366_v37  ;;  %v3458_v18 = vmul.f32 1.442695, %v3338_v17 }
 0x79d   : > { %v7411_v28 = vpop.eup %4655  ;;  %4667 = vrcp.f32 %v3506_v15 }
 0x79e   : > { %v4658_v4 = vpop.eup %4657  ;;  %v3561_v40 = vadd.f32 %v7411_v28, %v7409_v42  ;;  %v3460_v15 = vmul.f32 1.442695, %v3339_v35 }
 0x79f   : > { %v3617_v22 = vmul.f32 %v4658_v4, %v7216_v36  ;;  %v3616_v38 = vmul.f32 %v4658_v4, %v7210_v13  ;;  %v3509_v27 = vpop.xlane.xlu0 %3508  ;;  %v4660_v53 = vpop.eup %4659  ;;  %v3343_v4 = vsub.f32 %v7083_v21, %v7378_v1 }
 0x7a0   : > { %3562 = vadd.xlane.f32.xlu0 %v3561_v40  ;;  %4669 = vrcp.f32 %v3509_v27  ;;  %v3619_v45 = vmul.f32 %v4660_v53, %v7233_v44  ;;  %v3618_v6 = vmul.f32 %v4660_v53, %v7231_v47 }
 0x7a1   : > { %v3673_v26 = vpack.c.bf16 %v3617_v22, %v3615_v19  ;;  %v3672_v54 = vpack.c.bf16 %v3616_v38, %v3614_v25  ;;  %v3466_v22 = vmul.f32 1.442695, %v3342_v8 }
 0x7a3   : > { %3704 = vmatprep.subr.bf16.mxu1 %v3673_v26  ;;  %v7448_v26 = vpop.f32.mrb[162].mxu0 }
 0x7a4   : > { %v7423_v51 = vpop.eup %4661  ;;  %3705 = vmatpush1.bf16.xpose.msra.mxu1 %v3672_v54  ;;  %v3512_v52 = vpop.xlane.xlu1 %3511 }
 0x7a5   : > { %v7425_v55 = vpop.eup %4663  ;;  %4671 = vrcp.f32 %v3512_v52 }
 0x7a6   : > { %v4666_v60 = vpop.eup %4665  ;;  %v3567_v36 = vadd.f32 %v7425_v55, %v7423_v51 }
 0x7a7   : > { %v3621_v13 = vmul.f32 %v4666_v60, %v7241_v3  ;;  %v3620_v62 = vmul.f32 %v4666_v60, %v7235_v33  ;;  %v3515_v7 = vpop.xlane.xlu0 %3514  ;;  %v4668_v48 = vpop.eup %4667 }
 0x7a8   : > { %3568 = vadd.xlane.f32.xlu0 %v3567_v36  ;;  %4673 = vrcp.f32 %v3515_v7  ;;  %v3623_v47 = vmul.f32 %v4668_v48, %v7252_v57  ;;  %v3622_v37 = vmul.f32 %v4668_v48, %v7250_v43  ;;  %v7450_v43 = vpop.f32.mrb[163].mxu0 }
 0x7a9   : > { %v3675_v58 = vpack.c.bf16 %v3621_v13, %v3619_v45  ;;  %v3674_v11 = vpack.c.bf16 %v3620_v62, %v3618_v6  ;;  %v7453_v52 = vpop.f32.mrb[164].mxu0 }
 0x7aa   : > { %v4670_v44 = vpop.eup %4669 }
 0x7ab   : > { %3706 = vmatprep.subr.bf16.mxu1 %v3675_v58  ;;  %v3625_v33 = vmul.f32 %v4670_v44, %v7260_v2  ;;  %v3624_v19 = vmul.f32 %v4670_v44, %v7254_v23  ;;  %v3468_v2 = vmul.f32 1.442695, %v3343_v4  ;;  %v8195_v44 = vld [vmem:[#allocation93_spill] sm:$0xff] }
 0x7ac   : > { %3707 = vmatpush1.bf16.xpose.msra.mxu1 %v3674_v11  ;;  %v3518_v3 = vpop.xlane.xlu1 %3517  ;;  %v466_v11 = vld [vmem:[%s7766_s2 + $0x2a0] sm:$0xff] }
 0x7ad   : > { %v3677_v40 = vpack.c.bf16 %v3625_v33, %v3623_v47  ;;  %4675 = vrcp.f32 %v3518_v3  ;;  %v3676_v46 = vpack.c.bf16 %v3624_v19, %v3622_v37 }
 0x7ae   : > { %4677 = vpow2.f32 %v3458_v18 }
 0x7af   : > { %3708 = vmatprep.subr.bf16.mxu1 %v3677_v40  ;;  %v3521_v61 = vpop.xlane.xlu0 %3520  ;;  %v4672_v57 = vpop.eup %4671  ;;  %v468_v40 = vld [vmem:[%s7766_s2 + $0x2b0] sm:$0xff] }
 0x7b0   : > { %4679 = vrcp.f32 %v3521_v61  ;;  %v3627_v38 = vmul.f32 %v4672_v57, %v7268_v49  ;;  %v3626_v53 = vmul.f32 %v4672_v57, %v7266_v30  ;;  %v8196_v61 = vld [vmem:[#allocation71_spill] sm:$0xff]  ;;  %v8197_v57 = vld [vmem:[#allocation92_spill] sm:$0xff] }
 0x7b1   : > { %4681 = vpow2.f32 %v3460_v15 }
 0x7b2   : > { %v4674_v25 = vpop.eup %4673  ;;  %4683 = vpow2.f32 %v3466_v22 }
 0x7b3   : > { %v3629_v21 = vmul.f32 %v4674_v25, %v7276_v10  ;;  %4685 = vpow2.f32 %v3468_v2  ;;  %v3628_v27 = vmul.f32 %v4674_v25, %v7270_v29  ;;  %v7455_v10 = vpop.f32.mrb[165].mxu0  ;;  %v463_v29 = vld [vmem:[%s7766_s2 + $0x288] sm:$0xff] }
 0x7b4   : > { %3709 = vmatpush1.bf16.xpose.msra.mxu1 %v3676_v46  ;;  %v3524_v23 = vpop.xlane.xlu1 %3523  ;;  %v7474_v35 = vpop.f32.mrb[166].mxu0 }
 0x7b5   : > { %v3679_v1 = vpack.c.bf16 %v3629_v21, %v3627_v38  ;;  %4687 = vrcp.f32 %v3524_v23  ;;  %v3678_v36 = vpack.c.bf16 %v3628_v27, %v3626_v53  ;;  %v7479_v47 = vpop.f32.mrb[167].mxu0  ;;  %v8198_v21 = vld [vmem:[#allocation21_spill] sm:$0xff] }
 0x7b6   : > { %v7481_v33 = vpop.f32.mrb[168].mxu0 }
 0x7b7   : > { %3710 = vmatprep.subr.bf16.mxu1 %v3679_v1  ;;  %v3527_v54 = vpop.xlane.xlu0 %3526  ;;  %v4676_v49 = vpop.eup %4675 }
 0x7b8   : > { %4689 = vrcp.f32 %v3527_v54  ;;  %v7457_v60 = vpop.eup %4677  ;;  %v3631_v6 = vmul.f32 %v4676_v49, %v7284_v59  ;;  %v3630_v18 = vmul.f32 %v4676_v49, %v8195_v44  ;;  %v7483_v3 = vpop.f32.mrb[169].mxu0  ;;  %v470_v54 = vld [vmem:[%s7766_s2 + $0x2c0] sm:$0xff]  ;;  %v8199_v49 = vld [vmem:[#allocation95_spill] sm:$0xff] }
 0x7b9   : > { %v7490_v19 = vpop.f32.mrb[170].mxu0 }
 0x7ba   : > { %v4680_v45 = vpop.eup %4679  ;;  %v7494_v2 = vpop.f32.mrb[171].mxu0 }
 0x7bb   : > { %v7462_v13 = vpop.eup %4681  ;;  %v3633_v30 = vmul.f32 %v4680_v45, %v7292_v32  ;;  %v3632_v7 = vmul.f32 %v4680_v45, %v7286_v50  ;;  %v7496_v25 = vpop.f32.mrb[172].mxu0 }
 0x7bc   : > { %3711 = vmatpush1.bf16.xpose.msra.mxu1 %v3678_v36  ;;  %v3530_v62 = vpop.xlane.xlu1 %3529  ;;  %v7467_v48 = vpop.eup %4683  ;;  %v3558_v58 = vadd.f32 %v7462_v13, %v7457_v60 }
 0x7bd   : > { %v3681_v17 = vpack.c.bf16 %v3633_v30, %v3631_v6  ;;  %4691 = vrcp.f32 %v3530_v62  ;;  %v7476_v59 = vpop.eup %4685  ;;  %v3680_v8 = vpack.c.bf16 %v3632_v7, %v3630_v18  ;;  %v7499_v1 = vpop.f32.mrb[173].mxu0  ;;  %v472_v7 = vld [vmem:[%s7766_s2 + $0x2d0] sm:$0xff] }
 0x7be   : > { %885 = vperm.xlu0 %4189, %v463_v29   ;;  %v3564_v4 = vadd.f32 %v7476_v59, %v7467_v48  ;;  %v7504_v53 = vpop.f32.mrb[174].mxu0 }
 0x7bf   : > { %3712 = vmatprep.subr.bf16.mxu1 %v3681_v17  ;;  %v3533_v32 = vpop.xlane.xlu0 %3532  ;;  %v4688_v50 = vpop.eup %4687 }
 0x7c0   : > { %4693 = vrcp.f32 %v3533_v32  ;;  %3559 = vadd.xlane.f32.xlu1 %v3558_v58  ;;  %v3635_v37 = vmul.f32 %v4688_v50, %v8196_v61  ;;  %v3634_v36 = vmul.f32 %v4688_v50, %v8199_v49  ;;  %v7507_v45 = vpop.f32.mrb[175].mxu0  ;;  %v474_v61 = vld [vmem:[%s7766_s2 + $0x2e0] sm:$0xff] }
 0x7c1   : > { %v7509_v6 = vpop.f32.mrb[176].mxu0 }
 0x7c2   : > { %900 = vperm.xlu0 %4189, %v466_v11   ;;  %v4690_v15 = vpop.eup %4689  ;;  %v7511_v62 = vpop.f32.mrb[177].mxu0 }
 0x7c3   : > { %v3637_v22 = vmul.f32 %v4690_v15, %v8197_v57  ;;  %v3636_v23 = vmul.f32 %v4690_v15, %v8198_v21  ;;  %v7516_v58 = vpop.f32.mrb[178].mxu0  ;;  %v464_v21 = vld [vmem:[%s7766_s2 + $0x290] sm:$0xff] }
 0x7c4   : > { %3713 = vmatpush1.bf16.xpose.msra.mxu1 %v3680_v8  ;;  %3565 = vadd.xlane.f32.xlu1 %v3564_v4  ;;  %v3536_v46 = vpop.xlane.xlu1 %3535  ;;  %v7520_v44 = vpop.f32.mrb[179].mxu0 }
 0x7c5   : > { %4695 = vrcp.f32 %v3536_v46  ;;  %v3683_v38 = vpack.c.bf16 %v3637_v22, %v3635_v37  ;;  %v3682_v30 = vpack.c.bf16 %v3636_v23, %v3634_v36  ;;  %v7522_v50 = vpop.f32.mrb[180].mxu0  ;;  %v476_v23 = vld [vmem:[%s7766_s2 + $0x2f0] sm:$0xff] }
 0x7c6   : > { %910 = vperm.xlu0 %4189, %v468_v40   ;;  %v3539_v27 = vpop.xlane.xlu0 %3538  ;;  %v7525_v4 = vpop.f32.mrb[181].mxu0 }
 0x7c7   : > { %3714 = vmatprep.subr.bf16.mxu1 %v3683_v38  ;;  %4697 = vrcp.f32 %v3539_v27  ;;  %v4692_v29 = vpop.eup %4691 }
 0x7c8   : > { %v3639_v11 = vmul.f32 %v4692_v29, %v7316_v20  ;;  %v7530_v20 = vpop.f32.mrb[182].mxu0  ;;  %v3638_v37 = vmul.f32 %v4692_v29, %v7314_v31  ;;  %v8200_v31 = vld [vmem:[#allocation23_spill] sm:$0xff] }
 0x7c9   : > { %v7533_v57 = vpop.f32.mrb[183].mxu0 }
 0x7ca   : > { %920 = vperm.xlu0 %4189, %v470_v54   ;;  %v4694_v17 = vpop.eup %4693  ;;  %v7535_v22 = vpop.f32.mrb[184].mxu0 }
 0x7cb   : > { %v3641_v32 = vmul.f32 %v4694_v17, %v7324_v9  ;;  %v3640_v15 = vmul.f32 %v4694_v17, %v7318_v63  ;;  %v7537_v38 = vpop.f32.mrb[185].mxu0  ;;  %v8201_v17 = vld [vmem:[#allocation70_spill] sm:$0xff] }
 0x7cc   : > { %3715 = vmatpush1.bf16.xpose.msra.mxu1 %v3682_v30  ;;  %v3542_v18 = vpop.xlane.xlu1 %3541  ;;  %v7547_v49 = vpop.f32.mrb[186].mxu0 }
 0x7cd   : > { %4699 = vrcp.f32 %v3542_v18  ;;  %v3685_v8 = vpack.c.bf16 %v3641_v32, %v3639_v11  ;;  %v3684_v63 = vpack.c.bf16 %v3640_v15, %v3638_v37  ;;  %v7549_v36 = vpop.f32.mrb[187].mxu0  ;;  %v8202_v18 = vld [vmem:[#allocation94_spill] sm:$0xff]  ;;  %v8203_v37 = vld [vmem:[#allocation112_spill] sm:$0xff] }
 0x7ce   : > { %930 = vperm.xlu0 %4189, %v472_v7   ;;  %v3545_v40 = vpop.xlane.xlu0 %3544 }
 0x7cf   : > { %v4696_v9 = vpop.eup %4695  ;;  %3716 = vmatprep.subr.bf16.mxu1 %v3685_v8  ;;  %4701 = vrcp.f32 %v3545_v40  ;;  %v7551_v30 = vpop.f32.mrb[188].mxu0 }
 0x7d0   : > { %v3643_v27 = vmul.f32 %v4696_v9, %v7332_v41  ;;  %v7554_v11 = vpop.f32.mrb[189].mxu0  ;;  %v465_v41 = vld [vmem:[%s7766_s2 + $0x298] sm:$0xff]  ;;  %v3642_v8 = vmul.f32 %v4696_v9, %v8202_v18  ;;  %v475_v18 = vld [vmem:[%s7766_s2 + $0x2e8] sm:$0xff] }
 0x7d1   : > { %v4698_v46 = vpop.eup %4697  ;;  %v469_v9 = vld [vmem:[%s7766_s2 + $0x2b8] sm:$0xff] }
 0x7d2   : > { %940 = vperm.xlu0 %4189, %v474_v61   ;;  %v3645_v54 = vmul.f32 %v4698_v46, %v8200_v31  ;;  %v3644_v7 = vmul.f32 %v4698_v46, %v8201_v17  ;;  %v467_v61 = vld [vmem:[%s7766_s2 + $0x2a8] sm:$0xff] }
 0x7d3   : > { %v8204_v46 = vld [vmem:[#allocation25_spill] sm:$0xff] }
 0x7d4   : > { %3717 = vmatpush1.bf16.xpose.msra.mxu1 %v3684_v63  ;;  %v3687_v29 = vpack.c.bf16 %v3645_v54, %v3643_v27  ;;  %v3686_v40 = vpack.c.bf16 %v3644_v7, %v3642_v8  ;;  %v8205_v27 = vld [vmem:[#allocation77_spill] sm:$0xff]  ;;  %v7582_v8 = vpop.f32.mrb[190].mxu0 }
 0x7d5   : > { %890 = vperm.xlu1 %4190, %v464_v21   ;;  %v8206_v54 = vld [vmem:[#allocation97_spill] sm:$0xff] }
 0x7d6   : > { %950 = vperm.xlu0 %4189, %v476_v23   ;;  %3718 = vmatprep.subr.bf16.mxu1 %v3687_v29  ;;  %v471_v7 = vld [vmem:[%s7766_s2 + $0x2c8] sm:$0xff] }
 0x7d7   : > { %v4700_v32 = vpop.eup %4699 }
 0x7d8   : > { %v3647_v63 = vmul.f32 %v4700_v32, %v8203_v37  ;;  %v3646_v29 = vmul.f32 %v4700_v32, %v8206_v54  ;;  %v477_v32 = vld [vmem:[%s7766_s2 + $0x2f8] sm:$0xff] }
 0x7d9   : > { %v4702_v15 = vpop.eup %4701  ;;  %895 = vperm.xlu1 %4190, %v465_v41   ;;  %v473_v41 = vld [vmem:[%s7766_s2 + $0x2d8] sm:$0xff] }
 0x7da   : > { %v3649_v21 = vmul.f32 %v4702_v15, %v8204_v46  ;;  %v3648_v31 = vmul.f32 %v4702_v15, %v8205_v27  ;;  %v7584_v15 = vpop.f32.mrb[191].mxu0 }
 0x7dc   : > { %3719 = vmatpush1.bf16.xpose.msra.mxu1 %v3686_v40  ;;  %v3689_v23 = vpack.c.bf16 %v3649_v21, %v3647_v63  ;;  %v3688_v17 = vpack.c.bf16 %v3648_v31, %v3646_v29  ;;  %v3548_v40 = vpop.xlane.xlu1 %3547  ;;  %v8207_v31 = vld [vmem:[#allocation8_spill] sm:$0xff] }
 0x7dd   : > { %905 = vperm.xlu1 %4190, %v467_v61   ;;  %4703 = vrcp.f32 %v3548_v40 }
 0x7de   : > { %3720 = vmatprep.subr.bf16.mxu1 %v3689_v23 }
 0x7e1   : > { %915 = vperm.xlu1 %4190, %v469_v9  }
 0x7e4   : > { %3721 = vmatpush1.bf16.xpose.msra.mxu1 %v3688_v17 }
 0x7e5   : > { %925 = vperm.xlu1 %4190, %v471_v7  }
 0x7e7   : > { %v4704_v63 = vpop.eup %4703 }
 0x7e8   : > { %v3651_v23 = vmul.f32 %v4704_v63, %v7358_v5  ;;  %v3650_v9 = vmul.f32 %v4704_v63, %v8207_v31 }
 0x7e9   : > { %935 = vperm.xlu1 %4190, %v473_v41  }
 0x7ed   : > { %945 = vperm.xlu1 %4190, %v475_v18  }
 0x7f1   : > { %955 = vperm.xlu1 %4190, %v477_v32  }
 0x818   : > { %v3554_v37 = vpop.xlane.xlu1 %3553 }
 0x81b   : > { %v3551_v61 = vpop.xlane.xlu0 %3550 }
 0x81c   : > { %4705 = vrcp.f32 %v3551_v61  ;;  %v881_v63 = vpop.permute.xlu1 %880 }
 0x81d   : > { %4707 = vrcp.f32 %v3554_v37 }
 0x824   : > { %v3557_v46 = vpop.xlane.xlu0 %3556 }
 0x825   : > { %4709 = vrcp.f32 %v3557_v46 }
 0x826   : > { %v4706_v21 = vpop.eup %4705 }
 0x827   : > { %v3653_v27 = vmul.f32 %v4706_v21, %v7384_v24  ;;  %v3652_v54 = vmul.f32 %v4706_v21, %v7382_v14  ;;  %v4708_v7 = vpop.eup %4707  ;;  %v7595_v21 = vadd.f32 %v7413_v16, %v881_v63 }
 0x828   : > { %v3655_v18 = vmul.f32 %v4708_v7, %v7376_v39  ;;  %v3654_v40 = vmul.f32 %v4708_v7, %v7374_v34 }
 0x829   : > { %v3691_v29 = vpack.c.bf16 %v3653_v27, %v3651_v23  ;;  %v3690_v17 = vpack.c.bf16 %v3652_v54, %v3650_v9  ;;  %v1875_v23 = vadd.f32 %v7418_v56, %v881_v63 }
 0x82b   : > { %3722 = vmatprep.subr.bf16.mxu1 %v3691_v29 }
 0x82c   : > { %3723 = vmatpush1.bf16.xpose.msra.mxu1 %v3690_v17 }
 0x82d   : > { %v3563_v37 = vpop.xlane.xlu0 %3562 }
 0x82e   : > { %4711 = vrcp.f32 %v3563_v37 }
 0x82f   : > { %v4710_v41 = vpop.eup %4709 }
 0x830   : > { %v3657_v32 = vmul.f32 %v4710_v41, %v7396_v12  ;;  %v3656_v5 = vmul.f32 %v4710_v41, %v7394_v0 }
 0x832   : > { %v3693_v61 = vpack.c.bf16 %v3657_v32, %v3655_v18  ;;  %v3692_v24 = vpack.c.bf16 %v3656_v5, %v3654_v40 }
 0x834   : > { %3724 = vmatprep.subr.bf16.mxu1 %v3693_v61 }
 0x835   : > { %3725 = vmatpush1.bf16.xpose.msra.mxu1 %v3692_v24  ;;  %v3569_v14 = vpop.xlane.xlu0 %3568 }
 0x838   : > { %v4712_v54 = vpop.eup %4711 }
 0x839   : > { %v3660_v41 = vmul.f32 %v4712_v54, %v7409_v42 }
 0x83d   : > { %v886_v46 = vpop.permute.xlu0 %885 }
 0x83e   : > { %v7599_v39 = vadd.f32 %v7448_v26, %v886_v46  ;;  %v1879_v34 = vadd.f32 %v7450_v43, %v886_v46  ;;  %v3661_v43 = vmul.f32 %v4712_v54, %v7411_v28 }
 0x840   : > { %v2159_v0 = vpack.c.bf16 %v7599_v39, %v7595_v21  ;;  %v2160_v12 = vpack.c.bf16 %v1879_v34, %v1875_v23 }
 0x841   : > { %v901_v31 = vpop.permute.xlu0 %900 }
 0x842   : > { %3730 = vmatprep.mubr.bf16.mxu1 %v2160_v12 }
 0x845   : > { %v911_v56 = vpop.permute.xlu0 %910 }
 0x84d   : > { %v3560_v27 = vpop.xlane.xlu1 %3559 }
 0x84e   : > { %4713 = vrcp.f32 %v3560_v27 }
 0x84f   : > { %4715 = vrcp.f32 %v3569_v14  ;;  %v921_v14 = vpop.permute.xlu0 %920 }
 0x851   : > { %v3566_v9 = vpop.xlane.xlu1 %3565 }
 0x852   : > { %4717 = vrcp.f32 %v3566_v9 }
 0x855   : > { %v891_v16 = vpop.permute.xlu1 %890 }
 0x856   : > { %v7609_v32 = vadd.f32 %v7453_v52, %v891_v16  ;;  %v1885_v40 = vadd.f32 %v7455_v10, %v891_v16  ;;  %v1893_v10 = vadd.f32 %v7481_v33, %v901_v31  ;;  %v1905_v33 = vadd.f32 %v7499_v1, %v911_v56 }
 0x858   : > { %v4714_v29 = vpop.eup %4713 }
 0x859   : > { %v896_v26 = vpop.permute.xlu1 %895  ;;  %v3659_v17 = vmul.f32 %v4714_v29, %v7462_v13  ;;  %v3658_v7 = vmul.f32 %v4714_v29, %v7457_v60  ;;  %v4716_v18 = vpop.eup %4715 }
 0x85a   : > { %v7613_v5 = vadd.f32 %v7474_v35, %v896_v26  ;;  %v1889_v61 = vadd.f32 %v7479_v47, %v896_v26  ;;  %v3665_v63 = vmul.f32 %v4716_v18, %v7425_v55  ;;  %v1895_v35 = vadd.f32 %v7483_v3, %v901_v31  ;;  %v931_v31 = vpop.permute.xlu0 %930 }
 0x85b   : > { %v3695_v24 = vpack.c.bf16 %v3661_v43, %v3659_v17  ;;  %v3694_v37 = vpack.c.bf16 %v3660_v41, %v3658_v7  ;;  %v1903_v55 = vadd.f32 %v7496_v25, %v911_v56  ;;  %v1913_v26 = vadd.f32 %v7509_v6, %v921_v14 }
 0x85c   : > { %v4718_v13 = vpop.eup %4717  ;;  %v2161_v28 = vpack.c.bf16 %v7613_v5, %v7609_v32  ;;  %v2162_v60 = vpack.c.bf16 %v1889_v61, %v1885_v40  ;;  %v1925_v43 = vadd.f32 %v7525_v4, %v931_v31 }
 0x85d   : > { %v906_v42 = vpop.permute.xlu1 %905  ;;  %3726 = vmatprep.subr.bf16.mxu1 %v3695_v24  ;;  %v3663_v52 = vmul.f32 %v4718_v13, %v7476_v59  ;;  %v3662_v27 = vmul.f32 %v4718_v13, %v7467_v48  ;;  %v3664_v59 = vmul.f32 %v4716_v18, %v7423_v51  ;;  %v1915_v48 = vadd.f32 %v7511_v62, %v921_v14  ;;  %v4753_v24 = vld [vmem:[%s5018_s11 + $0x110] sm:$0xff] }
 0x85e   : > { %v1897_v47 = vadd.f32 %v7490_v19, %v906_v42  ;;  %v1899_v46 = vadd.f32 %v7494_v2, %v906_v42  ;;  %3727 = vmatpush1.bf16.xpose.msra.mxu1 %v3694_v37  ;;  %v941_v56 = vpop.permute.xlu0 %940  ;;  %v4755_v42 = vld [vmem:[%s5018_s11 + $0x120] sm:$0xff] }
 0x85f   : > { %v3697_v23 = vpack.c.bf16 %v3665_v63, %v3663_v52  ;;  %v3696_v54 = vpack.c.bf16 %v3664_v59, %v3662_v27  ;;  %v4759_v59 = vld [vmem:[%s5018_s11 + $0x140] sm:$0xff] }
 0x860   : > { %v2163_v34 = vpack.c.bf16 %v1897_v47, %v1893_v10  ;;  %v2164_v12 = vpack.c.bf16 %v1899_v46, %v1895_v35  ;;  %v4756_v10 = vld [vmem:[%s5018_s11 + $0x128] sm:$0xff]  ;;  %v4757_v46 = vld [vmem:[%s5018_s11 + $0x130] sm:$0xff] }
 0x861   : > { %v916_v9 = vpop.permute.xlu1 %915  ;;  %3728 = vmatprep.subr.bf16.mxu1 %v3697_v23 }
 0x862   : > { %v1907_v3 = vadd.f32 %v7504_v53, %v916_v9  ;;  %v1909_v19 = vadd.f32 %v7507_v45, %v916_v9  ;;  %v1923_v45 = vadd.f32 %v7522_v50, %v931_v31  ;;  %v951_v4 = vpop.permute.xlu0 %950 }
 0x863   : > { %v1943_v5 = vadd.f32 %v7551_v30, %v951_v4  ;;  %v1945_v61 = vadd.f32 %v7554_v11, %v951_v4 }
 0x864   : > { %v2165_v2 = vpack.c.bf16 %v1907_v3, %v1903_v55  ;;  %v2166_v16 = vpack.c.bf16 %v1909_v19, %v1905_v33  ;;  %v4760_v3 = vld [vmem:[%s5018_s11 + $0x148] sm:$0xff] }
 0x865   : > { %v926_v29 = vpop.permute.xlu1 %925 }
 0x866   : > { %v1917_v17 = vadd.f32 %v7516_v58, %v926_v29  ;;  %v1919_v51 = vadd.f32 %v7520_v44, %v926_v29  ;;  %3729 = vmatpush1.bf16.xpose.msra.mxu1 %v3696_v54  ;;  %v1933_v58 = vadd.f32 %v7535_v22, %v941_v56  ;;  %v1935_v44 = vadd.f32 %v7537_v38, %v941_v56  ;;  %v4762_v29 = vld [vmem:[%s5018_s11 + $0x158] sm:$0xff] }
 0x868   : > { %v2167_v25 = vpack.c.bf16 %v1917_v17, %v1913_v26  ;;  %v2168_v1 = vpack.c.bf16 %v1919_v51, %v1915_v48  ;;  %v4763_v17 = vld [vmem:[%s5018_s11 + $0x160] sm:$0xff] }
 0x869   : > { %v936_v53 = vpop.permute.xlu1 %935 }
 0x86a   : > { %v1927_v7 = vadd.f32 %v7530_v20, %v936_v53  ;;  %v1929_v41 = vadd.f32 %v7533_v57, %v936_v53 }
 0x86c   : > { %v2169_v6 = vpack.c.bf16 %v1927_v7, %v1923_v45  ;;  %v2170_v18 = vpack.c.bf16 %v1929_v41, %v1925_v43  ;;  %v4765_v45 = vld [vmem:[%s5018_s11 + $0x170] sm:$0xff]  ;;  %v4766_v41 = vld [vmem:[%s5018_s11 + $0x178] sm:$0xff] }
 0x86d   : > { %v946_v62 = vpop.permute.xlu1 %945  ;;  %3731 = vmatmul.mubr.bf16.vlgmr.msra.gmra.mrb[160].mxu1 %v2159_v0 }
 0x86e   : > { %v1937_v32 = vadd.f32 %v7547_v49, %v946_v62  ;;  %v1939_v50 = vadd.f32 %v7549_v36, %v946_v62  ;;  %3740 = vmatprep.mubr.bf16.mxu1 %v2162_v60  ;;  %v4751_v36 = vld [vmem:[%s5018_s11 + $0x100] sm:$0xff] }
 0x86f   : > { %v4767_v62 = vld [vmem:[%s5018_s11 + $0x180] sm:$0xff] }
 0x870   : > { %v2171_v20 = vpack.c.bf16 %v1937_v32, %v1933_v58  ;;  %v2172_v40 = vpack.c.bf16 %v1939_v50, %v1935_v44  ;;  %v4768_v32 = vld [vmem:[%s5018_s11 + $0x188] sm:$0xff] }
 0x871   : > { %v956_v57 = vpop.permute.xlu1 %955 }
 0x872   : > { %v1947_v21 = vadd.f32 %v7582_v8, %v956_v57  ;;  %v1949_v39 = vadd.f32 %v7584_v15, %v956_v57  ;;  %v4752_v8 = vld [vmem:[%s5018_s11 + $0x108] sm:$0xff] }
 0x874   : > { %v2173_v22 = vpack.c.bf16 %v1947_v21, %v1943_v5  ;;  %v2174_v38 = vpack.c.bf16 %v1949_v39, %v1945_v61  ;;  %v4770_v5 = vld [vmem:[%s5018_s11 + $0x198] sm:$0xff]  ;;  %v4771_v39 = vld [vmem:[%s5018_s11 + $0x1a0] sm:$0xff] }
 0x875   : > { %3741 = vmatmul.mubr.bf16.gmra.mrb[164].mxu1 %v2161_v28  ;;  %v4754_v28 = vld [vmem:[%s5018_s11 + $0x118] sm:$0xff] }
 0x876   : > { %3750 = vmatprep.mubr.bf16.mxu1 %v2164_v12  ;;  %v4758_v12 = vld [vmem:[%s5018_s11 + $0x138] sm:$0xff] }
 0x87d   : > { %3751 = vmatmul.mubr.bf16.gmra.mrb[168].mxu1 %v2163_v34 }
 0x87e   : > { %3760 = vmatprep.mubr.bf16.mxu1 %v2166_v16 }
 0x885   : > { %3761 = vmatmul.mubr.bf16.gmra.mrb[172].mxu1 %v2165_v2  ;;  %v4761_v2 = vld [vmem:[%s5018_s11 + $0x150] sm:$0xff] }
 0x886   : > { %3770 = vmatprep.mubr.bf16.mxu1 %v2168_v1  ;;  %v4764_v1 = vld [vmem:[%s5018_s11 + $0x168] sm:$0xff] }
 0x88d   : > { %3771 = vmatmul.mubr.bf16.gmra.mrb[176].mxu1 %v2167_v25 }
 0x88e   : > { %3780 = vmatprep.mubr.bf16.mxu1 %v2170_v18 }
 0x895   : > { %3781 = vmatmul.mubr.bf16.gmra.mrb[180].mxu1 %v2169_v6 }
 0x896   : > { %3790 = vmatprep.mubr.bf16.mxu1 %v2172_v40 }
 0x89d   : > { %3791 = vmatmul.mubr.bf16.gmra.mrb[184].mxu1 %v2171_v20  ;;  %v4769_v20 = vld [vmem:[%s5018_s11 + $0x190] sm:$0xff] }
 0x89e   : > { %3800 = vmatprep.mubr.bf16.mxu1 %v2174_v38 }
 0x8a5   : > { %3801 = vmatmul.mubr.bf16.gmra.mrb[188].mxu1 %v2173_v22 }
 0x940   : > { %v3732_v49 = vpop.f32.mrb[160].mxu1 }
 0x941   : > { %v3843_v30 = vadd.f32 %v4751_v36, %v3732_v49  ;;  %v3734_v11 = vpop.f32.mrb[161].mxu1  ;;  %v4772_v49 = vld [vmem:[%s5018_s11 + $0x1a8] sm:$0xff] }
 0x942   : > { %v3844_v15 = vadd.f32 %v4752_v8, %v3734_v11  ;;  %v3736_v0 = vpop.f32.mrb[162].mxu1  ;;  %v4773_v11 = vld [vmem:[%s5018_s11 + $0x1b0] sm:$0xff] }
 0x943   : > { %3907 = vst [vmem:[%s6837_s17 + $0x100] sm:$0xff] %v3843_v30  ;;  %v3845_v37 = vadd.f32 %v4753_v24, %v3736_v0  ;;  %v3738_v13 = vpop.f32.mrb[163].mxu1  ;;  %v4774_v0 = vld [vmem:[%s5018_s11 + $0x1b8] sm:$0xff] }
 0x944   : > { %3908 = vst [vmem:[%s6837_s17 + $0x108] sm:$0xff] %v3844_v15  ;;  %v3846_v60 = vadd.f32 %v4754_v28, %v3738_v13  ;;  %v4775_v13 = vld [vmem:[%s5018_s11 + $0x1c0] sm:$0xff] }
 0x945   : > { %3909 = vst [vmem:[%s6837_s17 + $0x110] sm:$0xff] %v3845_v37 }
 0x946   : > { %3910 = vst [vmem:[%s6837_s17 + $0x118] sm:$0xff] %v3846_v60 }
 0x948   : > { %v3742_v14 = vpop.f32.mrb[164].mxu1 }
 0x949   : > { %v3847_v52 = vadd.f32 %v4755_v42, %v3742_v14  ;;  %v3744_v63 = vpop.f32.mrb[165].mxu1  ;;  %v4776_v14 = vld [vmem:[%s5018_s11 + $0x1c8] sm:$0xff] }
 0x94a   : > { %v3848_v35 = vadd.f32 %v4756_v10, %v3744_v63  ;;  %v3746_v47 = vpop.f32.mrb[166].mxu1  ;;  %v4777_v63 = vld [vmem:[%s5018_s11 + $0x1d0] sm:$0xff] }
 0x94b   : > { %3911 = vst [vmem:[%s6837_s17 + $0x120] sm:$0xff] %v3847_v52  ;;  %v3849_v23 = vadd.f32 %v4757_v46, %v3746_v47  ;;  %v3748_v34 = vpop.f32.mrb[167].mxu1  ;;  %v4778_v47 = vld [vmem:[%s5018_s11 + $0x1d8] sm:$0xff] }
 0x94c   : > { %3912 = vst [vmem:[%s6837_s17 + $0x128] sm:$0xff] %v3848_v35  ;;  %v3850_v27 = vadd.f32 %v4758_v12, %v3748_v34  ;;  %v4779_v34 = vld [vmem:[%s5018_s11 + $0x1e0] sm:$0xff] }
 0x94d   : > { %3913 = vst [vmem:[%s6837_s17 + $0x130] sm:$0xff] %v3849_v23 }
 0x94e   : > { %3914 = vst [vmem:[%s6837_s17 + $0x138] sm:$0xff] %v3850_v27 }
 0x950   : > { %v3752_v9 = vpop.f32.mrb[168].mxu1 }
 0x951   : > { %v3851_v55 = vadd.f32 %v4759_v59, %v3752_v9  ;;  %v3754_v33 = vpop.f32.mrb[169].mxu1  ;;  %v4780_v9 = vld [vmem:[%s5018_s11 + $0x1e8] sm:$0xff] }
 0x952   : > { %v3852_v19 = vadd.f32 %v4760_v3, %v3754_v33  ;;  %v3756_v31 = vpop.f32.mrb[170].mxu1  ;;  %v4781_v33 = vld [vmem:[%s5018_s11 + $0x1f0] sm:$0xff] }
 0x953   : > { %3915 = vst [vmem:[%s6837_s17 + $0x140] sm:$0xff] %v3851_v55  ;;  %v3853_v16 = vadd.f32 %v4761_v2, %v3756_v31  ;;  %v3758_v54 = vpop.f32.mrb[171].mxu1  ;;  %v4782_v31 = vld [vmem:[%s5018_s11 + $0x1f8] sm:$0xff] }
 0x954   : > { %3916 = vst [vmem:[%s6837_s17 + $0x148] sm:$0xff] %v3852_v19  ;;  %v3854_v26 = vadd.f32 %v4762_v29, %v3758_v54 }
 0x955   : > { %3917 = vst [vmem:[%s6837_s17 + $0x150] sm:$0xff] %v3853_v16 }
 0x956   : > { %3918 = vst [vmem:[%s6837_s17 + $0x158] sm:$0xff] %v3854_v26 }
 0x958   : > { %v3762_v48 = vpop.f32.mrb[172].mxu1 }
 0x959   : > { %v3855_v51 = vadd.f32 %v4763_v17, %v3762_v48  ;;  %v3764_v25 = vpop.f32.mrb[173].mxu1 }
 0x95a   : > { %v3856_v56 = vadd.f32 %v4764_v1, %v3764_v25  ;;  %v3766_v53 = vpop.f32.mrb[174].mxu1 }
 0x95b   : > { %3919 = vst [vmem:[%s6837_s17 + $0x160] sm:$0xff] %v3855_v51  ;;  %v3857_v43 = vadd.f32 %v4765_v45, %v3766_v53  ;;  %v3768_v7 = vpop.f32.mrb[175].mxu1 }
 0x95c   : > { %3920 = vst [vmem:[%s6837_s17 + $0x168] sm:$0xff] %v3856_v56  ;;  %v3858_v6 = vadd.f32 %v4766_v41, %v3768_v7 }
 0x95d   : > { %3921 = vst [vmem:[%s6837_s17 + $0x170] sm:$0xff] %v3857_v43 }
 0x95e   : > { %3922 = vst [vmem:[%s6837_s17 + $0x178] sm:$0xff] %v3858_v6 }
 0x960   : > { %v3772_v18 = vpop.f32.mrb[176].mxu1 }
 0x961   : > { %v3859_v58 = vadd.f32 %v4767_v62, %v3772_v18  ;;  %v3774_v44 = vpop.f32.mrb[177].mxu1 }
 0x962   : > { %v3860_v50 = vadd.f32 %v4768_v32, %v3774_v44  ;;  %v3776_v4 = vpop.f32.mrb[178].mxu1 }
 0x963   : > { %3923 = vst [vmem:[%s6837_s17 + $0x180] sm:$0xff] %v3859_v58  ;;  %v3861_v40 = vadd.f32 %v4769_v20, %v3776_v4  ;;  %v3778_v57 = vpop.f32.mrb[179].mxu1 }
 0x964   : > { %3924 = vst [vmem:[%s6837_s17 + $0x188] sm:$0xff] %v3860_v50  ;;  %v3862_v61 = vadd.f32 %v4770_v5, %v3778_v57 }
 0x965   : > { %3925 = vst [vmem:[%s6837_s17 + $0x190] sm:$0xff] %v3861_v40 }
 0x966   : > { %3926 = vst [vmem:[%s6837_s17 + $0x198] sm:$0xff] %v3862_v61 }
 0x968   : > { %v3782_v21 = vpop.f32.mrb[180].mxu1 }
 0x969   : > { %v3863_v22 = vadd.f32 %v4771_v39, %v3782_v21  ;;  %v3784_v38 = vpop.f32.mrb[181].mxu1 }
 0x96a   : > { %v3864_v36 = vadd.f32 %v4772_v49, %v3784_v38  ;;  %v3786_v30 = vpop.f32.mrb[182].mxu1 }
 0x96b   : > { %3927 = vst [vmem:[%s6837_s17 + $0x1a0] sm:$0xff] %v3863_v22  ;;  %v3865_v8 = vadd.f32 %v4773_v11, %v3786_v30  ;;  %v3788_v15 = vpop.f32.mrb[183].mxu1 }
 0x96c   : > { %3928 = vst [vmem:[%s6837_s17 + $0x1a8] sm:$0xff] %v3864_v36  ;;  %v3866_v24 = vadd.f32 %v4774_v0, %v3788_v15 }
 0x96d   : > { %3929 = vst [vmem:[%s6837_s17 + $0x1b0] sm:$0xff] %v3865_v8 }
 0x96e   : > { %3930 = vst [vmem:[%s6837_s17 + $0x1b8] sm:$0xff] %v3866_v24 }
 0x970   : > { %v3792_v37 = vpop.f32.mrb[184].mxu1 }
 0x971   : > { %v3867_v28 = vadd.f32 %v4775_v13, %v3792_v37  ;;  %v3794_v60 = vpop.f32.mrb[185].mxu1 }
 0x972   : > { %v3868_v42 = vadd.f32 %v4776_v14, %v3794_v60  ;;  %v3796_v52 = vpop.f32.mrb[186].mxu1 }
 0x973   : > { %3931 = vst [vmem:[%s6837_s17 + $0x1c0] sm:$0xff] %v3867_v28  ;;  %v3869_v10 = vadd.f32 %v4777_v63, %v3796_v52  ;;  %v3798_v35 = vpop.f32.mrb[187].mxu1 }
 0x974   : > { %3932 = vst [vmem:[%s6837_s17 + $0x1c8] sm:$0xff] %v3868_v42  ;;  %v3870_v46 = vadd.f32 %v4778_v47, %v3798_v35 }
 0x975   : > { %3933 = vst [vmem:[%s6837_s17 + $0x1d0] sm:$0xff] %v3869_v10 }
 0x976   : > { %3934 = vst [vmem:[%s6837_s17 + $0x1d8] sm:$0xff] %v3870_v46 }
 0x978   : > { %v3802_v23 = vpop.f32.mrb[188].mxu1 }
 0x979   : > { %v3871_v12 = vadd.f32 %v4779_v34, %v3802_v23  ;;  %v3804_v27 = vpop.f32.mrb[189].mxu1 }
 0x97a   : > { %v3872_v59 = vadd.f32 %v4780_v9, %v3804_v27  ;;  %v3806_v55 = vpop.f32.mrb[190].mxu1 }
 0x97b   : > { %3935 = vst [vmem:[%s6837_s17 + $0x1e0] sm:$0xff] %v3871_v12  ;;  %v3873_v3 = vadd.f32 %v4781_v33, %v3806_v55  ;;  %v3808_v19 = vpop.f32.mrb[191].mxu1 }
 0x97c   : > { %3936 = vst [vmem:[%s6837_s17 + $0x1e8] sm:$0xff] %v3872_v59  ;;  %v3874_v2 = vadd.f32 %v4782_v31, %v3808_v19 }
 0x97d   : > { %3937 = vst [vmem:[%s6837_s17 + $0x1f0] sm:$0xff] %v3873_v3 }
 0x97e   : > { %3938 = vst [vmem:[%s6837_s17 + $0x1f8] sm:$0xff] %v3874_v2 }
 0x97f   : > { %4826 = shalt.err (!%p4823_p2)
}
 0x980   : > { %s4827_s11 = scalar_lea.hbm %s7714_s30, 8192  ;;  %s4831_s8 = scalar_lea.hbm %s7767_s3, 16384 }
 0x981   : > { %p4828_p4 = scmp.ne.s32.totalorder %s7714_s30, %s4827_s11  ;;  %p4832_p9 = scmp.lt.u32.totalorder %s7714_s30, %s7767_s3 }
 0x982   : > { %p4833_p1 = scmp.lt.u32.totalorder %s4831_s8, %s4827_s11  ;;  %p4835_p6 = scmp.lt.u32.totalorder %s4827_s11, %s7714_s30 }
 0x983   : > { %p4829_p5 = pnand %p4828_p4, %p8208_p11 }
 0x984   : > { %p4834_p3 = por %p4833_p1, %p4832_p9 }
 0x985   : > { %p4830_p7 = pneg %p4829_p5 }
 0x986   : > { %p4836_p12 = por %p4835_p6, %p4834_p3 }
 0x988   : > { %p4837_p13 = pnand %p4836_p12, %p4830_p7 }
 0x98a   : > { %4840 = shalt.err (!%p4837_p13)
}
 0x98b   : > { %s4886_s20 = smov 256   ;;  %s4887_s22 = smov 16  }
 0x98c   : > { %4140 = dma.vmem_to_hbm [thread:$0]  (%p8208_p11), %s7716_s27, 8192, %s7714_s30, %s3940_s16, %s4886_s20, %s4886_s20, %s4887_s22  }
 0x98d PF: > { %s3968_s26 = sand.u32 1, %s4867_s12   ;;  %p8209_p8 = scmp.ne.s32.totalorder %s7857_s25, 0 }
 0x98e   : > { %p8210_p10 = scmp.ge.s32.totalorder %s4879_s15, 2  ;;  %s3969_s28 = scalar_lea.sflag [#allocation4], %s3968_s26 }
 0x990   : > { %p4147_p0 = pnand %p8210_p10, %p8209_p8 }
 0x992   : > { %4862 = dma.done.wait (!%p4147_p0), %s3969_s28, 8192  }
 0x993   : > { %4864 = vsyncadd (!%p4147_p0), %s3969_s28, 4294959104  ;;  %p16_p2 = scmp.ge.s32.totalorder %s4933_s18, 4   ;;  %s8211_s12 = smov %s4871_s13 }
 0x994   : > { %s8212_s13 = smov %s4875_s14  ;;  %s8213_s14 = smov %s4945_s21 }
 0x995   : > { %s8214_s15 = smov %s4933_s18  ;;  %18 = sbr.rel (!%p16_p2) target bundleno = 5 (0x5), region = 77 }
 0x99c   :  { %3974 = vsyncpa [#allocation3], 1 }
 0x99d   :  { %3976 = vsyncpa [#allocation3 + $0x1], 1 }
 0x99e   :  { %3977 = vsyncpa [#allocation4], 1 }
 0x99f   :  { %3979 = vsyncpa [#allocation4 + $0x1], 1 }

</bundles_post_ra>
